<compile_context>
chip_gen: v6e
topology: v6e:2x2x1
jax: 0.10.0
libtpu: 0.0.40
codegen_flags: <defaults>
</compile_context>

<pallas_src>
import functools

import jax
import jax.numpy as jnp
from jax.experimental import pallas as pl
from jax.experimental.pallas import tpu as pltpu

# ---- module hyper-parameters (small, consistent with the torch module) ----
D_MODEL = 32
FFN_HIDDEN = 64
N_HEAD = 4
N_LAYERS = 2
N_CLS = 4
N_TOKENS = N_CLS          # cls_tokens: forward needs at least N_CLS cls tokens
SEQ = 1 + N_TOKENS        # [x] + cls tokens
LN_EPS = 1e-5
VEC_W = 3 * D_MODEL       # packing width for the per-layer bias/scale slab
# drop_prob is accepted by the torch module but dropout is identity at inference.


def _round_up(n, m):
    return ((n + m - 1) // m) * m


def _layernorm(x, gamma, beta):
    mu = jnp.mean(x, axis=-1, keepdims=True)
    var = jnp.mean(jnp.square(x - mu), axis=-1, keepdims=True)
    return (x - mu) * jax.lax.rsqrt(var + LN_EPS) * gamma + beta


def _sigmoid(x):
    # numerically-stable sigmoid via tanh (EUP), avoids exp overflow for x << 0
    return 0.5 * jnp.tanh(0.5 * x) + 0.5


# ---------------------------------------------------------------------------
# Fused kernel: one grid step == one batch tile of TB samples.
# ---------------------------------------------------------------------------
def cformer_kernel(x_ref, cls_ref, hmat_ref,
                   wqkv_ref, wo_ref, wf1_ref, wf2_ref, vec_ref,
                   w1_ref, b1_ref, wp_ref, bp_ref,
                   zp_ref, *, n_layers, n_tokens, n_cls, tb):
    S = 1 + n_tokens
    D = x_ref.shape[-1]
    F = wf1_ref.shape[-1]

    # Build the token-major sequence slab: rows [s*tb:(s+1)*tb] hold token s
    # for every sample of the batch tile (token 0 = input row, 1..n = cls).
    x0 = x_ref[...].astype(jnp.float32)                              # (tb, D)
    cls = cls_ref[...].astype(jnp.float32)                           # (n_tokens, D)
    toks = [x0] + [jnp.broadcast_to(cls[s:s + 1, :], (tb, D)) for s in range(n_tokens)]
    x2 = jnp.concatenate(toks, axis=0)                               # (S*tb, D)

    hmat = hmat_ref[...]                                             # (D, D) scaled head-block mask

    for l in range(n_layers):
        wqkv = wqkv_ref[l]                                           # (D, 3D)
        wo = wo_ref[l]                                               # (D, D)
        wf1 = wf1_ref[l]                                             # (D, F)
        wf2 = wf2_ref[l]                                             # (F, D)
        vec = vec_ref[l]                                             # (8, 3D) packed slab
        bqkv = vec[0:1, :]
        bo = vec[1:2, 0:D]
        bf1 = vec[2:3, 0:F]
        bf2 = vec[3:4, 0:D]
        g1, be1 = vec[4:5, 0:D], vec[5:6, 0:D]
        g2, be2 = vec[6:7, 0:D], vec[7:8, 0:D]

        # Fused q|k|v projection for all tokens of the whole batch tile.
        qkv = jnp.dot(x2, wqkv, preferred_element_type=jnp.float32) + bqkv
        q = qkv[:, 0:D]
        k = qkv[:, D:2 * D]
        v = qkv[:, 2 * D:3 * D]

        q_t = [q[i * tb:(i + 1) * tb, :] for i in range(S)]
        k_t = [k[j * tb:(j + 1) * tb, :] for j in range(S)]
        v_t = [v[j * tb:(j + 1) * tb, :] for j in range(S)]

        # Attention.  For every (query i, key j) token pair the per-head scaled
        # scores are produced by ONE matmul per layer against `hmat` (segmented
        # lane sum over each head's dh lanes, replicated back across those
        # lanes, pre-scaled by 1/sqrt(dh)), then a lane-wise softmax over j and
        # a lane-wise weighted sum of V — no transposes, no per-head slicing.
        prod = jnp.concatenate(
            [q_t[i] * k_t[j] for i in range(S) for j in range(S)], axis=0)    # (S*S*tb, D)
        s_all = jnp.dot(prod, hmat, preferred_element_type=jnp.float32)       # (S*S*tb, D)

        attn_toks = []
        for i in range(S):
            sij = [s_all[(i * S + j) * tb:(i * S + j + 1) * tb, :] for j in range(S)]
            m = sij[0]
            for j in range(1, S):
                m = jnp.maximum(m, sij[j])
            eij = [jnp.exp(sij[j] - m) for j in range(S)]
            den = eij[0]
            for j in range(1, S):
                den = den + eij[j]
            inv = pl.reciprocal(den, approx=True)                    # EUP, frees VALU slots
            acc = (eij[0] * inv) * v_t[0]
            for j in range(1, S):
                acc = acc + (eij[j] * inv) * v_t[j]
            attn_toks.append(acc)
        attn = jnp.concatenate(attn_toks, axis=0)                    # (S*tb, D)

        attn = jnp.dot(attn, wo, preferred_element_type=jnp.float32) + bo
        # dropout1 is identity at inference
        h1 = _layernorm(x2 + attn, g1, be1)

        ff = jnp.maximum(jnp.dot(h1, wf1, preferred_element_type=jnp.float32) + bf1, 0.0)
        ff = jnp.dot(ff, wf2, preferred_element_type=jnp.float32) + bf2
        # dropout2 is identity at inference
        x2 = _layernorm(h1 + ff, g2, be2)

    # Output heads, merged into a single lane-contiguous (tb, 2*n_cls) store.
    # Reproduces the torch loop exactly: z = linear1(token 0);
    # p column j uses linears[max(j-1, 0)] applied to token j+1.
    z = jnp.dot(x2[0:tb, :], w1_ref[...], preferred_element_type=jnp.float32) + b1_ref[...]
    wp = wp_ref[...]
    p_cols = []
    for j in range(n_cls):
        t = x2[(j + 1) * tb:(j + 2) * tb, :]
        p_cols.append(jnp.sum(t * wp[j:j + 1, :], axis=-1, keepdims=True))
    p = jnp.concatenate(p_cols, axis=1) + bp_ref[...]
    zp_ref[...] = _sigmoid(jnp.concatenate([z, p], axis=1)).astype(zp_ref.dtype)


# ---------------------------------------------------------------------------
# Wrapper: pack weights, pad/tile the batch, call the fused kernel once.
# ---------------------------------------------------------------------------
def cformer_block(x, params, s_mask=None, *, batch_tile=128):
    # s_mask is None in the reference call path (no attention mask).
    del s_mask
    B, D = x.shape

    # ---- pack per-layer weights into a few stacked, VMEM-resident slabs ----
    wqkv_l, wo_l, wf1_l, wf2_l, vec_l = [], [], [], [], []
    for (wq, bq, wk, bk, wv, bv, wo, bo,
         g1, be1, wf1, bf1, wf2, bf2, g2, be2) in params["layers"]:
        wqkv_l.append(jnp.concatenate([wq, wk, wv], axis=1))          # (D, 3D)
        wo_l.append(wo)
        wf1_l.append(wf1)
        wf2_l.append(wf2)
        rows = [jnp.concatenate([bq, bk, bv], axis=1).reshape(-1),
                bo.reshape(-1), bf1.reshape(-1), bf2.reshape(-1),
                g1.reshape(-1), be1.reshape(-1), g2.reshape(-1), be2.reshape(-1)]
        vec_l.append(jnp.stack([jnp.pad(r, (0, VEC_W - r.shape[0])) for r in rows]))
    wqkv_a = jnp.stack(wqkv_l)
    wo_a = jnp.stack(wo_l)
    wf1_a = jnp.stack(wf1_l)
    wf2_a = jnp.stack(wf2_l)
    vec_a = jnp.stack(vec_l)

    # Scaled block-diagonal head mask: (prod @ hmat) = per-head dot products
    # broadcast across each head's lanes, pre-multiplied by 1/sqrt(d_head).
    dh = D // N_HEAD
    head_id = jnp.arange(D, dtype=jnp.int32) // dh
    hmat = (head_id[:, None] == head_id[None, :]).astype(jnp.float32) / jnp.sqrt(float(dh))

    # torch head indexing: p column j uses linears[max(j-1,0)] on token j+1
    idx = jnp.array([max(j - 1, 0) for j in range(N_CLS)], dtype=jnp.int32)
    wp_eff = params["lin_w"][idx]                                     # (N_CLS, D)
    bp_eff = params["lin_b"][idx].reshape(1, N_CLS)                   # (1, N_CLS)

    # ---- batch tiling: fold the batch into the matmul M dimension ----
    tb = min(batch_tile, _round_up(B, 8))
    b_pad = _round_up(B, tb)
    x_pad = jnp.pad(x, ((0, b_pad - B), (0, 0))) if b_pad != B else x

    consts = (params["cls_tokens"], hmat, wqkv_a, wo_a, wf1_a, wf2_a, vec_a,
              params["linear1_w"], params["linear1_b"], wp_eff, bp_eff)

    def full_spec(a):
        nd = a.ndim
        return pl.BlockSpec(a.shape, lambda i, _n=nd: (0,) * _n)

    kernel = functools.partial(cformer_kernel, n_layers=N_LAYERS,
                               n_tokens=N_TOKENS, n_cls=N_CLS, tb=tb)
    zp = pl.pallas_call(
        kernel,
        out_shape=jax.ShapeDtypeStruct((b_pad, 2 * N_CLS), jnp.float32),
        grid=(b_pad // tb,),
        in_specs=[pl.BlockSpec((tb, D), lambda i: (i, 0))] + [full_spec(a) for a in consts],
        out_specs=pl.BlockSpec((tb, 2 * N_CLS), lambda i: (i, 0)),
        compiler_params=pltpu.CompilerParams(dimension_semantics=("parallel",)),
    )(x_pad, *consts)

    return zp[:B, :N_CLS], zp[:B, N_CLS:]


# ---------------------------------------------------------------------------
# Parameter construction (deterministic, synthetic) + pure-JAX reference.
# ---------------------------------------------------------------------------
def _linear_init(key, fan_in, fan_out):
    kw, kb = jax.random.split(key)
    w = jax.random.normal(kw, (fan_in, fan_out), jnp.float32) / jnp.sqrt(float(fan_in))
    b = 0.01 * jax.random.normal(kb, (1, fan_out), jnp.float32)
    return w, b


def init_params(key):
    k_layers, k_cls, k_l1, k_lp = jax.random.split(key, 4)
    layers = []
    for l in range(N_LAYERS):
        ks = jax.random.split(jax.random.fold_in(k_layers, l), 6)
        wq, bq = _linear_init(ks[0], D_MODEL, D_MODEL)
        wk, bk = _linear_init(ks[1], D_MODEL, D_MODEL)
        wv, bv = _linear_init(ks[2], D_MODEL, D_MODEL)
        wo, bo = _linear_init(ks[3], D_MODEL, D_MODEL)
        wf1, bf1 = _linear_init(ks[4], D_MODEL, FFN_HIDDEN)
        wf2, bf2 = _linear_init(ks[5], FFN_HIDDEN, D_MODEL)
        g1 = jnp.ones((1, D_MODEL), jnp.float32)
        be1 = jnp.zeros((1, D_MODEL), jnp.float32)
        g2 = jnp.ones((1, D_MODEL), jnp.float32)
        be2 = jnp.zeros((1, D_MODEL), jnp.float32)
        layers.append((wq, bq, wk, bk, wv, bv, wo, bo,
                       g1, be1, wf1, bf1, wf2, bf2, g2, be2))

    cls_tokens = 0.02 * jax.random.normal(k_cls, (N_TOKENS, D_MODEL), jnp.float32)
    w1, b1 = _linear_init(k_l1, D_MODEL, N_CLS)                       # linear1
    lin_w = jax.random.normal(k_lp, (N_CLS, D_MODEL), jnp.float32) / jnp.sqrt(float(D_MODEL))
    lin_b = 0.01 * jax.random.normal(jax.random.fold_in(k_lp, 1), (N_CLS,), jnp.float32)
    return {"layers": layers, "cls_tokens": cls_tokens,
            "linear1_w": w1, "linear1_b": b1,
            "lin_w": lin_w, "lin_b": lin_b}


def cformer_reference(x, params):
    """Pure-JAX reference of the torch forward (for correctness checking)."""
    B = x.shape[0]
    cls = params["cls_tokens"]
    seq = jnp.concatenate(
        [x[:, None, :], jnp.broadcast_to(cls[None], (B,) + cls.shape)], axis=1)
    dh = D_MODEL // N_HEAD
    for (wq, bq, wk, bk, wv, bv, wo, bo,
         g1, be1, wf1, bf1, wf2, bf2, g2, be2) in params["layers"]:
        q, k, v = seq @ wq + bq, seq @ wk + bk, seq @ wv + bv

        def split(t):
            return t.reshape(B, SEQ, N_HEAD, dh).transpose(0, 2, 1, 3)

        qh, kh, vh = split(q), split(k), split(v)
        s = jnp.einsum('bhqd,bhkd->bhqk', qh, kh) / jnp.sqrt(float(dh))
        a = jax.nn.softmax(s, axis=-1)
        o = jnp.einsum('bhqk,bhkd->bhqd', a, vh).transpose(0, 2, 1, 3).reshape(B, SEQ, D_MODEL)
        o = o @ wo + bo
        h1 = _layernorm(seq + o, g1, be1)
        ff = jnp.maximum(h1 @ wf1 + bf1, 0.0) @ wf2 + bf2
        seq = _layernorm(h1 + ff, g2, be2)

    z = jax.nn.sigmoid(seq[:, 0, :] @ params["linear1_w"] + params["linear1_b"])
    p_cols = []
    for j in range(N_CLS):
        i = max(j - 1, 0)
        p_cols.append(seq[:, j + 1, :] @ params["lin_w"][i] + params["lin_b"][i])
    p = jax.nn.sigmoid(jnp.stack(p_cols, axis=1))
    return z, p


if __name__ == "__main__":
    key = jax.random.PRNGKey(0)
    params = init_params(key)
    x = jax.random.normal(jax.random.fold_in(key, 123), (2, D_MODEL), jnp.float32)

    z, p = cformer_block(x, params)
    jax.block_until_ready((z, p))

    z_ref, p_ref = cformer_reference(x, params)
    assert z.shape == (2, N_CLS) and p.shape == z.shape
    assert bool(jnp.all(jnp.isfinite(z))) and bool(jnp.all(jnp.isfinite(p)))
    assert bool(jnp.allclose(z, z_ref, atol=2e-2, rtol=2e-2))
    assert bool(jnp.allclose(p, p_ref, atol=2e-2, rtol=2e-2))
    print("KERNEL_OK")
</pallas_src>

<mosaic_0001>
module attributes {stable_mosaic.version = 11 : i64} {
  func.func @cformer_kernel(%arg0: i32, %arg1: memref<8x32xf32, #tpu.memory_space<vmem>>, %arg2: memref<4x32xf32, #tpu.memory_space<vmem>>, %arg3: memref<32x32xf32, #tpu.memory_space<vmem>>, %arg4: memref<2x32x96xf32, #tpu.memory_space<vmem>>, %arg5: memref<2x32x32xf32, #tpu.memory_space<vmem>>, %arg6: memref<2x32x64xf32, #tpu.memory_space<vmem>>, %arg7: memref<2x64x32xf32, #tpu.memory_space<vmem>>, %arg8: memref<2x8x96xf32, #tpu.memory_space<vmem>>, %arg9: memref<32x4xf32, #tpu.memory_space<vmem>>, %arg10: memref<1x4xf32, #tpu.memory_space<vmem>>, %arg11: memref<4x32xf32, #tpu.memory_space<vmem>>, %arg12: memref<1x4xf32, #tpu.memory_space<vmem>>, %arg13: memref<8x8xf32, #tpu.memory_space<vmem>>) attributes {dimension_semantics = [#tpu.dimension_semantics<parallel>], iteration_bounds = array<i64: 1>, scalar_prefetch = 0 : i64, scratch_operands = 0 : i64, tpu.core_type = #tpu.core_type<tc>, window_params = [{transform_indices = @transform_0, window_bounds = array<i64: 8, 32>}, {pipeline_mode = #tpu.pipeline_mode<synchronous>, transform_indices = @transform_1, window_bounds = array<i64: 4, 32>}, {pipeline_mode = #tpu.pipeline_mode<synchronous>, transform_indices = @transform_2, window_bounds = array<i64: 32, 32>}, {pipeline_mode = #tpu.pipeline_mode<synchronous>, transform_indices = @transform_3, window_bounds = array<i64: 2, 32, 96>}, {pipeline_mode = #tpu.pipeline_mode<synchronous>, transform_indices = @transform_4, window_bounds = array<i64: 2, 32, 32>}, {pipeline_mode = #tpu.pipeline_mode<synchronous>, transform_indices = @transform_5, window_bounds = array<i64: 2, 32, 64>}, {pipeline_mode = #tpu.pipeline_mode<synchronous>, transform_indices = @transform_6, window_bounds = array<i64: 2, 64, 32>}, {pipeline_mode = #tpu.pipeline_mode<synchronous>, transform_indices = @transform_7, window_bounds = array<i64: 2, 8, 96>}, {pipeline_mode = #tpu.pipeline_mode<synchronous>, transform_indices = @transform_8, window_bounds = array<i64: 32, 4>}, {pipeline_mode = #tpu.pipeline_mode<synchronous>, transform_indices = @transform_9, window_bounds = array<i64: 1, 4>}, {pipeline_mode = #tpu.pipeline_mode<synchronous>, transform_indices = @transform_10, window_bounds = array<i64: 4, 32>}, {pipeline_mode = #tpu.pipeline_mode<synchronous>, transform_indices = @transform_11, window_bounds = array<i64: 1, 4>}, {transform_indices = @transform_12, window_bounds = array<i64: 8, 8>}]} {
    %c0 = arith.constant 0 : index
    %c0_0 = arith.constant 0 : index
    %0 = vector.load %arg1[%c0, %c0_0] : memref<8x32xf32, #tpu.memory_space<vmem>>, vector<8x32xf32>
    %c0_1 = arith.constant 0 : index
    %c0_2 = arith.constant 0 : index
    %1 = vector.load %arg2[%c0_1, %c0_2] : memref<4x32xf32, #tpu.memory_space<vmem>>, vector<4x32xf32>
    %2 = vector.extract_strided_slice %1 {offsets = [0, 0], sizes = [1, 32], strides = [1, 1]} : vector<4x32xf32> to vector<1x32xf32>
    %3 = vector.shape_cast %2 : vector<1x32xf32> to vector<1x32xf32>
    %4 = vector.broadcast %3 : vector<1x32xf32> to vector<8x32xf32>
    %5 = vector.extract_strided_slice %1 {offsets = [1, 0], sizes = [1, 32], strides = [1, 1]} : vector<4x32xf32> to vector<1x32xf32>
    %6 = vector.shape_cast %5 : vector<1x32xf32> to vector<1x32xf32>
    %7 = vector.broadcast %6 : vector<1x32xf32> to vector<8x32xf32>
    %8 = vector.extract_strided_slice %1 {offsets = [2, 0], sizes = [1, 32], strides = [1, 1]} : vector<4x32xf32> to vector<1x32xf32>
    %9 = vector.shape_cast %8 : vector<1x32xf32> to vector<1x32xf32>
    %10 = vector.broadcast %9 : vector<1x32xf32> to vector<8x32xf32>
    %11 = vector.extract_strided_slice %1 {offsets = [3, 0], sizes = [1, 32], strides = [1, 1]} : vector<4x32xf32> to vector<1x32xf32>
    %12 = vector.shape_cast %11 : vector<1x32xf32> to vector<1x32xf32>
    %13 = vector.broadcast %12 : vector<1x32xf32> to vector<8x32xf32>
    %14 = tpu.concatenate %0, %4, %7, %10, %13 in 0 : vector<8x32xf32>, vector<8x32xf32>, vector<8x32xf32>, vector<8x32xf32>, vector<8x32xf32> -> vector<40x32xf32>
    %c0_3 = arith.constant 0 : index
    %c0_4 = arith.constant 0 : index
    %15 = vector.load %arg3[%c0_3, %c0_4] : memref<32x32xf32, #tpu.memory_space<vmem>>, vector<32x32xf32>
    %c0_5 = arith.constant 0 : index
    %c0_6 = arith.constant 0 : index
    %c0_7 = arith.constant 0 : index
    %16 = vector.load %arg4[%c0_5, %c0_6, %c0_7] : memref<2x32x96xf32, #tpu.memory_space<vmem>>, vector<1x32x96xf32>
    %17 = vector.shape_cast %16 : vector<1x32x96xf32> to vector<32x96xf32>
    %c0_8 = arith.constant 0 : index
    %c0_9 = arith.constant 0 : index
    %c0_10 = arith.constant 0 : index
    %18 = vector.load %arg5[%c0_8, %c0_9, %c0_10] : memref<2x32x32xf32, #tpu.memory_space<vmem>>, vector<1x32x32xf32>
    %19 = vector.shape_cast %18 : vector<1x32x32xf32> to vector<32x32xf32>
    %c0_11 = arith.constant 0 : index
    %c0_12 = arith.constant 0 : index
    %c0_13 = arith.constant 0 : index
    %20 = vector.load %arg6[%c0_11, %c0_12, %c0_13] : memref<2x32x64xf32, #tpu.memory_space<vmem>>, vector<1x32x64xf32>
    %21 = vector.shape_cast %20 : vector<1x32x64xf32> to vector<32x64xf32>
    %c0_14 = arith.constant 0 : index
    %c0_15 = arith.constant 0 : index
    %c0_16 = arith.constant 0 : index
    %22 = vector.load %arg7[%c0_14, %c0_15, %c0_16] : memref<2x64x32xf32, #tpu.memory_space<vmem>>, vector<1x64x32xf32>
    %23 = vector.shape_cast %22 : vector<1x64x32xf32> to vector<64x32xf32>
    %c0_17 = arith.constant 0 : index
    %c0_18 = arith.constant 0 : index
    %c0_19 = arith.constant 0 : index
    %24 = vector.load %arg8[%c0_17, %c0_18, %c0_19] : memref<2x8x96xf32, #tpu.memory_space<vmem>>, vector<1x8x96xf32>
    %25 = vector.shape_cast %24 : vector<1x8x96xf32> to vector<8x96xf32>
    %26 = vector.extract_strided_slice %25 {offsets = [0, 0], sizes = [1, 96], strides = [1, 1]} : vector<8x96xf32> to vector<1x96xf32>
    %27 = vector.extract_strided_slice %25 {offsets = [1, 0], sizes = [1, 32], strides = [1, 1]} : vector<8x96xf32> to vector<1x32xf32>
    %28 = vector.extract_strided_slice %25 {offsets = [2, 0], sizes = [1, 64], strides = [1, 1]} : vector<8x96xf32> to vector<1x64xf32>
    %29 = vector.extract_strided_slice %25 {offsets = [3, 0], sizes = [1, 32], strides = [1, 1]} : vector<8x96xf32> to vector<1x32xf32>
    %30 = vector.extract_strided_slice %25 {offsets = [4, 0], sizes = [1, 32], strides = [1, 1]} : vector<8x96xf32> to vector<1x32xf32>
    %31 = vector.extract_strided_slice %25 {offsets = [5, 0], sizes = [1, 32], strides = [1, 1]} : vector<8x96xf32> to vector<1x32xf32>
    %32 = vector.extract_strided_slice %25 {offsets = [6, 0], sizes = [1, 32], strides = [1, 1]} : vector<8x96xf32> to vector<1x32xf32>
    %33 = vector.extract_strided_slice %25 {offsets = [7, 0], sizes = [1, 32], strides = [1, 1]} : vector<8x96xf32> to vector<1x32xf32>
    %cst = arith.constant dense<0.000000e+00> : vector<40x96xf32>
    %34 = tpu.matmul %14, %17, %cst {dimension_numbers = #tpu.dot_dimension_numbers<[1], [0], [0], [1], [0, 0, 1, 1], [], []>} : vector<40x32xf32>, vector<32x96xf32>, vector<40x96xf32> -> vector<40x96xf32>
    %35 = vector.broadcast %26 : vector<1x96xf32> to vector<40x96xf32>
    %36 = arith.addf %34, %35 : vector<40x96xf32>
    %37 = vector.extract_strided_slice %36 {offsets = [0, 0], sizes = [40, 32], strides = [1, 1]} : vector<40x96xf32> to vector<40x32xf32>
    %38 = vector.extract_strided_slice %36 {offsets = [0, 32], sizes = [40, 32], strides = [1, 1]} : vector<40x96xf32> to vector<40x32xf32>
    %39 = vector.extract_strided_slice %36 {offsets = [0, 64], sizes = [40, 32], strides = [1, 1]} : vector<40x96xf32> to vector<40x32xf32>
    %40 = vector.extract_strided_slice %37 {offsets = [0, 0], sizes = [8, 32], strides = [1, 1]} : vector<40x32xf32> to vector<8x32xf32>
    %41 = vector.extract_strided_slice %37 {offsets = [8, 0], sizes = [8, 32], strides = [1, 1]} : vector<40x32xf32> to vector<8x32xf32>
    %42 = vector.extract_strided_slice %37 {offsets = [16, 0], sizes = [8, 32], strides = [1, 1]} : vector<40x32xf32> to vector<8x32xf32>
    %43 = vector.extract_strided_slice %37 {offsets = [24, 0], sizes = [8, 32], strides = [1, 1]} : vector<40x32xf32> to vector<8x32xf32>
    %44 = vector.extract_strided_slice %37 {offsets = [32, 0], sizes = [8, 32], strides = [1, 1]} : vector<40x32xf32> to vector<8x32xf32>
    %45 = vector.extract_strided_slice %38 {offsets = [0, 0], sizes = [8, 32], strides = [1, 1]} : vector<40x32xf32> to vector<8x32xf32>
    %46 = vector.extract_strided_slice %38 {offsets = [8, 0], sizes = [8, 32], strides = [1, 1]} : vector<40x32xf32> to vector<8x32xf32>
    %47 = vector.extract_strided_slice %38 {offsets = [16, 0], sizes = [8, 32], strides = [1, 1]} : vector<40x32xf32> to vector<8x32xf32>
    %48 = vector.extract_strided_slice %38 {offsets = [24, 0], sizes = [8, 32], strides = [1, 1]} : vector<40x32xf32> to vector<8x32xf32>
    %49 = vector.extract_strided_slice %38 {offsets = [32, 0], sizes = [8, 32], strides = [1, 1]} : vector<40x32xf32> to vector<8x32xf32>
    %50 = vector.extract_strided_slice %39 {offsets = [0, 0], sizes = [8, 32], strides = [1, 1]} : vector<40x32xf32> to vector<8x32xf32>
    %51 = vector.extract_strided_slice %39 {offsets = [8, 0], sizes = [8, 32], strides = [1, 1]} : vector<40x32xf32> to vector<8x32xf32>
    %52 = vector.extract_strided_slice %39 {offsets = [16, 0], sizes = [8, 32], strides = [1, 1]} : vector<40x32xf32> to vector<8x32xf32>
    %53 = vector.extract_strided_slice %39 {offsets = [24, 0], sizes = [8, 32], strides = [1, 1]} : vector<40x32xf32> to vector<8x32xf32>
    %54 = vector.extract_strided_slice %39 {offsets = [32, 0], sizes = [8, 32], strides = [1, 1]} : vector<40x32xf32> to vector<8x32xf32>
    %55 = arith.mulf %40, %45 : vector<8x32xf32>
    %56 = arith.mulf %40, %46 : vector<8x32xf32>
    %57 = arith.mulf %40, %47 : vector<8x32xf32>
    %58 = arith.mulf %40, %48 : vector<8x32xf32>
    %59 = arith.mulf %40, %49 : vector<8x32xf32>
    %60 = arith.mulf %41, %45 : vector<8x32xf32>
    %61 = arith.mulf %41, %46 : vector<8x32xf32>
    %62 = arith.mulf %41, %47 : vector<8x32xf32>
    %63 = arith.mulf %41, %48 : vector<8x32xf32>
    %64 = arith.mulf %41, %49 : vector<8x32xf32>
    %65 = arith.mulf %42, %45 : vector<8x32xf32>
    %66 = arith.mulf %42, %46 : vector<8x32xf32>
    %67 = arith.mulf %42, %47 : vector<8x32xf32>
    %68 = arith.mulf %42, %48 : vector<8x32xf32>
    %69 = arith.mulf %42, %49 : vector<8x32xf32>
    %70 = arith.mulf %43, %45 : vector<8x32xf32>
    %71 = arith.mulf %43, %46 : vector<8x32xf32>
    %72 = arith.mulf %43, %47 : vector<8x32xf32>
    %73 = arith.mulf %43, %48 : vector<8x32xf32>
    %74 = arith.mulf %43, %49 : vector<8x32xf32>
    %75 = arith.mulf %44, %45 : vector<8x32xf32>
    %76 = arith.mulf %44, %46 : vector<8x32xf32>
    %77 = arith.mulf %44, %47 : vector<8x32xf32>
    %78 = arith.mulf %44, %48 : vector<8x32xf32>
    %79 = arith.mulf %44, %49 : vector<8x32xf32>
    %80 = tpu.concatenate %55, %56, %57, %58, %59, %60, %61, %62, %63, %64, %65, %66, %67, %68, %69, %70 in 0 : vector<8x32xf32>, vector<8x32xf32>, vector<8x32xf32>, vector<8x32xf32>, vector<8x32xf32>, vector<8x32xf32>, vector<8x32xf32>, vector<8x32xf32>, vector<8x32xf32>, vector<8x32xf32>, vector<8x32xf32>, vector<8x32xf32>, vector<8x32xf32>, vector<8x32xf32>, vector<8x32xf32>, vector<8x32xf32> -> vector<128x32xf32>
    %81 = tpu.concatenate %71, %72, %73, %74, %75, %76, %77, %78, %79 in 0 : vector<8x32xf32>, vector<8x32xf32>, vector<8x32xf32>, vector<8x32xf32>, vector<8x32xf32>, vector<8x32xf32>, vector<8x32xf32>, vector<8x32xf32>, vector<8x32xf32> -> vector<72x32xf32>
    %82 = tpu.concatenate %80, %81 in 0 : vector<128x32xf32>, vector<72x32xf32> -> vector<200x32xf32>
    %cst_20 = arith.constant dense<0.000000e+00> : vector<200x32xf32>
    %83 = tpu.matmul %82, %15, %cst_20 {dimension_numbers = #tpu.dot_dimension_numbers<[1], [0], [0], [1], [0, 0, 1, 1], [], []>} : vector<200x32xf32>, vector<32x32xf32>, vector<200x32xf32> -> vector<200x32xf32>
    %84 = vector.extract_strided_slice %83 {offsets = [0, 0], sizes = [8, 32], strides = [1, 1]} : vector<200x32xf32> to vector<8x32xf32>
    %85 = vector.extract_strided_slice %83 {offsets = [8, 0], sizes = [8, 32], strides = [1, 1]} : vector<200x32xf32> to vector<8x32xf32>
    %86 = vector.extract_strided_slice %83 {offsets = [16, 0], sizes = [8, 32], strides = [1, 1]} : vector<200x32xf32> to vector<8x32xf32>
    %87 = vector.extract_strided_slice %83 {offsets = [24, 0], sizes = [8, 32], strides = [1, 1]} : vector<200x32xf32> to vector<8x32xf32>
    %88 = vector.extract_strided_slice %83 {offsets = [32, 0], sizes = [8, 32], strides = [1, 1]} : vector<200x32xf32> to vector<8x32xf32>
    %89 = arith.maximumf %84, %85 : vector<8x32xf32>
    %90 = arith.maximumf %89, %86 : vector<8x32xf32>
    %91 = arith.maximumf %90, %87 : vector<8x32xf32>
    %92 = arith.maximumf %91, %88 : vector<8x32xf32>
    %93 = arith.subf %84, %92 : vector<8x32xf32>
    %94 = math.exp %93 : vector<8x32xf32>
    %95 = arith.subf %85, %92 : vector<8x32xf32>
    %96 = math.exp %95 : vector<8x32xf32>
    %97 = arith.subf %86, %92 : vector<8x32xf32>
    %98 = math.exp %97 : vector<8x32xf32>
    %99 = arith.subf %87, %92 : vector<8x32xf32>
    %100 = math.exp %99 : vector<8x32xf32>
    %101 = arith.subf %88, %92 : vector<8x32xf32>
    %102 = math.exp %101 : vector<8x32xf32>
    %103 = arith.addf %94, %96 : vector<8x32xf32>
    %104 = arith.addf %103, %98 : vector<8x32xf32>
    %105 = arith.addf %104, %100 : vector<8x32xf32>
    %106 = arith.addf %105, %102 : vector<8x32xf32>
    %107 = tpu.reciprocal %106 {approx = true} : vector<8x32xf32> -> vector<8x32xf32>
    %108 = arith.mulf %94, %107 : vector<8x32xf32>
    %109 = arith.mulf %108, %50 : vector<8x32xf32>
    %110 = arith.mulf %96, %107 : vector<8x32xf32>
    %111 = arith.mulf %110, %51 : vector<8x32xf32>
    %112 = arith.addf %109, %111 : vector<8x32xf32>
    %113 = arith.mulf %98, %107 : vector<8x32xf32>
    %114 = arith.mulf %113, %52 : vector<8x32xf32>
    %115 = arith.addf %112, %114 : vector<8x32xf32>
    %116 = arith.mulf %100, %107 : vector<8x32xf32>
    %117 = arith.mulf %116, %53 : vector<8x32xf32>
    %118 = arith.addf %115, %117 : vector<8x32xf32>
    %119 = arith.mulf %102, %107 : vector<8x32xf32>
    %120 = arith.mulf %119, %54 : vector<8x32xf32>
    %121 = arith.addf %118, %120 : vector<8x32xf32>
    %122 = vector.extract_strided_slice %83 {offsets = [40, 0], sizes = [8, 32], strides = [1, 1]} : vector<200x32xf32> to vector<8x32xf32>
    %123 = vector.extract_strided_slice %83 {offsets = [48, 0], sizes = [8, 32], strides = [1, 1]} : vector<200x32xf32> to vector<8x32xf32>
    %124 = vector.extract_strided_slice %83 {offsets = [56, 0], sizes = [8, 32], strides = [1, 1]} : vector<200x32xf32> to vector<8x32xf32>
    %125 = vector.extract_strided_slice %83 {offsets = [64, 0], sizes = [8, 32], strides = [1, 1]} : vector<200x32xf32> to vector<8x32xf32>
    %126 = vector.extract_strided_slice %83 {offsets = [72, 0], sizes = [8, 32], strides = [1, 1]} : vector<200x32xf32> to vector<8x32xf32>
    %127 = arith.maximumf %122, %123 : vector<8x32xf32>
    %128 = arith.maximumf %127, %124 : vector<8x32xf32>
    %129 = arith.maximumf %128, %125 : vector<8x32xf32>
    %130 = arith.maximumf %129, %126 : vector<8x32xf32>
    %131 = arith.subf %122, %130 : vector<8x32xf32>
    %132 = math.exp %131 : vector<8x32xf32>
    %133 = arith.subf %123, %130 : vector<8x32xf32>
    %134 = math.exp %133 : vector<8x32xf32>
    %135 = arith.subf %124, %130 : vector<8x32xf32>
    %136 = math.exp %135 : vector<8x32xf32>
    %137 = arith.subf %125, %130 : vector<8x32xf32>
    %138 = math.exp %137 : vector<8x32xf32>
    %139 = arith.subf %126, %130 : vector<8x32xf32>
    %140 = math.exp %139 : vector<8x32xf32>
    %141 = arith.addf %132, %134 : vector<8x32xf32>
    %142 = arith.addf %141, %136 : vector<8x32xf32>
    %143 = arith.addf %142, %138 : vector<8x32xf32>
    %144 = arith.addf %143, %140 : vector<8x32xf32>
    %145 = tpu.reciprocal %144 {approx = true} : vector<8x32xf32> -> vector<8x32xf32>
    %146 = arith.mulf %132, %145 : vector<8x32xf32>
    %147 = arith.mulf %146, %50 : vector<8x32xf32>
    %148 = arith.mulf %134, %145 : vector<8x32xf32>
    %149 = arith.mulf %148, %51 : vector<8x32xf32>
    %150 = arith.addf %147, %149 : vector<8x32xf32>
    %151 = arith.mulf %136, %145 : vector<8x32xf32>
    %152 = arith.mulf %151, %52 : vector<8x32xf32>
    %153 = arith.addf %150, %152 : vector<8x32xf32>
    %154 = arith.mulf %138, %145 : vector<8x32xf32>
    %155 = arith.mulf %154, %53 : vector<8x32xf32>
    %156 = arith.addf %153, %155 : vector<8x32xf32>
    %157 = arith.mulf %140, %145 : vector<8x32xf32>
    %158 = arith.mulf %157, %54 : vector<8x32xf32>
    %159 = arith.addf %156, %158 : vector<8x32xf32>
    %160 = vector.extract_strided_slice %83 {offsets = [80, 0], sizes = [8, 32], strides = [1, 1]} : vector<200x32xf32> to vector<8x32xf32>
    %161 = vector.extract_strided_slice %83 {offsets = [88, 0], sizes = [8, 32], strides = [1, 1]} : vector<200x32xf32> to vector<8x32xf32>
    %162 = vector.extract_strided_slice %83 {offsets = [96, 0], sizes = [8, 32], strides = [1, 1]} : vector<200x32xf32> to vector<8x32xf32>
    %163 = vector.extract_strided_slice %83 {offsets = [104, 0], sizes = [8, 32], strides = [1, 1]} : vector<200x32xf32> to vector<8x32xf32>
    %164 = vector.extract_strided_slice %83 {offsets = [112, 0], sizes = [8, 32], strides = [1, 1]} : vector<200x32xf32> to vector<8x32xf32>
    %165 = arith.maximumf %160, %161 : vector<8x32xf32>
    %166 = arith.maximumf %165, %162 : vector<8x32xf32>
    %167 = arith.maximumf %166, %163 : vector<8x32xf32>
    %168 = arith.maximumf %167, %164 : vector<8x32xf32>
    %169 = arith.subf %160, %168 : vector<8x32xf32>
    %170 = math.exp %169 : vector<8x32xf32>
    %171 = arith.subf %161, %168 : vector<8x32xf32>
    %172 = math.exp %171 : vector<8x32xf32>
    %173 = arith.subf %162, %168 : vector<8x32xf32>
    %174 = math.exp %173 : vector<8x32xf32>
    %175 = arith.subf %163, %168 : vector<8x32xf32>
    %176 = math.exp %175 : vector<8x32xf32>
    %177 = arith.subf %164, %168 : vector<8x32xf32>
    %178 = math.exp %177 : vector<8x32xf32>
    %179 = arith.addf %170, %172 : vector<8x32xf32>
    %180 = arith.addf %179, %174 : vector<8x32xf32>
    %181 = arith.addf %180, %176 : vector<8x32xf32>
    %182 = arith.addf %181, %178 : vector<8x32xf32>
    %183 = tpu.reciprocal %182 {approx = true} : vector<8x32xf32> -> vector<8x32xf32>
    %184 = arith.mulf %170, %183 : vector<8x32xf32>
    %185 = arith.mulf %184, %50 : vector<8x32xf32>
    %186 = arith.mulf %172, %183 : vector<8x32xf32>
    %187 = arith.mulf %186, %51 : vector<8x32xf32>
    %188 = arith.addf %185, %187 : vector<8x32xf32>
    %189 = arith.mulf %174, %183 : vector<8x32xf32>
    %190 = arith.mulf %189, %52 : vector<8x32xf32>
    %191 = arith.addf %188, %190 : vector<8x32xf32>
    %192 = arith.mulf %176, %183 : vector<8x32xf32>
    %193 = arith.mulf %192, %53 : vector<8x32xf32>
    %194 = arith.addf %191, %193 : vector<8x32xf32>
    %195 = arith.mulf %178, %183 : vector<8x32xf32>
    %196 = arith.mulf %195, %54 : vector<8x32xf32>
    %197 = arith.addf %194, %196 : vector<8x32xf32>
    %198 = vector.extract_strided_slice %83 {offsets = [120, 0], sizes = [8, 32], strides = [1, 1]} : vector<200x32xf32> to vector<8x32xf32>
    %199 = vector.extract_strided_slice %83 {offsets = [128, 0], sizes = [8, 32], strides = [1, 1]} : vector<200x32xf32> to vector<8x32xf32>
    %200 = vector.extract_strided_slice %83 {offsets = [136, 0], sizes = [8, 32], strides = [1, 1]} : vector<200x32xf32> to vector<8x32xf32>
    %201 = vector.extract_strided_slice %83 {offsets = [144, 0], sizes = [8, 32], strides = [1, 1]} : vector<200x32xf32> to vector<8x32xf32>
    %202 = vector.extract_strided_slice %83 {offsets = [152, 0], sizes = [8, 32], strides = [1, 1]} : vector<200x32xf32> to vector<8x32xf32>
    %203 = arith.maximumf %198, %199 : vector<8x32xf32>
    %204 = arith.maximumf %203, %200 : vector<8x32xf32>
    %205 = arith.maximumf %204, %201 : vector<8x32xf32>
    %206 = arith.maximumf %205, %202 : vector<8x32xf32>
    %207 = arith.subf %198, %206 : vector<8x32xf32>
    %208 = math.exp %207 : vector<8x32xf32>
    %209 = arith.subf %199, %206 : vector<8x32xf32>
    %210 = math.exp %209 : vector<8x32xf32>
    %211 = arith.subf %200, %206 : vector<8x32xf32>
    %212 = math.exp %211 : vector<8x32xf32>
    %213 = arith.subf %201, %206 : vector<8x32xf32>
    %214 = math.exp %213 : vector<8x32xf32>
    %215 = arith.subf %202, %206 : vector<8x32xf32>
    %216 = math.exp %215 : vector<8x32xf32>
    %217 = arith.addf %208, %210 : vector<8x32xf32>
    %218 = arith.addf %217, %212 : vector<8x32xf32>
    %219 = arith.addf %218, %214 : vector<8x32xf32>
    %220 = arith.addf %219, %216 : vector<8x32xf32>
    %221 = tpu.reciprocal %220 {approx = true} : vector<8x32xf32> -> vector<8x32xf32>
    %222 = arith.mulf %208, %221 : vector<8x32xf32>
    %223 = arith.mulf %222, %50 : vector<8x32xf32>
    %224 = arith.mulf %210, %221 : vector<8x32xf32>
    %225 = arith.mulf %224, %51 : vector<8x32xf32>
    %226 = arith.addf %223, %225 : vector<8x32xf32>
    %227 = arith.mulf %212, %221 : vector<8x32xf32>
    %228 = arith.mulf %227, %52 : vector<8x32xf32>
    %229 = arith.addf %226, %228 : vector<8x32xf32>
    %230 = arith.mulf %214, %221 : vector<8x32xf32>
    %231 = arith.mulf %230, %53 : vector<8x32xf32>
    %232 = arith.addf %229, %231 : vector<8x32xf32>
    %233 = arith.mulf %216, %221 : vector<8x32xf32>
    %234 = arith.mulf %233, %54 : vector<8x32xf32>
    %235 = arith.addf %232, %234 : vector<8x32xf32>
    %236 = vector.extract_strided_slice %83 {offsets = [160, 0], sizes = [8, 32], strides = [1, 1]} : vector<200x32xf32> to vector<8x32xf32>
    %237 = vector.extract_strided_slice %83 {offsets = [168, 0], sizes = [8, 32], strides = [1, 1]} : vector<200x32xf32> to vector<8x32xf32>
    %238 = vector.extract_strided_slice %83 {offsets = [176, 0], sizes = [8, 32], strides = [1, 1]} : vector<200x32xf32> to vector<8x32xf32>
    %239 = vector.extract_strided_slice %83 {offsets = [184, 0], sizes = [8, 32], strides = [1, 1]} : vector<200x32xf32> to vector<8x32xf32>
    %240 = vector.extract_strided_slice %83 {offsets = [192, 0], sizes = [8, 32], strides = [1, 1]} : vector<200x32xf32> to vector<8x32xf32>
    %241 = arith.maximumf %236, %237 : vector<8x32xf32>
    %242 = arith.maximumf %241, %238 : vector<8x32xf32>
    %243 = arith.maximumf %242, %239 : vector<8x32xf32>
    %244 = arith.maximumf %243, %240 : vector<8x32xf32>
    %245 = arith.subf %236, %244 : vector<8x32xf32>
    %246 = math.exp %245 : vector<8x32xf32>
    %247 = arith.subf %237, %244 : vector<8x32xf32>
    %248 = math.exp %247 : vector<8x32xf32>
    %249 = arith.subf %238, %244 : vector<8x32xf32>
    %250 = math.exp %249 : vector<8x32xf32>
    %251 = arith.subf %239, %244 : vector<8x32xf32>
    %252 = math.exp %251 : vector<8x32xf32>
    %253 = arith.subf %240, %244 : vector<8x32xf32>
    %254 = math.exp %253 : vector<8x32xf32>
    %255 = arith.addf %246, %248 : vector<8x32xf32>
    %256 = arith.addf %255, %250 : vector<8x32xf32>
    %257 = arith.addf %256, %252 : vector<8x32xf32>
    %258 = arith.addf %257, %254 : vector<8x32xf32>
    %259 = tpu.reciprocal %258 {approx = true} : vector<8x32xf32> -> vector<8x32xf32>
    %260 = arith.mulf %246, %259 : vector<8x32xf32>
    %261 = arith.mulf %260, %50 : vector<8x32xf32>
    %262 = arith.mulf %248, %259 : vector<8x32xf32>
    %263 = arith.mulf %262, %51 : vector<8x32xf32>
    %264 = arith.addf %261, %263 : vector<8x32xf32>
    %265 = arith.mulf %250, %259 : vector<8x32xf32>
    %266 = arith.mulf %265, %52 : vector<8x32xf32>
    %267 = arith.addf %264, %266 : vector<8x32xf32>
    %268 = arith.mulf %252, %259 : vector<8x32xf32>
    %269 = arith.mulf %268, %53 : vector<8x32xf32>
    %270 = arith.addf %267, %269 : vector<8x32xf32>
    %271 = arith.mulf %254, %259 : vector<8x32xf32>
    %272 = arith.mulf %271, %54 : vector<8x32xf32>
    %273 = arith.addf %270, %272 : vector<8x32xf32>
    %274 = tpu.concatenate %121, %159, %197, %235, %273 in 0 : vector<8x32xf32>, vector<8x32xf32>, vector<8x32xf32>, vector<8x32xf32>, vector<8x32xf32> -> vector<40x32xf32>
    %cst_21 = arith.constant dense<0.000000e+00> : vector<40x32xf32>
    %275 = tpu.matmul %274, %19, %cst_21 {dimension_numbers = #tpu.dot_dimension_numbers<[1], [0], [0], [1], [0, 0, 1, 1], [], []>} : vector<40x32xf32>, vector<32x32xf32>, vector<40x32xf32> -> vector<40x32xf32>
    %276 = vector.broadcast %27 : vector<1x32xf32> to vector<40x32xf32>
    %277 = arith.addf %275, %276 : vector<40x32xf32>
    %278 = arith.addf %14, %277 : vector<40x32xf32>
    %cst_22 = arith.constant dense<0.000000e+00> : vector<40xf32>
    %279 = vector.multi_reduction <add>, %278, %cst_22 [1] : vector<40x32xf32> to vector<40xf32>
    %280 = vector.shape_cast %279 : vector<40xf32> to vector<40x1xf32>
    %cst_23 = arith.constant 3.200000e+01 : f32
    %281 = vector.broadcast %cst_23 : f32 to vector<40x1xf32>
    %282 = arith.divf %280, %281 : vector<40x1xf32>
    %283 = vector.broadcast %282 : vector<40x1xf32> to vector<40x32xf32>
    %284 = arith.subf %278, %283 : vector<40x32xf32>
    %285 = arith.mulf %284, %284 : vector<40x32xf32>
    %cst_24 = arith.constant dense<0.000000e+00> : vector<40xf32>
    %286 = vector.multi_reduction <add>, %285, %cst_24 [1] : vector<40x32xf32> to vector<40xf32>
    %287 = vector.shape_cast %286 : vector<40xf32> to vector<40x1xf32>
    %cst_25 = arith.constant 3.200000e+01 : f32
    %288 = vector.broadcast %cst_25 : f32 to vector<40x1xf32>
    %289 = arith.divf %287, %288 : vector<40x1xf32>
    %290 = vector.broadcast %282 : vector<40x1xf32> to vector<40x32xf32>
    %291 = arith.subf %278, %290 : vector<40x32xf32>
    %cst_26 = arith.constant 9.99999974E-6 : f32
    %292 = vector.broadcast %cst_26 : f32 to vector<40x1xf32>
    %293 = arith.addf %289, %292 : vector<40x1xf32>
    %294 = math.rsqrt %293 : vector<40x1xf32>
    %295 = vector.broadcast %294 : vector<40x1xf32> to vector<40x32xf32>
    %296 = arith.mulf %291, %295 : vector<40x32xf32>
    %297 = vector.broadcast %30 : vector<1x32xf32> to vector<40x32xf32>
    %298 = arith.mulf %296, %297 : vector<40x32xf32>
    %299 = vector.broadcast %31 : vector<1x32xf32> to vector<40x32xf32>
    %300 = arith.addf %298, %299 : vector<40x32xf32>
    %cst_27 = arith.constant dense<0.000000e+00> : vector<40x64xf32>
    %301 = tpu.matmul %300, %21, %cst_27 {dimension_numbers = #tpu.dot_dimension_numbers<[1], [0], [0], [1], [0, 0, 1, 1], [], []>} : vector<40x32xf32>, vector<32x64xf32>, vector<40x64xf32> -> vector<40x64xf32>
    %302 = vector.broadcast %28 : vector<1x64xf32> to vector<40x64xf32>
    %303 = arith.addf %301, %302 : vector<40x64xf32>
    %cst_28 = arith.constant 0.000000e+00 : f32
    %304 = vector.broadcast %cst_28 : f32 to vector<40x64xf32>
    %305 = arith.maximumf %303, %304 : vector<40x64xf32>
    %cst_29 = arith.constant dense<0.000000e+00> : vector<40x32xf32>
    %306 = tpu.matmul %305, %23, %cst_29 {dimension_numbers = #tpu.dot_dimension_numbers<[1], [0], [0], [1], [0, 0, 1, 1], [], []>} : vector<40x64xf32>, vector<64x32xf32>, vector<40x32xf32> -> vector<40x32xf32>
    %307 = vector.broadcast %29 : vector<1x32xf32> to vector<40x32xf32>
    %308 = arith.addf %306, %307 : vector<40x32xf32>
    %309 = arith.addf %300, %308 : vector<40x32xf32>
    %cst_30 = arith.constant dense<0.000000e+00> : vector<40xf32>
    %310 = vector.multi_reduction <add>, %309, %cst_30 [1] : vector<40x32xf32> to vector<40xf32>
    %311 = vector.shape_cast %310 : vector<40xf32> to vector<40x1xf32>
    %cst_31 = arith.constant 3.200000e+01 : f32
    %312 = vector.broadcast %cst_31 : f32 to vector<40x1xf32>
    %313 = arith.divf %311, %312 : vector<40x1xf32>
    %314 = vector.broadcast %313 : vector<40x1xf32> to vector<40x32xf32>
    %315 = arith.subf %309, %314 : vector<40x32xf32>
    %316 = arith.mulf %315, %315 : vector<40x32xf32>
    %cst_32 = arith.constant dense<0.000000e+00> : vector<40xf32>
    %317 = vector.multi_reduction <add>, %316, %cst_32 [1] : vector<40x32xf32> to vector<40xf32>
    %318 = vector.shape_cast %317 : vector<40xf32> to vector<40x1xf32>
    %cst_33 = arith.constant 3.200000e+01 : f32
    %319 = vector.broadcast %cst_33 : f32 to vector<40x1xf32>
    %320 = arith.divf %318, %319 : vector<40x1xf32>
    %321 = vector.broadcast %313 : vector<40x1xf32> to vector<40x32xf32>
    %322 = arith.subf %309, %321 : vector<40x32xf32>
    %cst_34 = arith.constant 9.99999974E-6 : f32
    %323 = vector.broadcast %cst_34 : f32 to vector<40x1xf32>
    %324 = arith.addf %320, %323 : vector<40x1xf32>
    %325 = math.rsqrt %324 : vector<40x1xf32>
    %326 = vector.broadcast %325 : vector<40x1xf32> to vector<40x32xf32>
    %327 = arith.mulf %322, %326 : vector<40x32xf32>
    %328 = vector.broadcast %32 : vector<1x32xf32> to vector<40x32xf32>
    %329 = arith.mulf %327, %328 : vector<40x32xf32>
    %330 = vector.broadcast %33 : vector<1x32xf32> to vector<40x32xf32>
    %331 = arith.addf %329, %330 : vector<40x32xf32>
    %c1 = arith.constant 1 : index
    %c0_35 = arith.constant 0 : index
    %c0_36 = arith.constant 0 : index
    %332 = vector.load %arg4[%c1, %c0_35, %c0_36] : memref<2x32x96xf32, #tpu.memory_space<vmem>>, vector<1x32x96xf32>
    %333 = vector.shape_cast %332 : vector<1x32x96xf32> to vector<32x96xf32>
    %c1_37 = arith.constant 1 : index
    %c0_38 = arith.constant 0 : index
    %c0_39 = arith.constant 0 : index
    %334 = vector.load %arg5[%c1_37, %c0_38, %c0_39] : memref<2x32x32xf32, #tpu.memory_space<vmem>>, vector<1x32x32xf32>
    %335 = vector.shape_cast %334 : vector<1x32x32xf32> to vector<32x32xf32>
    %c1_40 = arith.constant 1 : index
    %c0_41 = arith.constant 0 : index
    %c0_42 = arith.constant 0 : index
    %336 = vector.load %arg6[%c1_40, %c0_41, %c0_42] : memref<2x32x64xf32, #tpu.memory_space<vmem>>, vector<1x32x64xf32>
    %337 = vector.shape_cast %336 : vector<1x32x64xf32> to vector<32x64xf32>
    %c1_43 = arith.constant 1 : index
    %c0_44 = arith.constant 0 : index
    %c0_45 = arith.constant 0 : index
    %338 = vector.load %arg7[%c1_43, %c0_44, %c0_45] : memref<2x64x32xf32, #tpu.memory_space<vmem>>, vector<1x64x32xf32>
    %339 = vector.shape_cast %338 : vector<1x64x32xf32> to vector<64x32xf32>
    %c1_46 = arith.constant 1 : index
    %c0_47 = arith.constant 0 : index
    %c0_48 = arith.constant 0 : index
    %340 = vector.load %arg8[%c1_46, %c0_47, %c0_48] : memref<2x8x96xf32, #tpu.memory_space<vmem>>, vector<1x8x96xf32>
    %341 = vector.shape_cast %340 : vector<1x8x96xf32> to vector<8x96xf32>
    %342 = vector.extract_strided_slice %341 {offsets = [0, 0], sizes = [1, 96], strides = [1, 1]} : vector<8x96xf32> to vector<1x96xf32>
    %343 = vector.extract_strided_slice %341 {offsets = [1, 0], sizes = [1, 32], strides = [1, 1]} : vector<8x96xf32> to vector<1x32xf32>
    %344 = vector.extract_strided_slice %341 {offsets = [2, 0], sizes = [1, 64], strides = [1, 1]} : vector<8x96xf32> to vector<1x64xf32>
    %345 = vector.extract_strided_slice %341 {offsets = [3, 0], sizes = [1, 32], strides = [1, 1]} : vector<8x96xf32> to vector<1x32xf32>
    %346 = vector.extract_strided_slice %341 {offsets = [4, 0], sizes = [1, 32], strides = [1, 1]} : vector<8x96xf32> to vector<1x32xf32>
    %347 = vector.extract_strided_slice %341 {offsets = [5, 0], sizes = [1, 32], strides = [1, 1]} : vector<8x96xf32> to vector<1x32xf32>
    %348 = vector.extract_strided_slice %341 {offsets = [6, 0], sizes = [1, 32], strides = [1, 1]} : vector<8x96xf32> to vector<1x32xf32>
    %349 = vector.extract_strided_slice %341 {offsets = [7, 0], sizes = [1, 32], strides = [1, 1]} : vector<8x96xf32> to vector<1x32xf32>
    %cst_49 = arith.constant dense<0.000000e+00> : vector<40x96xf32>
    %350 = tpu.matmul %331, %333, %cst_49 {dimension_numbers = #tpu.dot_dimension_numbers<[1], [0], [0], [1], [0, 0, 1, 1], [], []>} : vector<40x32xf32>, vector<32x96xf32>, vector<40x96xf32> -> vector<40x96xf32>
    %351 = vector.broadcast %342 : vector<1x96xf32> to vector<40x96xf32>
    %352 = arith.addf %350, %351 : vector<40x96xf32>
    %353 = vector.extract_strided_slice %352 {offsets = [0, 0], sizes = [40, 32], strides = [1, 1]} : vector<40x96xf32> to vector<40x32xf32>
    %354 = vector.extract_strided_slice %352 {offsets = [0, 32], sizes = [40, 32], strides = [1, 1]} : vector<40x96xf32> to vector<40x32xf32>
    %355 = vector.extract_strided_slice %352 {offsets = [0, 64], sizes = [40, 32], strides = [1, 1]} : vector<40x96xf32> to vector<40x32xf32>
    %356 = vector.extract_strided_slice %353 {offsets = [0, 0], sizes = [8, 32], strides = [1, 1]} : vector<40x32xf32> to vector<8x32xf32>
    %357 = vector.extract_strided_slice %353 {offsets = [8, 0], sizes = [8, 32], strides = [1, 1]} : vector<40x32xf32> to vector<8x32xf32>
    %358 = vector.extract_strided_slice %353 {offsets = [16, 0], sizes = [8, 32], strides = [1, 1]} : vector<40x32xf32> to vector<8x32xf32>
    %359 = vector.extract_strided_slice %353 {offsets = [24, 0], sizes = [8, 32], strides = [1, 1]} : vector<40x32xf32> to vector<8x32xf32>
    %360 = vector.extract_strided_slice %353 {offsets = [32, 0], sizes = [8, 32], strides = [1, 1]} : vector<40x32xf32> to vector<8x32xf32>
    %361 = vector.extract_strided_slice %354 {offsets = [0, 0], sizes = [8, 32], strides = [1, 1]} : vector<40x32xf32> to vector<8x32xf32>
    %362 = vector.extract_strided_slice %354 {offsets = [8, 0], sizes = [8, 32], strides = [1, 1]} : vector<40x32xf32> to vector<8x32xf32>
    %363 = vector.extract_strided_slice %354 {offsets = [16, 0], sizes = [8, 32], strides = [1, 1]} : vector<40x32xf32> to vector<8x32xf32>
    %364 = vector.extract_strided_slice %354 {offsets = [24, 0], sizes = [8, 32], strides = [1, 1]} : vector<40x32xf32> to vector<8x32xf32>
    %365 = vector.extract_strided_slice %354 {offsets = [32, 0], sizes = [8, 32], strides = [1, 1]} : vector<40x32xf32> to vector<8x32xf32>
    %366 = vector.extract_strided_slice %355 {offsets = [0, 0], sizes = [8, 32], strides = [1, 1]} : vector<40x32xf32> to vector<8x32xf32>
    %367 = vector.extract_strided_slice %355 {offsets = [8, 0], sizes = [8, 32], strides = [1, 1]} : vector<40x32xf32> to vector<8x32xf32>
    %368 = vector.extract_strided_slice %355 {offsets = [16, 0], sizes = [8, 32], strides = [1, 1]} : vector<40x32xf32> to vector<8x32xf32>
    %369 = vector.extract_strided_slice %355 {offsets = [24, 0], sizes = [8, 32], strides = [1, 1]} : vector<40x32xf32> to vector<8x32xf32>
    %370 = vector.extract_strided_slice %355 {offsets = [32, 0], sizes = [8, 32], strides = [1, 1]} : vector<40x32xf32> to vector<8x32xf32>
    %371 = arith.mulf %356, %361 : vector<8x32xf32>
    %372 = arith.mulf %356, %362 : vector<8x32xf32>
    %373 = arith.mulf %356, %363 : vector<8x32xf32>
    %374 = arith.mulf %356, %364 : vector<8x32xf32>
    %375 = arith.mulf %356, %365 : vector<8x32xf32>
    %376 = arith.mulf %357, %361 : vector<8x32xf32>
    %377 = arith.mulf %357, %362 : vector<8x32xf32>
    %378 = arith.mulf %357, %363 : vector<8x32xf32>
    %379 = arith.mulf %357, %364 : vector<8x32xf32>
    %380 = arith.mulf %357, %365 : vector<8x32xf32>
    %381 = arith.mulf %358, %361 : vector<8x32xf32>
    %382 = arith.mulf %358, %362 : vector<8x32xf32>
    %383 = arith.mulf %358, %363 : vector<8x32xf32>
    %384 = arith.mulf %358, %364 : vector<8x32xf32>
    %385 = arith.mulf %358, %365 : vector<8x32xf32>
    %386 = arith.mulf %359, %361 : vector<8x32xf32>
    %387 = arith.mulf %359, %362 : vector<8x32xf32>
    %388 = arith.mulf %359, %363 : vector<8x32xf32>
    %389 = arith.mulf %359, %364 : vector<8x32xf32>
    %390 = arith.mulf %359, %365 : vector<8x32xf32>
    %391 = arith.mulf %360, %361 : vector<8x32xf32>
    %392 = arith.mulf %360, %362 : vector<8x32xf32>
    %393 = arith.mulf %360, %363 : vector<8x32xf32>
    %394 = arith.mulf %360, %364 : vector<8x32xf32>
    %395 = arith.mulf %360, %365 : vector<8x32xf32>
    %396 = tpu.concatenate %371, %372, %373, %374, %375, %376, %377, %378, %379, %380, %381, %382, %383, %384, %385, %386 in 0 : vector<8x32xf32>, vector<8x32xf32>, vector<8x32xf32>, vector<8x32xf32>, vector<8x32xf32>, vector<8x32xf32>, vector<8x32xf32>, vector<8x32xf32>, vector<8x32xf32>, vector<8x32xf32>, vector<8x32xf32>, vector<8x32xf32>, vector<8x32xf32>, vector<8x32xf32>, vector<8x32xf32>, vector<8x32xf32> -> vector<128x32xf32>
    %397 = tpu.concatenate %387, %388, %389, %390, %391, %392, %393, %394, %395 in 0 : vector<8x32xf32>, vector<8x32xf32>, vector<8x32xf32>, vector<8x32xf32>, vector<8x32xf32>, vector<8x32xf32>, vector<8x32xf32>, vector<8x32xf32>, vector<8x32xf32> -> vector<72x32xf32>
    %398 = tpu.concatenate %396, %397 in 0 : vector<128x32xf32>, vector<72x32xf32> -> vector<200x32xf32>
    %cst_50 = arith.constant dense<0.000000e+00> : vector<200x32xf32>
    %399 = tpu.matmul %398, %15, %cst_50 {dimension_numbers = #tpu.dot_dimension_numbers<[1], [0], [0], [1], [0, 0, 1, 1], [], []>} : vector<200x32xf32>, vector<32x32xf32>, vector<200x32xf32> -> vector<200x32xf32>
    %400 = vector.extract_strided_slice %399 {offsets = [0, 0], sizes = [8, 32], strides = [1, 1]} : vector<200x32xf32> to vector<8x32xf32>
    %401 = vector.extract_strided_slice %399 {offsets = [8, 0], sizes = [8, 32], strides = [1, 1]} : vector<200x32xf32> to vector<8x32xf32>
    %402 = vector.extract_strided_slice %399 {offsets = [16, 0], sizes = [8, 32], strides = [1, 1]} : vector<200x32xf32> to vector<8x32xf32>
    %403 = vector.extract_strided_slice %399 {offsets = [24, 0], sizes = [8, 32], strides = [1, 1]} : vector<200x32xf32> to vector<8x32xf32>
    %404 = vector.extract_strided_slice %399 {offsets = [32, 0], sizes = [8, 32], strides = [1, 1]} : vector<200x32xf32> to vector<8x32xf32>
    %405 = arith.maximumf %400, %401 : vector<8x32xf32>
    %406 = arith.maximumf %405, %402 : vector<8x32xf32>
    %407 = arith.maximumf %406, %403 : vector<8x32xf32>
    %408 = arith.maximumf %407, %404 : vector<8x32xf32>
    %409 = arith.subf %400, %408 : vector<8x32xf32>
    %410 = math.exp %409 : vector<8x32xf32>
    %411 = arith.subf %401, %408 : vector<8x32xf32>
    %412 = math.exp %411 : vector<8x32xf32>
    %413 = arith.subf %402, %408 : vector<8x32xf32>
    %414 = math.exp %413 : vector<8x32xf32>
    %415 = arith.subf %403, %408 : vector<8x32xf32>
    %416 = math.exp %415 : vector<8x32xf32>
    %417 = arith.subf %404, %408 : vector<8x32xf32>
    %418 = math.exp %417 : vector<8x32xf32>
    %419 = arith.addf %410, %412 : vector<8x32xf32>
    %420 = arith.addf %419, %414 : vector<8x32xf32>
    %421 = arith.addf %420, %416 : vector<8x32xf32>
    %422 = arith.addf %421, %418 : vector<8x32xf32>
    %423 = tpu.reciprocal %422 {approx = true} : vector<8x32xf32> -> vector<8x32xf32>
    %424 = arith.mulf %410, %423 : vector<8x32xf32>
    %425 = arith.mulf %424, %366 : vector<8x32xf32>
    %426 = arith.mulf %412, %423 : vector<8x32xf32>
    %427 = arith.mulf %426, %367 : vector<8x32xf32>
    %428 = arith.addf %425, %427 : vector<8x32xf32>
    %429 = arith.mulf %414, %423 : vector<8x32xf32>
    %430 = arith.mulf %429, %368 : vector<8x32xf32>
    %431 = arith.addf %428, %430 : vector<8x32xf32>
    %432 = arith.mulf %416, %423 : vector<8x32xf32>
    %433 = arith.mulf %432, %369 : vector<8x32xf32>
    %434 = arith.addf %431, %433 : vector<8x32xf32>
    %435 = arith.mulf %418, %423 : vector<8x32xf32>
    %436 = arith.mulf %435, %370 : vector<8x32xf32>
    %437 = arith.addf %434, %436 : vector<8x32xf32>
    %438 = vector.extract_strided_slice %399 {offsets = [40, 0], sizes = [8, 32], strides = [1, 1]} : vector<200x32xf32> to vector<8x32xf32>
    %439 = vector.extract_strided_slice %399 {offsets = [48, 0], sizes = [8, 32], strides = [1, 1]} : vector<200x32xf32> to vector<8x32xf32>
    %440 = vector.extract_strided_slice %399 {offsets = [56, 0], sizes = [8, 32], strides = [1, 1]} : vector<200x32xf32> to vector<8x32xf32>
    %441 = vector.extract_strided_slice %399 {offsets = [64, 0], sizes = [8, 32], strides = [1, 1]} : vector<200x32xf32> to vector<8x32xf32>
    %442 = vector.extract_strided_slice %399 {offsets = [72, 0], sizes = [8, 32], strides = [1, 1]} : vector<200x32xf32> to vector<8x32xf32>
    %443 = arith.maximumf %438, %439 : vector<8x32xf32>
    %444 = arith.maximumf %443, %440 : vector<8x32xf32>
    %445 = arith.maximumf %444, %441 : vector<8x32xf32>
    %446 = arith.maximumf %445, %442 : vector<8x32xf32>
    %447 = arith.subf %438, %446 : vector<8x32xf32>
    %448 = math.exp %447 : vector<8x32xf32>
    %449 = arith.subf %439, %446 : vector<8x32xf32>
    %450 = math.exp %449 : vector<8x32xf32>
    %451 = arith.subf %440, %446 : vector<8x32xf32>
    %452 = math.exp %451 : vector<8x32xf32>
    %453 = arith.subf %441, %446 : vector<8x32xf32>
    %454 = math.exp %453 : vector<8x32xf32>
    %455 = arith.subf %442, %446 : vector<8x32xf32>
    %456 = math.exp %455 : vector<8x32xf32>
    %457 = arith.addf %448, %450 : vector<8x32xf32>
    %458 = arith.addf %457, %452 : vector<8x32xf32>
    %459 = arith.addf %458, %454 : vector<8x32xf32>
    %460 = arith.addf %459, %456 : vector<8x32xf32>
    %461 = tpu.reciprocal %460 {approx = true} : vector<8x32xf32> -> vector<8x32xf32>
    %462 = arith.mulf %448, %461 : vector<8x32xf32>
    %463 = arith.mulf %462, %366 : vector<8x32xf32>
    %464 = arith.mulf %450, %461 : vector<8x32xf32>
    %465 = arith.mulf %464, %367 : vector<8x32xf32>
    %466 = arith.addf %463, %465 : vector<8x32xf32>
    %467 = arith.mulf %452, %461 : vector<8x32xf32>
    %468 = arith.mulf %467, %368 : vector<8x32xf32>
    %469 = arith.addf %466, %468 : vector<8x32xf32>
    %470 = arith.mulf %454, %461 : vector<8x32xf32>
    %471 = arith.mulf %470, %369 : vector<8x32xf32>
    %472 = arith.addf %469, %471 : vector<8x32xf32>
    %473 = arith.mulf %456, %461 : vector<8x32xf32>
    %474 = arith.mulf %473, %370 : vector<8x32xf32>
    %475 = arith.addf %472, %474 : vector<8x32xf32>
    %476 = vector.extract_strided_slice %399 {offsets = [80, 0], sizes = [8, 32], strides = [1, 1]} : vector<200x32xf32> to vector<8x32xf32>
    %477 = vector.extract_strided_slice %399 {offsets = [88, 0], sizes = [8, 32], strides = [1, 1]} : vector<200x32xf32> to vector<8x32xf32>
    %478 = vector.extract_strided_slice %399 {offsets = [96, 0], sizes = [8, 32], strides = [1, 1]} : vector<200x32xf32> to vector<8x32xf32>
    %479 = vector.extract_strided_slice %399 {offsets = [104, 0], sizes = [8, 32], strides = [1, 1]} : vector<200x32xf32> to vector<8x32xf32>
    %480 = vector.extract_strided_slice %399 {offsets = [112, 0], sizes = [8, 32], strides = [1, 1]} : vector<200x32xf32> to vector<8x32xf32>
    %481 = arith.maximumf %476, %477 : vector<8x32xf32>
    %482 = arith.maximumf %481, %478 : vector<8x32xf32>
    %483 = arith.maximumf %482, %479 : vector<8x32xf32>
    %484 = arith.maximumf %483, %480 : vector<8x32xf32>
    %485 = arith.subf %476, %484 : vector<8x32xf32>
    %486 = math.exp %485 : vector<8x32xf32>
    %487 = arith.subf %477, %484 : vector<8x32xf32>
    %488 = math.exp %487 : vector<8x32xf32>
    %489 = arith.subf %478, %484 : vector<8x32xf32>
    %490 = math.exp %489 : vector<8x32xf32>
    %491 = arith.subf %479, %484 : vector<8x32xf32>
    %492 = math.exp %491 : vector<8x32xf32>
    %493 = arith.subf %480, %484 : vector<8x32xf32>
    %494 = math.exp %493 : vector<8x32xf32>
    %495 = arith.addf %486, %488 : vector<8x32xf32>
    %496 = arith.addf %495, %490 : vector<8x32xf32>
    %497 = arith.addf %496, %492 : vector<8x32xf32>
    %498 = arith.addf %497, %494 : vector<8x32xf32>
    %499 = tpu.reciprocal %498 {approx = true} : vector<8x32xf32> -> vector<8x32xf32>
    %500 = arith.mulf %486, %499 : vector<8x32xf32>
    %501 = arith.mulf %500, %366 : vector<8x32xf32>
    %502 = arith.mulf %488, %499 : vector<8x32xf32>
    %503 = arith.mulf %502, %367 : vector<8x32xf32>
    %504 = arith.addf %501, %503 : vector<8x32xf32>
    %505 = arith.mulf %490, %499 : vector<8x32xf32>
    %506 = arith.mulf %505, %368 : vector<8x32xf32>
    %507 = arith.addf %504, %506 : vector<8x32xf32>
    %508 = arith.mulf %492, %499 : vector<8x32xf32>
    %509 = arith.mulf %508, %369 : vector<8x32xf32>
    %510 = arith.addf %507, %509 : vector<8x32xf32>
    %511 = arith.mulf %494, %499 : vector<8x32xf32>
    %512 = arith.mulf %511, %370 : vector<8x32xf32>
    %513 = arith.addf %510, %512 : vector<8x32xf32>
    %514 = vector.extract_strided_slice %399 {offsets = [120, 0], sizes = [8, 32], strides = [1, 1]} : vector<200x32xf32> to vector<8x32xf32>
    %515 = vector.extract_strided_slice %399 {offsets = [128, 0], sizes = [8, 32], strides = [1, 1]} : vector<200x32xf32> to vector<8x32xf32>
    %516 = vector.extract_strided_slice %399 {offsets = [136, 0], sizes = [8, 32], strides = [1, 1]} : vector<200x32xf32> to vector<8x32xf32>
    %517 = vector.extract_strided_slice %399 {offsets = [144, 0], sizes = [8, 32], strides = [1, 1]} : vector<200x32xf32> to vector<8x32xf32>
    %518 = vector.extract_strided_slice %399 {offsets = [152, 0], sizes = [8, 32], strides = [1, 1]} : vector<200x32xf32> to vector<8x32xf32>
    %519 = arith.maximumf %514, %515 : vector<8x32xf32>
    %520 = arith.maximumf %519, %516 : vector<8x32xf32>
    %521 = arith.maximumf %520, %517 : vector<8x32xf32>
    %522 = arith.maximumf %521, %518 : vector<8x32xf32>
    %523 = arith.subf %514, %522 : vector<8x32xf32>
    %524 = math.exp %523 : vector<8x32xf32>
    %525 = arith.subf %515, %522 : vector<8x32xf32>
    %526 = math.exp %525 : vector<8x32xf32>
    %527 = arith.subf %516, %522 : vector<8x32xf32>
    %528 = math.exp %527 : vector<8x32xf32>
    %529 = arith.subf %517, %522 : vector<8x32xf32>
    %530 = math.exp %529 : vector<8x32xf32>
    %531 = arith.subf %518, %522 : vector<8x32xf32>
    %532 = math.exp %531 : vector<8x32xf32>
    %533 = arith.addf %524, %526 : vector<8x32xf32>
    %534 = arith.addf %533, %528 : vector<8x32xf32>
    %535 = arith.addf %534, %530 : vector<8x32xf32>
    %536 = arith.addf %535, %532 : vector<8x32xf32>
    %537 = tpu.reciprocal %536 {approx = true} : vector<8x32xf32> -> vector<8x32xf32>
    %538 = arith.mulf %524, %537 : vector<8x32xf32>
    %539 = arith.mulf %538, %366 : vector<8x32xf32>
    %540 = arith.mulf %526, %537 : vector<8x32xf32>
    %541 = arith.mulf %540, %367 : vector<8x32xf32>
    %542 = arith.addf %539, %541 : vector<8x32xf32>
    %543 = arith.mulf %528, %537 : vector<8x32xf32>
    %544 = arith.mulf %543, %368 : vector<8x32xf32>
    %545 = arith.addf %542, %544 : vector<8x32xf32>
    %546 = arith.mulf %530, %537 : vector<8x32xf32>
    %547 = arith.mulf %546, %369 : vector<8x32xf32>
    %548 = arith.addf %545, %547 : vector<8x32xf32>
    %549 = arith.mulf %532, %537 : vector<8x32xf32>
    %550 = arith.mulf %549, %370 : vector<8x32xf32>
    %551 = arith.addf %548, %550 : vector<8x32xf32>
    %552 = vector.extract_strided_slice %399 {offsets = [160, 0], sizes = [8, 32], strides = [1, 1]} : vector<200x32xf32> to vector<8x32xf32>
    %553 = vector.extract_strided_slice %399 {offsets = [168, 0], sizes = [8, 32], strides = [1, 1]} : vector<200x32xf32> to vector<8x32xf32>
    %554 = vector.extract_strided_slice %399 {offsets = [176, 0], sizes = [8, 32], strides = [1, 1]} : vector<200x32xf32> to vector<8x32xf32>
    %555 = vector.extract_strided_slice %399 {offsets = [184, 0], sizes = [8, 32], strides = [1, 1]} : vector<200x32xf32> to vector<8x32xf32>
    %556 = vector.extract_strided_slice %399 {offsets = [192, 0], sizes = [8, 32], strides = [1, 1]} : vector<200x32xf32> to vector<8x32xf32>
    %557 = arith.maximumf %552, %553 : vector<8x32xf32>
    %558 = arith.maximumf %557, %554 : vector<8x32xf32>
    %559 = arith.maximumf %558, %555 : vector<8x32xf32>
    %560 = arith.maximumf %559, %556 : vector<8x32xf32>
    %561 = arith.subf %552, %560 : vector<8x32xf32>
    %562 = math.exp %561 : vector<8x32xf32>
    %563 = arith.subf %553, %560 : vector<8x32xf32>
    %564 = math.exp %563 : vector<8x32xf32>
    %565 = arith.subf %554, %560 : vector<8x32xf32>
    %566 = math.exp %565 : vector<8x32xf32>
    %567 = arith.subf %555, %560 : vector<8x32xf32>
    %568 = math.exp %567 : vector<8x32xf32>
    %569 = arith.subf %556, %560 : vector<8x32xf32>
    %570 = math.exp %569 : vector<8x32xf32>
    %571 = arith.addf %562, %564 : vector<8x32xf32>
    %572 = arith.addf %571, %566 : vector<8x32xf32>
    %573 = arith.addf %572, %568 : vector<8x32xf32>
    %574 = arith.addf %573, %570 : vector<8x32xf32>
    %575 = tpu.reciprocal %574 {approx = true} : vector<8x32xf32> -> vector<8x32xf32>
    %576 = arith.mulf %562, %575 : vector<8x32xf32>
    %577 = arith.mulf %576, %366 : vector<8x32xf32>
    %578 = arith.mulf %564, %575 : vector<8x32xf32>
    %579 = arith.mulf %578, %367 : vector<8x32xf32>
    %580 = arith.addf %577, %579 : vector<8x32xf32>
    %581 = arith.mulf %566, %575 : vector<8x32xf32>
    %582 = arith.mulf %581, %368 : vector<8x32xf32>
    %583 = arith.addf %580, %582 : vector<8x32xf32>
    %584 = arith.mulf %568, %575 : vector<8x32xf32>
    %585 = arith.mulf %584, %369 : vector<8x32xf32>
    %586 = arith.addf %583, %585 : vector<8x32xf32>
    %587 = arith.mulf %570, %575 : vector<8x32xf32>
    %588 = arith.mulf %587, %370 : vector<8x32xf32>
    %589 = arith.addf %586, %588 : vector<8x32xf32>
    %590 = tpu.concatenate %437, %475, %513, %551, %589 in 0 : vector<8x32xf32>, vector<8x32xf32>, vector<8x32xf32>, vector<8x32xf32>, vector<8x32xf32> -> vector<40x32xf32>
    %cst_51 = arith.constant dense<0.000000e+00> : vector<40x32xf32>
    %591 = tpu.matmul %590, %335, %cst_51 {dimension_numbers = #tpu.dot_dimension_numbers<[1], [0], [0], [1], [0, 0, 1, 1], [], []>} : vector<40x32xf32>, vector<32x32xf32>, vector<40x32xf32> -> vector<40x32xf32>
    %592 = vector.broadcast %343 : vector<1x32xf32> to vector<40x32xf32>
    %593 = arith.addf %591, %592 : vector<40x32xf32>
    %594 = arith.addf %331, %593 : vector<40x32xf32>
    %cst_52 = arith.constant dense<0.000000e+00> : vector<40xf32>
    %595 = vector.multi_reduction <add>, %594, %cst_52 [1] : vector<40x32xf32> to vector<40xf32>
    %596 = vector.shape_cast %595 : vector<40xf32> to vector<40x1xf32>
    %cst_53 = arith.constant 3.200000e+01 : f32
    %597 = vector.broadcast %cst_53 : f32 to vector<40x1xf32>
    %598 = arith.divf %596, %597 : vector<40x1xf32>
    %599 = vector.broadcast %598 : vector<40x1xf32> to vector<40x32xf32>
    %600 = arith.subf %594, %599 : vector<40x32xf32>
    %601 = arith.mulf %600, %600 : vector<40x32xf32>
    %cst_54 = arith.constant dense<0.000000e+00> : vector<40xf32>
    %602 = vector.multi_reduction <add>, %601, %cst_54 [1] : vector<40x32xf32> to vector<40xf32>
    %603 = vector.shape_cast %602 : vector<40xf32> to vector<40x1xf32>
    %cst_55 = arith.constant 3.200000e+01 : f32
    %604 = vector.broadcast %cst_55 : f32 to vector<40x1xf32>
    %605 = arith.divf %603, %604 : vector<40x1xf32>
    %606 = vector.broadcast %598 : vector<40x1xf32> to vector<40x32xf32>
    %607 = arith.subf %594, %606 : vector<40x32xf32>
    %cst_56 = arith.constant 9.99999974E-6 : f32
    %608 = vector.broadcast %cst_56 : f32 to vector<40x1xf32>
    %609 = arith.addf %605, %608 : vector<40x1xf32>
    %610 = math.rsqrt %609 : vector<40x1xf32>
    %611 = vector.broadcast %610 : vector<40x1xf32> to vector<40x32xf32>
    %612 = arith.mulf %607, %611 : vector<40x32xf32>
    %613 = vector.broadcast %346 : vector<1x32xf32> to vector<40x32xf32>
    %614 = arith.mulf %612, %613 : vector<40x32xf32>
    %615 = vector.broadcast %347 : vector<1x32xf32> to vector<40x32xf32>
    %616 = arith.addf %614, %615 : vector<40x32xf32>
    %cst_57 = arith.constant dense<0.000000e+00> : vector<40x64xf32>
    %617 = tpu.matmul %616, %337, %cst_57 {dimension_numbers = #tpu.dot_dimension_numbers<[1], [0], [0], [1], [0, 0, 1, 1], [], []>} : vector<40x32xf32>, vector<32x64xf32>, vector<40x64xf32> -> vector<40x64xf32>
    %618 = vector.broadcast %344 : vector<1x64xf32> to vector<40x64xf32>
    %619 = arith.addf %617, %618 : vector<40x64xf32>
    %cst_58 = arith.constant 0.000000e+00 : f32
    %620 = vector.broadcast %cst_58 : f32 to vector<40x64xf32>
    %621 = arith.maximumf %619, %620 : vector<40x64xf32>
    %cst_59 = arith.constant dense<0.000000e+00> : vector<40x32xf32>
    %622 = tpu.matmul %621, %339, %cst_59 {dimension_numbers = #tpu.dot_dimension_numbers<[1], [0], [0], [1], [0, 0, 1, 1], [], []>} : vector<40x64xf32>, vector<64x32xf32>, vector<40x32xf32> -> vector<40x32xf32>
    %623 = vector.broadcast %345 : vector<1x32xf32> to vector<40x32xf32>
    %624 = arith.addf %622, %623 : vector<40x32xf32>
    %625 = arith.addf %616, %624 : vector<40x32xf32>
    %cst_60 = arith.constant dense<0.000000e+00> : vector<40xf32>
    %626 = vector.multi_reduction <add>, %625, %cst_60 [1] : vector<40x32xf32> to vector<40xf32>
    %627 = vector.shape_cast %626 : vector<40xf32> to vector<40x1xf32>
    %cst_61 = arith.constant 3.200000e+01 : f32
    %628 = vector.broadcast %cst_61 : f32 to vector<40x1xf32>
    %629 = arith.divf %627, %628 : vector<40x1xf32>
    %630 = vector.broadcast %629 : vector<40x1xf32> to vector<40x32xf32>
    %631 = arith.subf %625, %630 : vector<40x32xf32>
    %632 = arith.mulf %631, %631 : vector<40x32xf32>
    %cst_62 = arith.constant dense<0.000000e+00> : vector<40xf32>
    %633 = vector.multi_reduction <add>, %632, %cst_62 [1] : vector<40x32xf32> to vector<40xf32>
    %634 = vector.shape_cast %633 : vector<40xf32> to vector<40x1xf32>
    %cst_63 = arith.constant 3.200000e+01 : f32
    %635 = vector.broadcast %cst_63 : f32 to vector<40x1xf32>
    %636 = arith.divf %634, %635 : vector<40x1xf32>
    %637 = vector.broadcast %629 : vector<40x1xf32> to vector<40x32xf32>
    %638 = arith.subf %625, %637 : vector<40x32xf32>
    %cst_64 = arith.constant 9.99999974E-6 : f32
    %639 = vector.broadcast %cst_64 : f32 to vector<40x1xf32>
    %640 = arith.addf %636, %639 : vector<40x1xf32>
    %641 = math.rsqrt %640 : vector<40x1xf32>
    %642 = vector.broadcast %641 : vector<40x1xf32> to vector<40x32xf32>
    %643 = arith.mulf %638, %642 : vector<40x32xf32>
    %644 = vector.broadcast %348 : vector<1x32xf32> to vector<40x32xf32>
    %645 = arith.mulf %643, %644 : vector<40x32xf32>
    %646 = vector.broadcast %349 : vector<1x32xf32> to vector<40x32xf32>
    %647 = arith.addf %645, %646 : vector<40x32xf32>
    %648 = vector.extract_strided_slice %647 {offsets = [0, 0], sizes = [8, 32], strides = [1, 1]} : vector<40x32xf32> to vector<8x32xf32>
    %c0_65 = arith.constant 0 : index
    %c0_66 = arith.constant 0 : index
    %649 = vector.load %arg9[%c0_65, %c0_66] : memref<32x4xf32, #tpu.memory_space<vmem>>, vector<32x4xf32>
    %cst_67 = arith.constant dense<0.000000e+00> : vector<8x4xf32>
    %650 = tpu.matmul %648, %649, %cst_67 {dimension_numbers = #tpu.dot_dimension_numbers<[1], [0], [0], [1], [0, 0, 1, 1], [], []>} : vector<8x32xf32>, vector<32x4xf32>, vector<8x4xf32> -> vector<8x4xf32>
    %c0_68 = arith.constant 0 : index
    %c0_69 = arith.constant 0 : index
    %651 = vector.load %arg10[%c0_68, %c0_69] : memref<1x4xf32, #tpu.memory_space<vmem>>, vector<1x4xf32>
    %652 = vector.broadcast %651 : vector<1x4xf32> to vector<8x4xf32>
    %653 = arith.addf %650, %652 : vector<8x4xf32>
    %c0_70 = arith.constant 0 : index
    %c0_71 = arith.constant 0 : index
    %654 = vector.load %arg11[%c0_70, %c0_71] : memref<4x32xf32, #tpu.memory_space<vmem>>, vector<4x32xf32>
    %655 = vector.extract_strided_slice %647 {offsets = [8, 0], sizes = [8, 32], strides = [1, 1]} : vector<40x32xf32> to vector<8x32xf32>
    %656 = vector.extract_strided_slice %654 {offsets = [0, 0], sizes = [1, 32], strides = [1, 1]} : vector<4x32xf32> to vector<1x32xf32>
    %657 = vector.broadcast %656 : vector<1x32xf32> to vector<8x32xf32>
    %658 = arith.mulf %655, %657 : vector<8x32xf32>
    %cst_72 = arith.constant dense<0.000000e+00> : vector<8xf32>
    %659 = vector.multi_reduction <add>, %658, %cst_72 [1] : vector<8x32xf32> to vector<8xf32>
    %660 = vector.shape_cast %659 : vector<8xf32> to vector<8x1xf32>
    %661 = vector.extract_strided_slice %647 {offsets = [16, 0], sizes = [8, 32], strides = [1, 1]} : vector<40x32xf32> to vector<8x32xf32>
    %662 = vector.extract_strided_slice %654 {offsets = [1, 0], sizes = [1, 32], strides = [1, 1]} : vector<4x32xf32> to vector<1x32xf32>
    %663 = vector.broadcast %662 : vector<1x32xf32> to vector<8x32xf32>
    %664 = arith.mulf %661, %663 : vector<8x32xf32>
    %cst_73 = arith.constant dense<0.000000e+00> : vector<8xf32>
    %665 = vector.multi_reduction <add>, %664, %cst_73 [1] : vector<8x32xf32> to vector<8xf32>
    %666 = vector.shape_cast %665 : vector<8xf32> to vector<8x1xf32>
    %667 = vector.extract_strided_slice %647 {offsets = [24, 0], sizes = [8, 32], strides = [1, 1]} : vector<40x32xf32> to vector<8x32xf32>
    %668 = vector.extract_strided_slice %654 {offsets = [2, 0], sizes = [1, 32], strides = [1, 1]} : vector<4x32xf32> to vector<1x32xf32>
    %669 = vector.broadcast %668 : vector<1x32xf32> to vector<8x32xf32>
    %670 = arith.mulf %667, %669 : vector<8x32xf32>
    %cst_74 = arith.constant dense<0.000000e+00> : vector<8xf32>
    %671 = vector.multi_reduction <add>, %670, %cst_74 [1] : vector<8x32xf32> to vector<8xf32>
    %672 = vector.shape_cast %671 : vector<8xf32> to vector<8x1xf32>
    %673 = vector.extract_strided_slice %647 {offsets = [32, 0], sizes = [8, 32], strides = [1, 1]} : vector<40x32xf32> to vector<8x32xf32>
    %674 = vector.extract_strided_slice %654 {offsets = [3, 0], sizes = [1, 32], strides = [1, 1]} : vector<4x32xf32> to vector<1x32xf32>
    %675 = vector.broadcast %674 : vector<1x32xf32> to vector<8x32xf32>
    %676 = arith.mulf %673, %675 : vector<8x32xf32>
    %cst_75 = arith.constant dense<0.000000e+00> : vector<8xf32>
    %677 = vector.multi_reduction <add>, %676, %cst_75 [1] : vector<8x32xf32> to vector<8xf32>
    %678 = vector.shape_cast %677 : vector<8xf32> to vector<8x1xf32>
    %679 = tpu.concatenate %660, %666, %672, %678 in 1 : vector<8x1xf32>, vector<8x1xf32>, vector<8x1xf32>, vector<8x1xf32> -> vector<8x4xf32>
    %c0_76 = arith.constant 0 : index
    %c0_77 = arith.constant 0 : index
    %680 = vector.load %arg12[%c0_76, %c0_77] : memref<1x4xf32, #tpu.memory_space<vmem>>, vector<1x4xf32>
    %681 = vector.broadcast %680 : vector<1x4xf32> to vector<8x4xf32>
    %682 = arith.addf %679, %681 : vector<8x4xf32>
    %683 = tpu.concatenate %653, %682 in 1 : vector<8x4xf32>, vector<8x4xf32> -> vector<8x8xf32>
    %cst_78 = arith.constant 5.000000e-01 : f32
    %684 = vector.broadcast %cst_78 : f32 to vector<8x8xf32>
    %685 = arith.mulf %684, %683 : vector<8x8xf32>
    %686 = math.tanh %685 : vector<8x8xf32>
    %cst_79 = arith.constant 5.000000e-01 : f32
    %687 = vector.broadcast %cst_79 : f32 to vector<8x8xf32>
    %688 = arith.mulf %687, %686 : vector<8x8xf32>
    %cst_80 = arith.constant 5.000000e-01 : f32
    %689 = vector.broadcast %cst_80 : f32 to vector<8x8xf32>
    %690 = arith.addf %688, %689 : vector<8x8xf32>
    %c0_81 = arith.constant 0 : index
    %c0_82 = arith.constant 0 : index
    %691 = vector.load %arg13[%c0_81, %c0_82] : memref<8x8xf32, #tpu.memory_space<vmem>>, vector<8x8xf32>
    tpu.vector_store %arg13[%c0_81, %c0_82], %690 {strides = array<i32>} : memref<8x8xf32, #tpu.memory_space<vmem>>, vector<8x8xf32>,
    return
  }
  func.func @transform_0(%arg0: i32) -> (i32, i32) {
    %c0_i32 = arith.constant 0 : i32
    %c0_i32_0 = arith.constant 0 : i32
    return %arg0, %c0_i32 : i32, i32
  }
  func.func @transform_1(%arg0: i32) -> (i32, i32) {
    %c0_i32 = arith.constant 0 : i32
    %c0_i32_0 = arith.constant 0 : i32
    %c0_i32_1 = arith.constant 0 : i32
    return %c0_i32, %c0_i32_0 : i32, i32
  }
  func.func @transform_2(%arg0: i32) -> (i32, i32) {
    %c0_i32 = arith.constant 0 : i32
    %c0_i32_0 = arith.constant 0 : i32
    %c0_i32_1 = arith.constant 0 : i32
    return %c0_i32, %c0_i32_0 : i32, i32
  }
  func.func @transform_3(%arg0: i32) -> (i32, i32, i32) {
    %c0_i32 = arith.constant 0 : i32
    %c0_i32_0 = arith.constant 0 : i32
    %c0_i32_1 = arith.constant 0 : i32
    %c0_i32_2 = arith.constant 0 : i32
    return %c0_i32, %c0_i32_0, %c0_i32_1 : i32, i32, i32
  }
  func.func @transform_4(%arg0: i32) -> (i32, i32, i32) {
    %c0_i32 = arith.constant 0 : i32
    %c0_i32_0 = arith.constant 0 : i32
    %c0_i32_1 = arith.constant 0 : i32
    %c0_i32_2 = arith.constant 0 : i32
    return %c0_i32, %c0_i32_0, %c0_i32_1 : i32, i32, i32
  }
  func.func @transform_5(%arg0: i32) -> (i32, i32, i32) {
    %c0_i32 = arith.constant 0 : i32
    %c0_i32_0 = arith.constant 0 : i32
    %c0_i32_1 = arith.constant 0 : i32
    %c0_i32_2 = arith.constant 0 : i32
    return %c0_i32, %c0_i32_0, %c0_i32_1 : i32, i32, i32
  }
  func.func @transform_6(%arg0: i32) -> (i32, i32, i32) {
    %c0_i32 = arith.constant 0 : i32
    %c0_i32_0 = arith.constant 0 : i32
    %c0_i32_1 = arith.constant 0 : i32
    %c0_i32_2 = arith.constant 0 : i32
    return %c0_i32, %c0_i32_0, %c0_i32_1 : i32, i32, i32
  }
  func.func @transform_7(%arg0: i32) -> (i32, i32, i32) {
    %c0_i32 = arith.constant 0 : i32
    %c0_i32_0 = arith.constant 0 : i32
    %c0_i32_1 = arith.constant 0 : i32
    %c0_i32_2 = arith.constant 0 : i32
    return %c0_i32, %c0_i32_0, %c0_i32_1 : i32, i32, i32
  }
  func.func @transform_8(%arg0: i32) -> (i32, i32) {
    %c0_i32 = arith.constant 0 : i32
    %c0_i32_0 = arith.constant 0 : i32
    %c0_i32_1 = arith.constant 0 : i32
    return %c0_i32, %c0_i32_0 : i32, i32
  }
  func.func @transform_9(%arg0: i32) -> (i32, i32) {
    %c0_i32 = arith.constant 0 : i32
    %c0_i32_0 = arith.constant 0 : i32
    %c0_i32_1 = arith.constant 0 : i32
    return %c0_i32, %c0_i32_0 : i32, i32
  }
  func.func @transform_10(%arg0: i32) -> (i32, i32) {
    %c0_i32 = arith.constant 0 : i32
    %c0_i32_0 = arith.constant 0 : i32
    %c0_i32_1 = arith.constant 0 : i32
    return %c0_i32, %c0_i32_0 : i32, i32
  }
  func.func @transform_11(%arg0: i32) -> (i32, i32) {
    %c0_i32 = arith.constant 0 : i32
    %c0_i32_0 = arith.constant 0 : i32
    %c0_i32_1 = arith.constant 0 : i32
    return %c0_i32, %c0_i32_0 : i32, i32
  }
  func.func @transform_12(%arg0: i32) -> (i32, i32) {
    %c0_i32 = arith.constant 0 : i32
    %c0_i32_0 = arith.constant 0 : i32
    return %arg0, %c0_i32 : i32, i32
  }
}

</mosaic_0001>

<bundles_post_ra>
// kernel: tpu_custom_call.1
= control target key start
LH: loop header
LB: loop body
LE: loop exit
PB: predicated region body
PF: predicated region fallthrough
CT: control target
= control target key end

     0   :  { %17 = vsyncpa [#allocation3], 0  ;;  %s4564_s0 = inlined_call_operand.hbm [shape: f32[8,32], index: 0, kind: input, shape index: {}]   ;;  %s4565_s1 = inlined_call_operand.vmem [shape: f32[4,32], index: 1, kind: input, shape index: {}]   ;;  %s4566_s2 = inlined_call_operand.vmem [shape: f32[32,32], index: 2, kind: input, shape index: {}]   ;;  %s4567_s3 = inlined_call_operand.vmem [shape: f32[2,32,96], index: 3, kind: input, shape index: {}]   ;;  %s4568_s4 = inlined_call_operand.vmem [shape: f32[2,32,32], index: 4, kind: input, shape index: {}]   ;;  %s4569_s5 = inlined_call_operand.vmem [shape: f32[2,32,64], index: 5, kind: input, shape index: {}]   ;;  %s4570_s6 = inlined_call_operand.vmem [shape: f32[2,64,32], index: 6, kind: input, shape index: {}]   ;;  %s4571_s7 = inlined_call_operand.hbm [shape: f32[2,8,96], index: 7, kind: input, shape index: {}]   ;;  %s4572_s8 = inlined_call_operand.vmem [shape: f32[32,4], index: 8, kind: input, shape index: {}]   ;;  %s4573_s9 = inlined_call_operand.vmem [shape: f32[1,4], index: 9, kind: input, shape index: {}]   ;;  %s4574_s10 = inlined_call_operand.vmem [shape: f32[4,32], index: 10, kind: input, shape index: {}]   ;;  %s4575_s11 = inlined_call_operand.vmem [shape: f32[1,4], index: 11, kind: input, shape index: {}]   ;;  %s4576_s12 = inlined_call_operand.hbm [shape: f32[8,8], index: 12, kind: output, shape index: {}]  }
   0x1   :  { %18 = vsyncpa [#allocation6], 0 }
   0x2   :  { %19 = vsyncpa [#allocation4], 0  ;;  %s3440_s21 = smov [#allocation2]   ;;  %s3441_s23 = smov [#allocation5]  }
   0x3   :  { %s26_s22 = sshll.u32 %s3440_s21, 4  ;;  %s47_s24 = sshll.u32 %s3441_s23, 4  ;;  %s27_s22 = int_to_ptr.vmem [resolvable:$true] %s26_s22  ;;  %s48_s24 = int_to_ptr.vmem [resolvable:$true] %s47_s24 }
   0x4   :  { %s3382_s25 = scalar_lea.vmem %s27_s22, 128  ;;  %p3387_p1 = scmp.lt.s32.totalorder %s27_s22, %s27_s22 }
   0x5   :  { %p3383_p0 = scmp.ne.s32.totalorder %s27_s22, %s3382_s25  ;;  %p3388_p2 = scmp.lt.s32.totalorder %s3382_s25, %s3382_s25 }
   0x7   :  { %p3389_p3 = por %p3388_p2, %p3387_p1 }
   0x9   :  { %p3390_p4 = pnand %p3389_p3, %p3383_p0 }
   0xb   :  { %3393 = shalt.err (!%p3390_p4)
}
   0xc   :  { %29 = dma.hbm_to_vmem [thread:$0]  %s4564_s0, 128, %s27_s22, [#allocation3]  }
   0xd   :  { %s3402_s28 = scalar_lea.vmem %s48_s24, 256  ;;  %p3407_p6 = scmp.lt.s32.totalorder %s48_s24, %s48_s24 }
   0xe   :  { %p3403_p5 = scmp.ne.s32.totalorder %s48_s24, %s3402_s28  ;;  %p3408_p7 = scmp.lt.s32.totalorder %s3402_s28, %s3402_s28 }
  0x10   :  { %p3409_p8 = por %p3408_p7, %p3407_p6 }
  0x12   :  { %p3410_p9 = pnand %p3409_p8, %p3403_p5 }
  0x14   :  { %3413 = shalt.err (!%p3410_p9)
}
  0x15   :  { %s3442_s29 = smov 128   ;;  %s3443_s30 = smov 8  }
  0x16   :  { %53 = dma.hbm_to_vmem [thread:$0]  %s4571_s7, 256, %s48_s24, [#allocation6], %s3442_s29, %s3442_s29, %s3443_s30  }
  0x17   :  { %3434 = dma.done.wait [#allocation3], 128  }
  0x18   :  { %3435 = vsyncadd [#allocation3], 4294967168 }
  0x19   :  { %3436 = dma.done.wait [#allocation6], 256  }
  0x1a   :  { %3437 = vsyncadd [#allocation6], 4294967040  ;;  %v3444_v0 = vmov 0.0   ;;  %vm3445_vm0 = vmmov 0   ;;  %v70_v1 = vlaneseq  ;;  %v93_v2 = vld [vmem:[%s4567_s3 + $0x18] sm:$0xff]  ;;  %v92_v3 = vld [vmem:[%s4567_s3 + $0x10] sm:$0xff] }
  0x1b   :  { %2819 = vmatprep.subr.mxu1 %v3444_v0  ;;  %2827 = vmatprep.mubr.msk.f32.mxu1 %vm3445_vm0, %v3444_v0  ;;  %v91_v5 = vld [vmem:[%s4567_s3 + $0x8] sm:$0xff]  ;;  %v90_v6 = vld [vmem:[%s4567_s3] sm:$0xff]  ;;  %vm115_vm1 = vcmask 261120   ;;  %v89_v17 = vld [vmem:[%s4566_s2 + $0x18] sm:$0xff]  ;;  %s3446_s30 = smov 96   ;;  %s3447_s13 = smov 64  }
  0x1c   :  { %2925 = vmatprep.subr.mxu0 %v3444_v0  ;;  %2933 = vmatprep.mubr.msk.f32.mxu0 %vm3445_vm0, %v3444_v0  ;;  %v3533_v4 = vshrl.u32 %v70_v1, 7  ;;  %v3546_v8 = vld [vmem:[#allocation2] sm:$0xff]  ;;  %v88_v18 = vld [vmem:[%s4566_s2 + $0x10] sm:$0xff]  ;;  %v87_v19 = vld [vmem:[%s4566_s2 + $0x8] sm:$0xff]  ;;  %vm1052_vm2 = vcmask 523264   ;;  %vm2521_vm3 = vcmask 7168  }
  0x1d   :  { %2820 = vmatpush3.msra.mxu1 %v93_v2  ;;  %v69_v9 = vld [vmem:[%s4565_s1] sm:$0xf]  ;;  %v3610_v21 = vld [vmem:[#allocation5] sm:$0xff]  ;;  %vm2523_vm4 = vcmask 15360   ;;  %vm2525_vm5 = vcmask 23552   ;;  %vm2539_vm6 = vcmask 31744  }
  0x1e   :  { %2821 = vmatprep.subr.mxu1 %v3444_v0  ;;  %v3544_v7 = vsub.s32 0, %v3533_v4  ;;  %v3558_v11 = vsub.s32 1, %v3533_v4  ;;  %v3569_v13 = vsub.s32 2, %v3533_v4  ;;  %v3579_v15 = vsub.s32 3, %v3533_v4  ;;  %v86_v20 = vld [vmem:[%s4566_s2] sm:$0xff]  ;;  %s3449_s7 = smov [#allocation7]  }
  0x1f   :  { %2822 = vmatpush3.msra.mxu1 %v92_v3  ;;  %s2553_s16 = sshll.u32 %s3449_s7, 4  ;;  %vm2545_vm7 = vcmask 64512   ;;  %s2554_s16 = int_to_ptr.vmem [resolvable:$true] %s2553_s16 }
  0x20   :  { %2823 = vmatprep.subr.mxu1 %v3444_v0  ;;  %v3555_v10 = vrot.slane %v69_v9, %v3544_v7  ;;  %v3566_v12 = vrot.slane %v69_v9, %v3558_v11  ;;  %v3576_v14 = vrot.slane %v69_v9, %v3569_v13  ;;  %v3586_v16 = vrot.slane %v69_v9, %v3579_v15  ;;  %v96_v9 = vld [vmem:[%s4568_s4 + $0x10] sm:$0xff]  ;;  %p3419_p11 = scmp.lt.s32.totalorder %s2554_s16, %s2554_s16 }
  0x21   :  { %2824 = vmatpush3.msra.mxu1 %v91_v5  ;;  %v114_v22 = vrot.slane %v3610_v21, %v3544_v7 }
  0x22   :  { %2825 = vmatprep.subr.mxu1 %v3444_v0 }
  0x23   :  { %2826 = vmatpush3.msra.mxu1 %v90_v6  ;;  %v97_v6 = vld [vmem:[%s4568_s4 + $0x18] sm:$0xff] }
  0x24   :  { %2828 = vmatmul.mubr.msk.f32.vlgmr.msra.gmra.mxu1 %vm115_vm1, %v3546_v8  ;;  %2842 = vmatprep.subr.mxu1 %v3444_v0 }
  0x25   :  { %2830 = vmatprep.mubr.msk.f32.mxu1 %vm3445_vm0, %v3444_v0  ;;  %2843 = vmatpush3.msra.mxu1 %v89_v17  ;;  %v95_v17 = vld [vmem:[%s4568_s4 + $0x8] sm:$0xff] }
  0x26   :  { %2844 = vmatprep.subr.mxu1 %v3444_v0  ;;  %2926 = vmatpush3.msra.mxu0 %v97_v6 }
  0x27   :  { %2845 = vmatpush3.msra.mxu1 %v88_v18  ;;  %2927 = vmatprep.subr.mxu0 %v3444_v0  ;;  %v94_v18 = vld [vmem:[%s4568_s4] sm:$0xff] }
  0x28   :  { %2831 = vmatmul.mubr.msk.f32.gmra.mxu1 %vm115_vm1, %v3555_v10  ;;  %2846 = vmatprep.subr.mxu1 %v3444_v0 }
  0x29   :  { %2833 = vmatprep.mubr.msk.f32.mxu1 %vm3445_vm0, %v3444_v0  ;;  %2847 = vmatpush3.msra.mxu1 %v87_v19 }
  0x2a   :  { %2848 = vmatprep.subr.mxu1 %v3444_v0  ;;  %2928 = vmatpush3.msra.mxu0 %v96_v9 }
  0x2b   :  { %2849 = vmatpush3.msra.mxu1 %v86_v20  ;;  %2929 = vmatprep.subr.mxu0 %v3444_v0 }
  0x2c   :  { %2834 = vmatmul.mubr.msk.f32.gmra.mxu1 %vm115_vm1, %v3566_v12  ;;  %3108 = vmatprep.subr.mxu1 %v3444_v0 }
  0x2d   :  { %2836 = vmatprep.mubr.msk.f32.mxu1 %vm3445_vm0, %v3444_v0  ;;  %2930 = vmatpush3.msra.mxu0 %v95_v17 }
  0x2e   :  { %2931 = vmatprep.subr.mxu0 %v3444_v0 }
  0x2f   :  { %2932 = vmatpush3.msra.mxu0 %v94_v18 }
  0x30   :  { %2837 = vmatmul.mubr.msk.f32.gmra.mxu1 %vm115_vm1, %v3576_v14  ;;  %2948 = vmatprep.subr.mxu0 %v3444_v0 }
  0x31   :  { %2839 = vmatprep.mubr.msk.f32.mxu1 %vm3445_vm0, %v3444_v0 }
  0x34   :  { %2840 = vmatmul.mubr.msk.f32.gmra.mxu1 %vm115_vm1, %v3586_v16 }
  0x35   :  { %2850 = vmatprep.mubr.msk.f32.mxu1 %vm3445_vm0, %v3444_v0 }
  0xe4   :  { %v197_v23 = vpop.f32.mrf.mxu1 }
  0xe5   :  { %v198_v24 = vadd.f32 %v197_v23, %v114_v22 }
  0xe6   :  { %v2829_v25 = vpop.f32.mrf.mxu1 }
  0xe7   :  { %222 = vrot.lane.b32.xlu0 %v198_v24, %s3446_s30 }
  0xe8   :  { %v202_v26 = vpop.f32.mrf.mxu1 }
  0xe9   :  { %v203_v27 = vadd.f32 %v202_v26, %v114_v22 }
  0xea   :  { %v2832_v28 = vpop.f32.mrf.mxu1 }
  0xeb   :  { %227 = vrot.lane.b32.xlu0 %v203_v27, %s3446_s30 }
  0xec   :  { %v207_v29 = vpop.f32.mrf.mxu1 }
  0xed   :  { %v3616_v30 = vadd.f32 %v207_v29, %v114_v22 }
  0xee   :  { %v2835_v31 = vpop.f32.mrf.mxu1 }
  0xef   :  { %232 = vrot.lane.b32.xlu1 %v3616_v30, %s3446_s30 }
  0xf0   :  { %v212_v32 = vpop.f32.mrf.mxu1 }
  0xf1   :  { %v3620_v33 = vadd.f32 %v212_v32, %v114_v22 }
  0xf2   :  { %v2838_v34 = vpop.f32.mrf.mxu1 }
  0xf3   :  { %237 = vrot.lane.b32.xlu1 %v3620_v33, %s3446_s30 }
  0xf4   :  { %v217_v35 = vpop.f32.mrf.mxu1 }
  0xf5   :  { %v3624_v36 = vadd.f32 %v217_v35, %v114_v22 }
  0xf6   :  { %v2841_v37 = vpop.f32.mrf.mxu1 }
  0xf7   :  { %556 = vrot.lane.b32.xlu1 %v198_v24, %s3447_s13  ;;  %242 = vrot.lane.b32.xlu0 %v3624_v36, %s3446_s30 }
  0xfb   :  { %567 = vrot.lane.b32.xlu1 %v3616_v30, %s3447_s13  ;;  %561 = vrot.lane.b32.xlu0 %v203_v27, %s3447_s13 }
  0xff   :  { %579 = vrot.lane.b32.xlu1 %v3624_v36, %s3447_s13  ;;  %573 = vrot.lane.b32.xlu0 %v3620_v33, %s3447_s13 }
 0x159   :  { %v3636_v38 = vpop.permute.xlu0 %222 }
 0x15a   :  { %v225_v39 = vmul.f32 %v3636_v38, %v198_v24  ;;  %v246_v48 = vmul.f32 %v3636_v38, %v203_v27  ;;  %v251_v53 = vmul.f32 %v3636_v38, %v3616_v30  ;;  %v256_v58 = vmul.f32 %v3636_v38, %v3620_v33 }
 0x15b   :  { %v261_v63 = vmul.f32 %v3636_v38, %v3624_v36 }
 0x15c   :  { %2851 = vmatmul.mubr.msk.f32.vlgmr.msra.gmra.mxu1 %vm115_vm1, %v225_v39 }
 0x15d   :  { %v3640_v40 = vpop.permute.xlu0 %227  ;;  %2853 = vmatprep.mubr.msk.f32.mxu1 %vm3445_vm0, %v3444_v0 }
 0x15e   :  { %v230_v41 = vmul.f32 %v3640_v40, %v198_v24  ;;  %v247_v49 = vmul.f32 %v3640_v40, %v203_v27  ;;  %v252_v54 = vmul.f32 %v3640_v40, %v3616_v30  ;;  %v257_v59 = vmul.f32 %v3640_v40, %v3620_v33 }
 0x15f   :  { %v262_v1 = vmul.f32 %v3640_v40, %v3624_v36 }
 0x160   :  { %2854 = vmatmul.mubr.msk.f32.gmra.mxu1 %vm115_vm1, %v230_v41 }
 0x161   :  { %v3646_v42 = vpop.permute.xlu1 %232  ;;  %2856 = vmatprep.mubr.msk.f32.mxu1 %vm3445_vm0, %v3444_v0 }
 0x162   :  { %v235_v43 = vmul.f32 %v3646_v42, %v198_v24  ;;  %v248_v50 = vmul.f32 %v3646_v42, %v203_v27  ;;  %v253_v55 = vmul.f32 %v3646_v42, %v3616_v30  ;;  %v258_v60 = vmul.f32 %v3646_v42, %v3620_v33 }
 0x163   :  { %v263_v2 = vmul.f32 %v3646_v42, %v3624_v36 }
 0x164   :  { %2857 = vmatmul.mubr.msk.f32.gmra.mxu1 %vm115_vm1, %v235_v43 }
 0x165   :  { %v3652_v44 = vpop.permute.xlu1 %237  ;;  %2859 = vmatprep.mubr.msk.f32.mxu1 %vm3445_vm0, %v3444_v0 }
 0x166   :  { %v240_v45 = vmul.f32 %v3652_v44, %v198_v24  ;;  %v249_v51 = vmul.f32 %v3652_v44, %v203_v27  ;;  %v254_v56 = vmul.f32 %v3652_v44, %v3616_v30  ;;  %v259_v61 = vmul.f32 %v3652_v44, %v3620_v33 }
 0x167   :  { %v264_v3 = vmul.f32 %v3652_v44, %v3624_v36 }
 0x168   :  { %2860 = vmatmul.mubr.msk.f32.gmra.mxu1 %vm115_vm1, %v240_v45 }
 0x169   :  { %v243_v46 = vpop.permute.xlu0 %242  ;;  %2862 = vmatprep.mubr.msk.f32.mxu1 %vm3445_vm0, %v3444_v0 }
 0x16a   :  { %v245_v47 = vmul.f32 %v243_v46, %v198_v24  ;;  %v250_v52 = vmul.f32 %v243_v46, %v203_v27  ;;  %v255_v57 = vmul.f32 %v243_v46, %v3616_v30  ;;  %v260_v62 = vmul.f32 %v243_v46, %v3620_v33 }
 0x16b   :  { %v265_v5 = vmul.f32 %v243_v46, %v3624_v36 }
 0x16c   :  { %2863 = vmatmul.mubr.msk.f32.gmra.mxu1 %vm115_vm1, %v245_v47 }
 0x16d   :  { %2865 = vmatprep.mubr.msk.f32.mxu1 %vm3445_vm0, %v3444_v0 }
 0x170   :  { %2866 = vmatmul.mubr.msk.f32.gmra.mxu1 %vm115_vm1, %v246_v48 }
 0x171   :  { %2868 = vmatprep.mubr.msk.f32.mxu1 %vm3445_vm0, %v3444_v0 }
 0x174   :  { %2869 = vmatmul.mubr.msk.f32.gmra.mxu1 %vm115_vm1, %v247_v49 }
 0x175   :  { %2871 = vmatprep.mubr.msk.f32.mxu1 %vm3445_vm0, %v3444_v0 }
 0x178   :  { %2872 = vmatmul.mubr.msk.f32.gmra.mxu1 %vm115_vm1, %v248_v50 }
 0x179   :  { %2874 = vmatprep.mubr.msk.f32.mxu1 %vm3445_vm0, %v3444_v0 }
 0x17c   :  { %2875 = vmatmul.mubr.msk.f32.gmra.mxu1 %vm115_vm1, %v249_v51 }
 0x17d   :  { %2877 = vmatprep.mubr.msk.f32.mxu1 %vm3445_vm0, %v3444_v0 }
 0x180   :  { %2878 = vmatmul.mubr.msk.f32.gmra.mxu1 %vm115_vm1, %v250_v52 }
 0x181   :  { %2880 = vmatprep.mubr.msk.f32.mxu1 %vm3445_vm0, %v3444_v0 }
 0x184   :  { %2881 = vmatmul.mubr.msk.f32.gmra.mxu1 %vm115_vm1, %v251_v53 }
 0x185   :  { %2883 = vmatprep.mubr.msk.f32.mxu1 %vm3445_vm0, %v3444_v0 }
 0x188   :  { %2884 = vmatmul.mubr.msk.f32.gmra.mxu1 %vm115_vm1, %v252_v54 }
 0x189   :  { %2886 = vmatprep.mubr.msk.f32.mxu1 %vm3445_vm0, %v3444_v0 }
 0x18c   :  { %2887 = vmatmul.mubr.msk.f32.gmra.mxu1 %vm115_vm1, %v253_v55 }
 0x18d   :  { %2889 = vmatprep.mubr.msk.f32.mxu1 %vm3445_vm0, %v3444_v0 }
 0x190   :  { %2890 = vmatmul.mubr.msk.f32.gmra.mxu1 %vm115_vm1, %v254_v56 }
 0x191   :  { %2892 = vmatprep.mubr.msk.f32.mxu1 %vm3445_vm0, %v3444_v0 }
 0x194   :  { %2893 = vmatmul.mubr.msk.f32.gmra.mxu1 %vm115_vm1, %v255_v57 }
 0x195   :  { %2895 = vmatprep.mubr.msk.f32.mxu1 %vm3445_vm0, %v3444_v0 }
 0x198   :  { %2896 = vmatmul.mubr.msk.f32.gmra.mxu1 %vm115_vm1, %v256_v58 }
 0x199   :  { %2898 = vmatprep.mubr.msk.f32.mxu1 %vm3445_vm0, %v3444_v0 }
 0x19c   :  { %2899 = vmatmul.mubr.msk.f32.gmra.mxu1 %vm115_vm1, %v257_v59 }
 0x19d   :  { %2901 = vmatprep.mubr.msk.f32.mxu1 %vm3445_vm0, %v3444_v0 }
 0x1a0   :  { %2902 = vmatmul.mubr.msk.f32.gmra.mxu1 %vm115_vm1, %v258_v60 }
 0x1a1   :  { %2904 = vmatprep.mubr.msk.f32.mxu1 %vm3445_vm0, %v3444_v0 }
 0x1a4   :  { %2905 = vmatmul.mubr.msk.f32.gmra.mxu1 %vm115_vm1, %v259_v61 }
 0x1a5   :  { %2907 = vmatprep.mubr.msk.f32.mxu1 %vm3445_vm0, %v3444_v0 }
 0x1a8   :  { %2908 = vmatmul.mubr.msk.f32.gmra.mxu1 %vm115_vm1, %v260_v62 }
 0x1a9   :  { %2910 = vmatprep.mubr.msk.f32.mxu1 %vm3445_vm0, %v3444_v0 }
 0x1ac   :  { %2911 = vmatmul.mubr.msk.f32.gmra.mxu1 %vm115_vm1, %v261_v63 }
 0x1ad   :  { %2913 = vmatprep.mubr.msk.f32.mxu1 %vm3445_vm0, %v3444_v0 }
 0x1b0   :  { %2914 = vmatmul.mubr.msk.f32.gmra.mxu1 %vm115_vm1, %v262_v1 }
 0x1b1   :  { %2916 = vmatprep.mubr.msk.f32.mxu1 %vm3445_vm0, %v3444_v0 }
 0x1b4   :  { %2917 = vmatmul.mubr.msk.f32.gmra.mxu1 %vm115_vm1, %v263_v2 }
 0x1b5   :  { %2919 = vmatprep.mubr.msk.f32.mxu1 %vm3445_vm0, %v3444_v0 }
 0x1b8   :  { %2920 = vmatmul.mubr.msk.f32.gmra.mxu1 %vm115_vm1, %v264_v3 }
 0x1b9   :  { %2922 = vmatprep.mubr.msk.f32.mxu1 %vm3445_vm0, %v3444_v0 }
 0x1bc   :  { %2923 = vmatmul.mubr.msk.f32.gmra.mxu1 %vm115_vm1, %v265_v5 }
 0x1bd   :  { %3116 = vmatprep.mubr.msk.f32.mxu1 %vm3445_vm0, %v3444_v0 }
 0x21c   :  { %v407_v19 = vpop.f32.mrf.mxu1 }
 0x21e   :  { %v2852_v20 = vpop.f32.mrf.mxu1 }
 0x220   :  { %v412_v22 = vpop.f32.mrf.mxu1 }
 0x221   :  { %v531_v26 = vmax.f32 %v407_v19, %v412_v22 }
 0x222   :  { %v2855_v23 = vpop.f32.mrf.mxu1 }
 0x224   :  { %v417_v24 = vpop.f32.mrf.mxu1 }
 0x225   :  { %v532_v28 = vmax.f32 %v531_v26, %v417_v24 }
 0x226   :  { %v2858_v25 = vpop.f32.mrf.mxu1 }
 0x228   :  { %v422_v27 = vpop.f32.mrf.mxu1 }
 0x229   :  { %v533_v30 = vmax.f32 %v532_v28, %v422_v27 }
 0x22a   :  { %v2861_v29 = vpop.f32.mrf.mxu1 }
 0x22c   :  { %v427_v31 = vpop.f32.mrf.mxu1 }
 0x22d   :  { %v534_v32 = vmax.f32 %v533_v30, %v427_v31 }
 0x22e   :  { %v2864_v33 = vpop.f32.mrf.mxu1 }
 0x22f   :  { %v535_v34 = vsub.f32 %v407_v19, %v534_v32  ;;  %v538_v35 = vsub.f32 %v412_v22, %v534_v32  ;;  %v541_v36 = vsub.f32 %v417_v24, %v534_v32  ;;  %v544_v37 = vsub.f32 %v422_v27, %v534_v32 }
 0x230   :  { %v432_v38 = vpop.f32.mrf.mxu1  ;;  %v547_v42 = vsub.f32 %v427_v31, %v534_v32 }
 0x231   :  { %v536_v39 = vmul.f32 1.442695, %v535_v34  ;;  %v539_v40 = vmul.f32 1.442695, %v538_v35  ;;  %v542_v41 = vmul.f32 1.442695, %v541_v36 }
 0x232   :  { %v2867_v43 = vpop.f32.mrf.mxu1  ;;  %v545_v44 = vmul.f32 1.442695, %v544_v37  ;;  %v548_v46 = vmul.f32 1.442695, %v547_v42  ;;  %v3772_v37 = vpop.permute.xlu1 %556 }
 0x233   :  { %3206 = vpow2.f32 %v536_v39 }
 0x234   :  { %3208 = vpow2.f32 %v539_v40  ;;  %v437_v45 = vpop.f32.mrf.mxu1 }
 0x235   :  { %3210 = vpow2.f32 %v542_v41  ;;  %v584_v50 = vmax.f32 %v432_v38, %v437_v45 }
 0x236   :  { %v2870_v47 = vpop.f32.mrf.mxu1  ;;  %3212 = vpow2.f32 %v545_v44 }
 0x237   :  { %3214 = vpow2.f32 %v548_v46 }
 0x238   :  { %v442_v48 = vpop.f32.mrf.mxu1 }
 0x239   :  { %v585_v52 = vmax.f32 %v584_v50, %v442_v48 }
 0x23a   :  { %v2873_v49 = vpop.f32.mrf.mxu1 }
 0x23c   :  { %v447_v51 = vpop.f32.mrf.mxu1 }
 0x23d   :  { %v586_v54 = vmax.f32 %v585_v52, %v447_v51 }
 0x23e   :  { %v2876_v53 = vpop.f32.mrf.mxu1 }
 0x240   :  { %v3207_v55 = vpop.eup %3206  ;;  %v452_v56 = vpop.f32.mrf.mxu1 }
 0x241   :  { %v3209_v57 = vpop.eup %3208  ;;  %v587_v58 = vmax.f32 %v586_v54, %v452_v56 }
 0x242   :  { %v550_v59 = vadd.f32 %v3209_v57, %v3207_v55  ;;  %v2879_v60 = vpop.f32.mrf.mxu1  ;;  %v3211_v61 = vpop.eup %3210 }
 0x243   :  { %v588_v62 = vsub.f32 %v432_v38, %v587_v58  ;;  %v591_v63 = vsub.f32 %v437_v45, %v587_v58  ;;  %v594_v1 = vsub.f32 %v442_v48, %v587_v58  ;;  %v597_v3 = vsub.f32 %v447_v51, %v587_v58  ;;  %v3213_v6 = vpop.eup %3212  ;;  %v3780_v48 = vpop.permute.xlu0 %561 }
 0x244   :  { %v551_v2 = vadd.f32 %v3211_v61, %v550_v59  ;;  %v457_v5 = vpop.f32.mrf.mxu1  ;;  %v600_v20 = vsub.f32 %v452_v56, %v587_v58  ;;  %v3215_v23 = vpop.eup %3214 }
 0x245   :  { %v589_v9 = vmul.f32 1.442695, %v588_v62  ;;  %v592_v17 = vmul.f32 1.442695, %v591_v63  ;;  %v595_v18 = vmul.f32 1.442695, %v594_v1  ;;  %v3787_v62 = vpop.permute.xlu1 %567 }
 0x246   :  { %v552_v19 = vadd.f32 %v3213_v6, %v551_v2  ;;  %v2882_v22 = vpop.f32.mrf.mxu1  ;;  %v598_v25 = vmul.f32 1.442695, %v597_v3  ;;  %v601_v27 = vmul.f32 1.442695, %v600_v20 }
 0x247   :  { %3216 = vpow2.f32 %v589_v9  ;;  %v3796_v22 = vpop.permute.xlu0 %573 }
 0x248   :  { %v553_v24 = vadd.f32 %v3215_v23, %v552_v19  ;;  %3218 = vpow2.f32 %v592_v17  ;;  %v462_v26 = vpop.f32.mrf.mxu1 }
 0x249   :  { %3220 = vpow2.f32 %v595_v18  ;;  %v622_v31 = vmax.f32 %v457_v5, %v462_v26 }
 0x24a   :  { %3222 = vrcp.f32 %v553_v24  ;;  %v2885_v28 = vpop.f32.mrf.mxu1 }
 0x24b   :  { %3224 = vpow2.f32 %v598_v25  ;;  %v3799_v28 = vpop.permute.xlu1 %579 }
 0x24c   :  { %v467_v29 = vpop.f32.mrf.mxu1  ;;  %3226 = vpow2.f32 %v601_v27 }
 0x24d   :  { %v623_v33 = vmax.f32 %v622_v31, %v467_v29 }
 0x24e   :  { %v2888_v30 = vpop.f32.mrf.mxu1 }
 0x250   :  { %v472_v32 = vpop.f32.mrf.mxu1 }
 0x251   :  { %v624_v35 = vmax.f32 %v623_v33, %v472_v32 }
 0x252   :  { %v2891_v34 = vpop.f32.mrf.mxu1 }
 0x254   :  { %v3770_v36 = vpop.eup %3216  ;;  %v477_v38 = vpop.f32.mrf.mxu1 }
 0x255   :  { %v3774_v39 = vpop.eup %3218  ;;  %v625_v40 = vmax.f32 %v624_v35, %v477_v38 }
 0x256   :  { %v3776_v41 = vpop.eup %3220  ;;  %v603_v42 = vadd.f32 %v3774_v39, %v3770_v36  ;;  %v2894_v43 = vpop.f32.mrf.mxu1 }
 0x257   :  { %v3223_v44 = vpop.eup %3222  ;;  %v626_v45 = vsub.f32 %v457_v5, %v625_v40  ;;  %v629_v46 = vsub.f32 %v462_v26, %v625_v40  ;;  %v632_v47 = vsub.f32 %v467_v29, %v625_v40  ;;  %v635_v50 = vsub.f32 %v472_v32, %v625_v40 }
 0x258   :  { %v604_v49 = vadd.f32 %v3776_v41, %v603_v42  ;;  %v3783_v51 = vpop.f32.mrf.mxu1  ;;  %v555_v52 = vmul.f32 %v3223_v44, %v3207_v55  ;;  %v560_v53 = vmul.f32 %v3223_v44, %v3209_v57  ;;  %v3785_v54 = vpop.eup %3224  ;;  %v566_v60 = vmul.f32 %v3223_v44, %v3211_v61 }
 0x259   :  { %v627_v56 = vmul.f32 1.442695, %v626_v45  ;;  %v630_v58 = vmul.f32 1.442695, %v629_v46  ;;  %v633_v59 = vmul.f32 1.442695, %v632_v47  ;;  %v638_v1 = vsub.f32 %v477_v38, %v625_v40  ;;  %v3791_v5 = vpop.eup %3226 }
 0x25a   :  { %v605_v63 = vadd.f32 %v3785_v54, %v604_v49  ;;  %v2897_v2 = vpop.f32.mrf.mxu1  ;;  %v559_v3 = vmul.f32 %v3772_v37, %v555_v52  ;;  %v564_v55 = vmul.f32 %v3780_v48, %v560_v53  ;;  %v572_v57 = vmul.f32 %v3223_v44, %v3213_v6 }
 0x25b   :  { %3228 = vpow2.f32 %v627_v56  ;;  %v636_v17 = vmul.f32 1.442695, %v635_v50  ;;  %v570_v19 = vmul.f32 %v3787_v62, %v566_v60  ;;  %v578_v20 = vmul.f32 %v3223_v44, %v3215_v23 }
 0x25c   :  { %v606_v9 = vadd.f32 %v3791_v5, %v605_v63  ;;  %3230 = vpow2.f32 %v630_v58  ;;  %v487_v18 = vpop.f32.mrf.mxu1  ;;  %v565_v61 = vadd.f32 %v564_v55, %v559_v3  ;;  %v639_v24 = vmul.f32 1.442695, %v638_v1 }
 0x25d   :  { %3232 = vpow2.f32 %v633_v59  ;;  %v576_v27 = vmul.f32 %v3796_v22, %v572_v57  ;;  %v582_v30 = vmul.f32 %v3799_v28, %v578_v20  ;;  %v660_v32 = vmax.f32 %v3783_v51, %v487_v18 }
 0x25e   :  { %3234 = vrcp.f32 %v606_v9  ;;  %v2900_v25 = vpop.f32.mrf.mxu1  ;;  %v571_v26 = vadd.f32 %v570_v19, %v565_v61 }
 0x25f   :  { %3236 = vpow2.f32 %v636_v17 }
 0x260   :  { %v492_v6 = vpop.f32.mrf.mxu1  ;;  %v577_v29 = vadd.f32 %v576_v27, %v571_v26  ;;  %3238 = vpow2.f32 %v639_v24 }
 0x261   :  { %v661_v34 = vmax.f32 %v660_v32, %v492_v6 }
 0x262   :  { %v2903_v31 = vpop.f32.mrf.mxu1  ;;  %v583_v23 = vadd.f32 %v582_v30, %v577_v29 }
 0x264   :  { %v497_v33 = vpop.f32.mrf.mxu1  ;;  %2934 = vmatmul.mubr.msk.f32.vlgmr.msra.gmra.mxu0 %vm115_vm1, %v583_v23 }
 0x265   :  { %2936 = vmatprep.mubr.msk.f32.mxu0 %vm3445_vm0, %v3444_v0  ;;  %v662_v38 = vmax.f32 %v661_v34, %v497_v33 }
 0x266   :  { %v2906_v35 = vpop.f32.mrf.mxu1 }
 0x268   :  { %v3806_v40 = vpop.eup %3228  ;;  %v502_v42 = vpop.f32.mrf.mxu1 }
 0x269   :  { %v3808_v43 = vpop.eup %3230  ;;  %v663_v44 = vmax.f32 %v662_v38, %v502_v42 }
 0x26a   :  { %v3810_v45 = vpop.eup %3232  ;;  %v641_v46 = vadd.f32 %v3808_v43, %v3806_v40  ;;  %v2909_v47 = vpop.f32.mrf.mxu1 }
 0x26b   :  { %v3235_v49 = vpop.eup %3234  ;;  %v664_v50 = vsub.f32 %v3783_v51, %v663_v44  ;;  %v667_v52 = vsub.f32 %v487_v18, %v663_v44  ;;  %v670_v53 = vsub.f32 %v492_v6, %v663_v44  ;;  %v673_v58 = vsub.f32 %v497_v33, %v663_v44 }
 0x26c   :  { %v642_v56 = vadd.f32 %v3810_v45, %v641_v46  ;;  %v507_v59 = vpop.f32.mrf.mxu1  ;;  %v608_v60 = vmul.f32 %v3235_v49, %v3770_v36  ;;  %v610_v63 = vmul.f32 %v3235_v49, %v3774_v39  ;;  %v3818_v1 = vpop.eup %3236  ;;  %v613_v57 = vmul.f32 %v3235_v49, %v3776_v41 }
 0x26d   :  { %v665_v2 = vmul.f32 1.442695, %v664_v50  ;;  %v668_v3 = vmul.f32 1.442695, %v667_v52  ;;  %v671_v55 = vmul.f32 1.442695, %v670_v53  ;;  %v676_v51 = vsub.f32 %v502_v42, %v663_v44  ;;  %v3823_v61 = vpop.eup %3238 }
 0x26e   :  { %v643_v9 = vadd.f32 %v3818_v1, %v642_v56  ;;  %v2912_v17 = vpop.f32.mrf.mxu1  ;;  %v609_v18 = vmul.f32 %v608_v60, %v3772_v37  ;;  %v611_v36 = vmul.f32 %v610_v63, %v3780_v48  ;;  %v616_v39 = vmul.f32 %v3235_v49, %v3785_v54 }
 0x26f   :  { %3240 = vpow2.f32 %v665_v2  ;;  %v674_v20 = vmul.f32 1.442695, %v673_v58  ;;  %v614_v25 = vmul.f32 %v613_v57, %v3787_v62  ;;  %v619_v26 = vmul.f32 %v3235_v49, %v3791_v5 }
 0x270   :  { %v644_v19 = vadd.f32 %v3823_v61, %v643_v9  ;;  %3242 = vpow2.f32 %v668_v3  ;;  %v512_v24 = vpop.f32.mrf.mxu1  ;;  %v612_v41 = vadd.f32 %v611_v36, %v609_v18  ;;  %v677_v27 = vmul.f32 1.442695, %v676_v51 }
 0x271   :  { %3244 = vpow2.f32 %v671_v55  ;;  %v617_v30 = vmul.f32 %v616_v39, %v3796_v22  ;;  %v620_v32 = vmul.f32 %v619_v26, %v3799_v28  ;;  %v698_v33 = vmax.f32 %v507_v59, %v512_v24 }
 0x272   :  { %3246 = vrcp.f32 %v644_v19  ;;  %v2915_v6 = vpop.f32.mrf.mxu1  ;;  %v615_v29 = vadd.f32 %v614_v25, %v612_v41 }
 0x273   :  { %3248 = vpow2.f32 %v674_v20 }
 0x274   :  { %v517_v31 = vpop.f32.mrf.mxu1  ;;  %v618_v54 = vadd.f32 %v617_v30, %v615_v29  ;;  %3250 = vpow2.f32 %v677_v27 }
 0x275   :  { %v699_v38 = vmax.f32 %v698_v33, %v517_v31 }
 0x276   :  { %v2918_v23 = vpop.f32.mrf.mxu1  ;;  %v621_v34 = vadd.f32 %v620_v32, %v618_v54 }
 0x278   :  { %v522_v35 = vpop.f32.mrf.mxu1  ;;  %2937 = vmatmul.mubr.msk.f32.gmra.mxu0 %vm115_vm1, %v621_v34 }
 0x279   :  { %2939 = vmatprep.mubr.msk.f32.mxu0 %vm3445_vm0, %v3444_v0  ;;  %v700_v42 = vmax.f32 %v699_v38, %v522_v35 }
 0x27a   :  { %v2921_v5 = vpop.f32.mrf.mxu1 }
 0x27c   :  { %v3241_v44 = vpop.eup %3240  ;;  %v527_v46 = vpop.f32.mrf.mxu1 }
 0x27d   :  { %v3243_v47 = vpop.eup %3242  ;;  %v701_v49 = vmax.f32 %v700_v42, %v527_v46 }
 0x27e   :  { %v3245_v50 = vpop.eup %3244  ;;  %v679_v52 = vadd.f32 %v3243_v47, %v3241_v44  ;;  %v2924_v53 = vpop.f32.mrf.mxu1 }
 0x27f   :  { %v3247_v56 = vpop.eup %3246  ;;  %v702_v58 = vsub.f32 %v507_v59, %v701_v49  ;;  %v705_v60 = vsub.f32 %v512_v24, %v701_v49  ;;  %v708_v63 = vsub.f32 %v517_v31, %v701_v49  ;;  %v711_v3 = vsub.f32 %v522_v35, %v701_v49 }
 0x280   :  { %v680_v2 = vadd.f32 %v3245_v50, %v679_v52  ;;  %v646_v55 = vmul.f32 %v3247_v56, %v3806_v40  ;;  %v648_v57 = vmul.f32 %v3247_v56, %v3808_v43  ;;  %v3249_v9 = vpop.eup %3248  ;;  %v651_v36 = vmul.f32 %v3247_v56, %v3810_v45 }
 0x281   :  { %v703_v51 = vmul.f32 1.442695, %v702_v58  ;;  %v706_v17 = vmul.f32 1.442695, %v705_v60  ;;  %v709_v18 = vmul.f32 1.442695, %v708_v63  ;;  %v714_v19 = vsub.f32 %v527_v46, %v701_v49  ;;  %v3251_v41 = vpop.eup %3250 }
 0x282   :  { %v681_v39 = vadd.f32 %v3249_v9, %v680_v2  ;;  %v647_v20 = vmul.f32 %v646_v55, %v3772_v37  ;;  %v649_v59 = vmul.f32 %v648_v57, %v3780_v48  ;;  %v654_v24 = vmul.f32 %v3247_v56, %v3818_v1 }
 0x283   :  { %3252 = vpow2.f32 %v703_v51  ;;  %v712_v40 = vmul.f32 1.442695, %v711_v3  ;;  %v652_v26 = vmul.f32 %v651_v36, %v3787_v62  ;;  %v657_v27 = vmul.f32 %v3247_v56, %v3823_v61 }
 0x284   :  { %v682_v25 = vadd.f32 %v3251_v41, %v681_v39  ;;  %3254 = vpow2.f32 %v706_v17  ;;  %v650_v43 = vadd.f32 %v649_v59, %v647_v20  ;;  %v715_v45 = vmul.f32 1.442695, %v714_v19 }
 0x285   :  { %3256 = vpow2.f32 %v709_v18  ;;  %v655_v29 = vmul.f32 %v654_v24, %v3796_v22  ;;  %v658_v31 = vmul.f32 %v657_v27, %v3799_v28 }
 0x286   :  { %3258 = vrcp.f32 %v682_v25  ;;  %v653_v6 = vadd.f32 %v652_v26, %v650_v43 }
 0x287   :  { %3260 = vpow2.f32 %v712_v40 }
 0x288   :  { %v656_v30 = vadd.f32 %v655_v29, %v653_v6  ;;  %3262 = vpow2.f32 %v715_v45 }
 0x28a   :  { %v659_v1 = vadd.f32 %v658_v31, %v656_v30 }
 0x28c   :  { %2940 = vmatmul.mubr.msk.f32.gmra.mxu0 %vm115_vm1, %v659_v1 }
 0x28d   :  { %2942 = vmatprep.mubr.msk.f32.mxu0 %vm3445_vm0, %v3444_v0 }
 0x290   :  { %v3253_v54 = vpop.eup %3252 }
 0x291   :  { %v3255_v32 = vpop.eup %3254 }
 0x292   :  { %v3257_v23 = vpop.eup %3256  ;;  %v717_v61 = vadd.f32 %v3255_v32, %v3253_v54 }
 0x293   :  { %v3259_v33 = vpop.eup %3258 }
 0x294   :  { %v718_v34 = vadd.f32 %v3257_v23, %v717_v61  ;;  %v684_v35 = vmul.f32 %v3259_v33, %v3241_v44  ;;  %v686_v38 = vmul.f32 %v3259_v33, %v3243_v47  ;;  %v689_v5 = vmul.f32 %v3259_v33, %v3245_v50  ;;  %v3261_v42 = vpop.eup %3260 }
 0x295   :  { %v692_v53 = vmul.f32 %v3259_v33, %v3249_v9  ;;  %v3263_v56 = vpop.eup %3262  ;;  %v695_v2 = vmul.f32 %v3259_v33, %v3251_v41 }
 0x296   :  { %v719_v46 = vadd.f32 %v3261_v42, %v718_v34  ;;  %v685_v49 = vmul.f32 %v684_v35, %v3772_v37  ;;  %v687_v52 = vmul.f32 %v686_v38, %v3780_v48  ;;  %v690_v63 = vmul.f32 %v689_v5, %v3787_v62 }
 0x297   :  { %v693_v55 = vmul.f32 %v692_v53, %v3796_v22  ;;  %v696_v47 = vmul.f32 %v695_v2, %v3799_v28 }
 0x298   :  { %v720_v58 = vadd.f32 %v3263_v56, %v719_v46  ;;  %v688_v60 = vadd.f32 %v687_v52, %v685_v49 }
 0x29a   :  { %3264 = vrcp.f32 %v720_v58  ;;  %v691_v3 = vadd.f32 %v690_v63, %v688_v60 }
 0x29c   :  { %v694_v44 = vadd.f32 %v693_v55, %v691_v3  ;;  %v100_v3 = vld [vmem:[%s4569_s5 + $0x10] sm:$0xff] }
 0x29e   :  { %v697_v50 = vadd.f32 %v696_v47, %v694_v44  ;;  %v99_v47 = vld [vmem:[%s4569_s5 + $0x8] sm:$0xff] }
 0x2a0   :  { %2943 = vmatmul.mubr.msk.f32.gmra.mxu0 %vm115_vm1, %v697_v50  ;;  %v98_v50 = vld [vmem:[%s4569_s5] sm:$0xff] }
 0x2a1   :  { %2945 = vmatprep.mubr.msk.f32.mxu0 %vm3445_vm0, %v3444_v0 }
 0x2a7   :  { %v3265_v57 = vpop.eup %3264 }
 0x2a8   :  { %v722_v9 = vmul.f32 %v3265_v57, %v3253_v54  ;;  %v724_v51 = vmul.f32 %v3265_v57, %v3255_v32  ;;  %v727_v17 = vmul.f32 %v3265_v57, %v3257_v23  ;;  %v730_v39 = vmul.f32 %v3265_v57, %v3261_v42 }
 0x2a9   :  { %v733_v41 = vmul.f32 %v3265_v57, %v3263_v56 }
 0x2aa   :  { %v723_v18 = vmul.f32 %v722_v9, %v3772_v37  ;;  %v725_v36 = vmul.f32 %v724_v51, %v3780_v48  ;;  %v728_v20 = vmul.f32 %v727_v17, %v3787_v62  ;;  %v731_v24 = vmul.f32 %v730_v39, %v3796_v22 }
 0x2ab   :  { %v734_v40 = vmul.f32 %v733_v41, %v3799_v28  ;;  %v739_v37 = vrot.slane %v3610_v21, %v3558_v11 }
 0x2ac   :  { %v726_v19 = vadd.f32 %v725_v36, %v723_v18 }
 0x2ae   :  { %v729_v59 = vadd.f32 %v728_v20, %v726_v19 }
 0x2b0   :  { %v732_v25 = vadd.f32 %v731_v24, %v729_v59 }
 0x2b2   :  { %v735_v43 = vadd.f32 %v734_v40, %v732_v25 }
 0x2b4   :  { %2946 = vmatmul.mubr.msk.f32.gmra.mxu0 %vm115_vm1, %v735_v43 }
 0x2b5   :  { %2956 = vmatprep.mubr.msk.f32.mxu0 %vm3445_vm0, %v3444_v0 }
 0x324   :  { %v821_v48 = vpop.f32.mrf.mxu0 }
 0x325   :  { %v822_v26 = vadd.f32 %v821_v48, %v739_v37  ;;  %v918_v48 = vsub.s32 4, %v3533_v4 }
 0x326   :  { %v2935_v27 = vpop.f32.mrf.mxu0 }
 0x327   :  { %v845_v62 = vadd.f32 %v822_v26, %v3546_v8  ;;  %v927_v26 = vsub.s32 5, %v3533_v4  ;;  %v3918_v27 = vrot.slane %v3610_v21, %v918_v48 }
 0x329   :  { %v850_v45 = vsel %vm115_vm1, %v845_v62, 0.0 }
 0x32a   :  { %851 = vadd.xlane.f32.xlu0 %v850_v45 }
 0x338   :  { %v826_v22 = vpop.f32.mrf.mxu0 }
 0x339   :  { %v827_v6 = vadd.f32 %v826_v22, %v739_v37  ;;  %v3923_v22 = vrot.slane %v3610_v21, %v927_v26  ;;  %v108_v21 = vld [vmem:[%s4570_s6 + $0x30] sm:$0xff] }
 0x33a   :  { %v2938_v28 = vpop.f32.mrf.mxu0 }
 0x33b   :  { %v846_v29 = vadd.f32 %v827_v6, %v3555_v10 }
 0x33d   :  { %v853_v30 = vsel %vm115_vm1, %v846_v29, 0.0 }
 0x33e   :  { %854 = vadd.xlane.f32.xlu1 %v853_v30 }
 0x34c   :  { %v831_v31 = vpop.f32.mrf.mxu0 }
 0x34d   :  { %v832_v1 = vadd.f32 %v831_v31, %v739_v37 }
 0x34e   :  { %v2941_v54 = vpop.f32.mrf.mxu0 }
 0x34f   :  { %v847_v32 = vadd.f32 %v832_v1, %v3566_v12  ;;  %v109_v1 = vld [vmem:[%s4570_s6 + $0x38] sm:$0xff]  ;;  %v107_v54 = vld [vmem:[%s4570_s6 + $0x28] sm:$0xff] }
 0x351   :  { %v856_v23 = vsel %vm115_vm1, %v847_v32, 0.0 }
 0x352   :  { %857 = vadd.xlane.f32.xlu0 %v856_v23  ;;  %v105_v23 = vld [vmem:[%s4570_s6 + $0x18] sm:$0xff] }
 0x360   :  { %v836_v8 = vpop.f32.mrf.mxu0 }
 0x361   :  { %v837_v61 = vadd.f32 %v836_v8, %v739_v37 }
 0x362   :  { %v2944_v33 = vpop.f32.mrf.mxu0 }
 0x363   :  { %v848_v34 = vadd.f32 %v837_v61, %v3576_v14 }
 0x365   :  { %v859_v35 = vsel %vm115_vm1, %v848_v34, 0.0 }
 0x366   :  { %860 = vadd.xlane.f32.xlu0 %v859_v35 }
 0x374   :  { %v841_v10 = vpop.f32.mrf.mxu0 }
 0x375   :  { %v842_v38 = vadd.f32 %v841_v10, %v739_v37 }
 0x376   :  { %v2947_v5 = vpop.f32.mrf.mxu0 }
 0x377   :  { %v849_v42 = vadd.f32 %v842_v38, %v3586_v16  ;;  %v101_v16 = vld [vmem:[%s4569_s5 + $0x18] sm:$0xff] }
 0x378   :  { %2949 = vmatpush3.msra.mxu0 %v101_v16 }
 0x379   :  { %v862_v46 = vsel %vm115_vm1, %v849_v42, 0.0  ;;  %2950 = vmatprep.subr.mxu0 %v3444_v0 }
 0x37a   :  { %863 = vadd.xlane.f32.xlu1 %v862_v46  ;;  %2951 = vmatpush3.msra.mxu0 %v100_v3  ;;  %v104_v3 = vld [vmem:[%s4570_s6 + $0x10] sm:$0xff] }
 0x37b   :  { %2952 = vmatprep.subr.mxu0 %v3444_v0 }
 0x37c   :  { %2953 = vmatpush3.msra.mxu0 %v99_v47 }
 0x37d   :  { %2954 = vmatprep.subr.mxu0 %v3444_v0 }
 0x37e   :  { %2955 = vmatpush3.msra.mxu0 %v98_v50 }
 0x37f   :  { %2971 = vmatprep.subr.mxu0 %v3444_v0 }
 0x3b3   :  { %v852_v12 = vpop.xlane.xlu0 %851 }
 0x3b4   :  { %v866_v49 = vmul.f32 0.03125, %v852_v12 }
 0x3b6   :  { %v871_v52 = vsub.f32 %v845_v62, %v866_v49 }
 0x3b8   :  { %v876_v53 = vmul.f32 %v871_v52, %v871_v52 }
 0x3ba   :  { %v881_v56 = vsel %vm115_vm1, %v876_v53, 0.0 }
 0x3bb   :  { %882 = vadd.xlane.f32.xlu0 %v881_v56 }
 0x3c7   :  { %v855_v58 = vpop.xlane.xlu1 %854 }
 0x3c8   :  { %v867_v14 = vmul.f32 0.03125, %v855_v58 }
 0x3ca   :  { %v3877_v60 = vsub.f32 %v846_v29, %v867_v14 }
 0x3cc   :  { %v877_v63 = vmul.f32 %v3877_v60, %v3877_v60 }
 0x3ce   :  { %v884_v2 = vsel %vm115_vm1, %v877_v63, 0.0 }
 0x3cf   :  { %885 = vadd.xlane.f32.xlu1 %v884_v2 }
 0x3db   :  { %v858_v55 = vpop.xlane.xlu0 %857 }
 0x3dc   :  { %v868_v44 = vmul.f32 0.03125, %v858_v55  ;;  %v103_v55 = vld [vmem:[%s4570_s6 + $0x8] sm:$0xff] }
 0x3de   :  { %v3896_v57 = vsub.f32 %v847_v32, %v868_v44  ;;  %v106_v32 = vld [vmem:[%s4570_s6 + $0x20] sm:$0xff] }
 0x3df   :  { %v102_v44 = vld [vmem:[%s4570_s6] sm:$0xff] }
 0x3e0   :  { %v878_v9 = vmul.f32 %v3896_v57, %v3896_v57 }
 0x3e2   :  { %v887_v51 = vsel %vm115_vm1, %v878_v9, 0.0 }
 0x3e3   :  { %888 = vadd.xlane.f32.xlu0 %v887_v51  ;;  %v4001_v51 = vld [vmem:[#allocation5] sm:$0xff] }
 0x3ef   :  { %v861_v17 = vpop.xlane.xlu0 %860 }
 0x3f0   :  { %v869_v18 = vmul.f32 0.03125, %v861_v17  ;;  %v937_v17 = vrot.slane %v4001_v51, %v3569_v13 }
 0x3f2   :  { %v3903_v36 = vsub.f32 %v848_v34, %v869_v18 }
 0x3f4   :  { %v879_v39 = vmul.f32 %v3903_v36, %v3903_v36 }
 0x3f6   :  { %v890_v19 = vsel %vm115_vm1, %v879_v39, 0.0 }
 0x3f7   :  { %891 = vadd.xlane.f32.xlu1 %v890_v19 }
 0x403   :  { %v864_v20 = vpop.xlane.xlu1 %863 }
 0x404   :  { %v870_v41 = vmul.f32 0.03125, %v864_v20 }
 0x406   :  { %v3908_v59 = vsub.f32 %v849_v42, %v870_v41 }
 0x408   :  { %v880_v24 = vmul.f32 %v3908_v59, %v3908_v59 }
 0x40a   :  { %v893_v25 = vsel %vm115_vm1, %v880_v24, 0.0 }
 0x40b   :  { %894 = vadd.xlane.f32.xlu0 %v893_v25 }
 0x444   :  { %v883_v40 = vpop.xlane.xlu0 %882 }
 0x445   :  { %v896_v43 = vmul.f32 0.03125, %v883_v40 }
 0x447   :  { %v901_v37 = vadd.f32 1e-05, %v896_v43 }
 0x449   :  { %3266 = vrsqrt.f32 %v901_v37 }
 0x456   :  { %v3267_v62 = vpop.eup %3266 }
 0x457   :  { %v911_v45 = vmul.f32 %v3267_v62, %v871_v52 }
 0x458   :  { %v886_v6 = vpop.xlane.xlu1 %885 }
 0x459   :  { %v920_v28 = vmul.f32 %v3918_v27, %v911_v45  ;;  %v897_v29 = vmul.f32 0.03125, %v886_v6 }
 0x45b   :  { %v902_v30 = vadd.f32 1e-05, %v897_v29  ;;  %v3927_v31 = vadd.f32 %v3923_v22, %v920_v28 }
 0x45d   :  { %3268 = vrsqrt.f32 %v902_v30  ;;  %2957 = vmatmul.mubr.msk.f32.vlgmr.msra.gmra.mxu0 %vm115_vm1, %v3927_v31 }
 0x45e   :  { %2959 = vmatprep.mubr.msk.f32.mxu0 %vm3445_vm0, %v3444_v0  ;;  %2972 = vmatpush3.msra.mxu0 %v109_v1  ;;  %v1051_v1 = vrot.slane %v4001_v51, %v3579_v15 }
 0x45f   :  { %2973 = vmatprep.subr.mxu0 %v3444_v0 }
 0x460   :  { %2974 = vmatpush3.msra.mxu0 %v108_v21 }
 0x461   :  { %2975 = vmatprep.subr.mxu0 %v3444_v0 }
 0x462   :  { %2976 = vmatpush3.msra.mxu0 %v107_v54 }
 0x463   :  { %2977 = vmatprep.subr.mxu0 %v3444_v0 }
 0x464   :  { %2978 = vmatpush3.msra.mxu0 %v106_v32 }
 0x465   :  { %2979 = vmatprep.subr.mxu0 %v3444_v0 }
 0x466   :  { %2980 = vmatpush3.msra.mxu0 %v105_v23 }
 0x467   :  { %2981 = vmatprep.subr.mxu0 %v3444_v0 }
 0x468   :  { %2982 = vmatpush3.msra.mxu0 %v104_v3 }
 0x469   :  { %2983 = vmatprep.subr.mxu0 %v3444_v0 }
 0x46a   :  { %v3269_v8 = vpop.eup %3268  ;;  %2984 = vmatpush3.msra.mxu0 %v103_v55 }
 0x46b   :  { %v912_v61 = vmul.f32 %v3269_v8, %v3877_v60  ;;  %2985 = vmatprep.subr.mxu0 %v3444_v0 }
 0x46c   :  { %v889_v33 = vpop.xlane.xlu0 %888  ;;  %2986 = vmatpush3.msra.mxu0 %v102_v44 }
 0x46d   :  { %v898_v34 = vmul.f32 0.03125, %v889_v33  ;;  %v921_v35 = vmul.f32 %v3918_v27, %v912_v61  ;;  %3002 = vmatprep.subr.mxu0 %v3444_v0 }
 0x46f   :  { %v903_v10 = vadd.f32 1e-05, %v898_v34  ;;  %v3956_v38 = vadd.f32 %v3923_v22, %v921_v35 }
 0x471   :  { %3270 = vrsqrt.f32 %v903_v10  ;;  %2960 = vmatmul.mubr.msk.f32.gmra.mxu0 %vm115_vm1, %v3956_v38 }
 0x472   :  { %2962 = vmatprep.mubr.msk.f32.mxu0 %vm3445_vm0, %v3444_v0 }
 0x47e   :  { %v3271_v5 = vpop.eup %3270 }
 0x47f   :  { %v913_v46 = vmul.f32 %v3271_v5, %v3896_v57 }
 0x480   :  { %v892_v42 = vpop.xlane.xlu1 %891 }
 0x481   :  { %v899_v12 = vmul.f32 0.03125, %v892_v42  ;;  %v922_v49 = vmul.f32 %v3918_v27, %v913_v46 }
 0x483   :  { %v904_v52 = vadd.f32 1e-05, %v899_v12  ;;  %v3965_v53 = vadd.f32 %v3923_v22, %v922_v49 }
 0x485   :  { %3272 = vrsqrt.f32 %v904_v52  ;;  %2963 = vmatmul.mubr.msk.f32.gmra.mxu0 %vm115_vm1, %v3965_v53 }
 0x486   :  { %2965 = vmatprep.mubr.msk.f32.mxu0 %vm3445_vm0, %v3444_v0 }
 0x492   :  { %v3273_v56 = vpop.eup %3272 }
 0x493   :  { %v914_v58 = vmul.f32 %v3273_v56, %v3903_v36 }
 0x494   :  { %v895_v14 = vpop.xlane.xlu0 %894 }
 0x495   :  { %v900_v60 = vmul.f32 0.03125, %v895_v14  ;;  %v923_v63 = vmul.f32 %v3918_v27, %v914_v58 }
 0x497   :  { %v905_v2 = vadd.f32 1e-05, %v900_v60  ;;  %v3974_v16 = vadd.f32 %v3923_v22, %v923_v63 }
 0x499   :  { %3274 = vrsqrt.f32 %v905_v2  ;;  %2966 = vmatmul.mubr.msk.f32.gmra.mxu0 %vm115_vm1, %v3974_v16 }
 0x49a   :  { %2968 = vmatprep.mubr.msk.f32.mxu0 %vm3445_vm0, %v3444_v0 }
 0x4a6   :  { %v3275_v47 = vpop.eup %3274 }
 0x4a7   :  { %v915_v50 = vmul.f32 %v3275_v47, %v3908_v59 }
 0x4a9   :  { %v924_v57 = vmul.f32 %v3918_v27, %v915_v50 }
 0x4ab   :  { %v3995_v9 = vadd.f32 %v3923_v22, %v924_v57 }
 0x4ad   :  { %2969 = vmatmul.mubr.msk.f32.gmra.mxu0 %vm115_vm1, %v3995_v9 }
 0x4ae   :  { %2987 = vmatprep.mubr.msk.f32.mxu0 %vm3445_vm0, %v3444_v0 }
 0x51d   :  { %v1019_v18 = vpop.f32.mrf.mxu0 }
 0x51e   :  { %v1020_v36 = vadd.f32 %v1019_v18, %v937_v17 }
 0x51f   :  { %v2958_v39 = vpop.f32.mrf.mxu0 }
 0x520   :  { %v1043_v19 = vmax.f32 %v1020_v36, 0.0  ;;  %v2610_v39 = vld [vmem:[%s4567_s3 + $0x30] sm:$0xff] }
 0x522   :  { %2988 = vmatmul.mubr.msk.f32.vlgmr.msra.gmra.mxu0 %vm1052_vm2, %v1043_v19 }
 0x523   :  { %2990 = vmatprep.mubr.msk.f32.mxu0 %vm3445_vm0, %v3444_v0 }
 0x531   :  { %v1024_v20 = vpop.f32.mrf.mxu0 }
 0x532   :  { %v1025_v41 = vadd.f32 %v1024_v20, %v937_v17 }
 0x533   :  { %v2961_v59 = vpop.f32.mrf.mxu0 }
 0x534   :  { %v1044_v24 = vmax.f32 %v1025_v41, 0.0  ;;  %v2609_v41 = vld [vmem:[%s4567_s3 + $0x28] sm:$0xff]  ;;  %v2608_v59 = vld [vmem:[%s4567_s3 + $0x20] sm:$0xff] }
 0x536   :  { %2991 = vmatmul.mubr.msk.f32.gmra.mxu0 %vm1052_vm2, %v1044_v24 }
 0x537   :  { %2993 = vmatprep.mubr.msk.f32.mxu0 %vm3445_vm0, %v3444_v0 }
 0x545   :  { %v1029_v25 = vpop.f32.mrf.mxu0 }
 0x546   :  { %v1030_v40 = vadd.f32 %v1029_v25, %v937_v17 }
 0x547   :  { %v2964_v43 = vpop.f32.mrf.mxu0 }
 0x548   :  { %v1045_v37 = vmax.f32 %v1030_v40, 0.0 }
 0x54a   :  { %2994 = vmatmul.mubr.msk.f32.gmra.mxu0 %vm1052_vm2, %v1045_v37 }
 0x54b   :  { %2996 = vmatprep.mubr.msk.f32.mxu0 %vm3445_vm0, %v3444_v0 }
 0x559   :  { %v1034_v27 = vpop.f32.mrf.mxu0 }
 0x55a   :  { %v1035_v62 = vadd.f32 %v1034_v27, %v937_v17 }
 0x55b   :  { %v2967_v45 = vpop.f32.mrf.mxu0 }
 0x55c   :  { %v1046_v22 = vmax.f32 %v1035_v62, 0.0 }
 0x55e   :  { %2997 = vmatmul.mubr.msk.f32.gmra.mxu0 %vm1052_vm2, %v1046_v22 }
 0x55f   :  { %2999 = vmatprep.mubr.msk.f32.mxu0 %vm3445_vm0, %v3444_v0 }
 0x56d   :  { %v1039_v6 = vpop.f32.mrf.mxu0 }
 0x56e   :  { %v1040_v28 = vadd.f32 %v1039_v6, %v937_v17 }
 0x56f   :  { %v2970_v29 = vpop.f32.mrf.mxu0 }
 0x570   :  { %v1047_v30 = vmax.f32 %v1040_v28, 0.0 }
 0x572   :  { %3000 = vmatmul.mubr.msk.f32.gmra.mxu0 %vm1052_vm2, %v1047_v30 }
 0x573   :  { %3010 = vmatprep.mubr.msk.f32.mxu0 %vm3445_vm0, %v3444_v0 }
 0x5e2   :  { %v1134_v21 = vpop.f32.mrf.mxu0 }
 0x5e3   :  { %v1135_v54 = vadd.f32 %v1134_v21, %v1051_v1 }
 0x5e4   :  { %v2989_v32 = vpop.f32.mrf.mxu0 }
 0x5e5   :  { %v1158_v23 = vadd.f32 %v1135_v54, %v3927_v31  ;;  %v1230_v32 = vsub.s32 6, %v3533_v4 }
 0x5e7   :  { %v1163_v8 = vsel %vm115_vm1, %v1158_v23, 0.0 }
 0x5e8   :  { %1164 = vadd.xlane.f32.xlu1 %v1163_v8  ;;  %v1231_v8 = vrot.slane %v4001_v51, %v1230_v32 }
 0x5f6   :  { %v1139_v61 = vpop.f32.mrf.mxu0 }
 0x5f7   :  { %v1140_v33 = vadd.f32 %v1139_v61, %v1051_v1 }
 0x5f8   :  { %v2992_v34 = vpop.f32.mrf.mxu0 }
 0x5f9   :  { %v1159_v35 = vadd.f32 %v1140_v33, %v3956_v38 }
 0x5fb   :  { %v1166_v10 = vsel %vm115_vm1, %v1159_v35, 0.0 }
 0x5fc   :  { %1167 = vadd.xlane.f32.xlu0 %v1166_v10 }
 0x60a   :  { %v1144_v5 = vpop.f32.mrf.mxu0 }
 0x60b   :  { %v1145_v42 = vadd.f32 %v1144_v5, %v1051_v1 }
 0x60c   :  { %v2995_v46 = vpop.f32.mrf.mxu0 }
 0x60d   :  { %v1160_v12 = vadd.f32 %v1145_v42, %v3965_v53 }
 0x60f   :  { %v1169_v49 = vsel %vm115_vm1, %v1160_v12, 0.0 }
 0x610   :  { %1170 = vadd.xlane.f32.xlu1 %v1169_v49  ;;  %v3371_v49 = vld [vmem:[%s4566_s2 + $0x8] sm:$0xff] }
 0x61e   :  { %v1149_v31 = vpop.f32.mrf.mxu0 }
 0x61f   :  { %v1150_v52 = vadd.f32 %v1149_v31, %v1051_v1  ;;  %v3372_v31 = vld [vmem:[%s4566_s2] sm:$0xff] }
 0x620   :  { %v2998_v56 = vpop.f32.mrf.mxu0 }
 0x621   :  { %v1161_v58 = vadd.f32 %v1150_v52, %v3974_v16 }
 0x623   :  { %v1172_v14 = vsel %vm115_vm1, %v1161_v58, 0.0 }
 0x624   :  { %1173 = vadd.xlane.f32.xlu0 %v1172_v14 }
 0x632   :  { %v1154_v38 = vpop.f32.mrf.mxu0 }
 0x633   :  { %v1155_v60 = vadd.f32 %v1154_v38, %v1051_v1 }
 0x634   :  { %v3001_v63 = vpop.f32.mrf.mxu0 }
 0x635   :  { %v1162_v2 = vadd.f32 %v1155_v60, %v3995_v9  ;;  %v2611_v9 = vld [vmem:[%s4567_s3 + $0x38] sm:$0xff] }
 0x636   :  { %3003 = vmatpush3.msra.mxu0 %v2611_v9 }
 0x637   :  { %v1175_v3 = vsel %vm115_vm1, %v1162_v2, 0.0  ;;  %3004 = vmatprep.subr.mxu0 %v3444_v0 }
 0x638   :  { %1176 = vadd.xlane.f32.xlu1 %v1175_v3  ;;  %3005 = vmatpush3.msra.mxu0 %v2610_v39 }
 0x639   :  { %3006 = vmatprep.subr.mxu0 %v3444_v0 }
 0x63a   :  { %3007 = vmatpush3.msra.mxu0 %v2609_v41 }
 0x63b   :  { %3008 = vmatprep.subr.mxu0 %v3444_v0 }
 0x63c   :  { %3009 = vmatpush3.msra.mxu0 %v2608_v59 }
 0x63d   :  { %3025 = vmatprep.subr.mxu0 %v3444_v0 }
 0x671   :  { %v1165_v53 = vpop.xlane.xlu1 %1164 }
 0x672   :  { %v1178_v55 = vmul.f32 0.03125, %v1165_v53 }
 0x674   :  { %v1183_v44 = vsub.f32 %v1158_v23, %v1178_v55  ;;  %v1239_v23 = vsub.s32 7, %v3533_v4 }
 0x676   :  { %v1188_v47 = vmul.f32 %v1183_v44, %v1183_v44  ;;  %v1240_v34 = vrot.slane %v4001_v51, %v1239_v23  ;;  %v3370_v51 = vld [vmem:[%s4566_s2 + $0x10] sm:$0xff] }
 0x678   :  { %v1193_v50 = vsel %vm115_vm1, %v1188_v47, 0.0 }
 0x679   :  { %1194 = vadd.xlane.f32.xlu0 %v1193_v50 }
 0x685   :  { %v1168_v57 = vpop.xlane.xlu0 %1167 }
 0x686   :  { %v1179_v16 = vmul.f32 0.03125, %v1168_v57 }
 0x688   :  { %v4033_v17 = vsub.f32 %v1159_v35, %v1179_v16 }
 0x68a   :  { %v1189_v18 = vmul.f32 %v4033_v17, %v4033_v17 }
 0x68c   :  { %v1196_v36 = vsel %vm115_vm1, %v1189_v18, 0.0 }
 0x68d   :  { %1197 = vadd.xlane.f32.xlu1 %v1196_v36 }
 0x699   :  { %v1171_v19 = vpop.xlane.xlu1 %1170 }
 0x69a   :  { %v1180_v20 = vmul.f32 0.03125, %v1171_v19 }
 0x69c   :  { %v1185_v24 = vsub.f32 %v1160_v12, %v1180_v20  ;;  %v3369_v12 = vld [vmem:[%s4566_s2 + $0x18] sm:$0xff] }
 0x69e   :  { %v1190_v25 = vmul.f32 %v1185_v24, %v1185_v24 }
 0x6a0   :  { %v1199_v40 = vsel %vm115_vm1, %v1190_v25, 0.0 }
 0x6a1   :  { %1200 = vadd.xlane.f32.xlu0 %v1199_v40 }
 0x6ad   :  { %v1174_v43 = vpop.xlane.xlu0 %1173 }
 0x6ae   :  { %v1181_v37 = vmul.f32 0.03125, %v1174_v43 }
 0x6b0   :  { %v1186_v27 = vsub.f32 %v1161_v58, %v1181_v37 }
 0x6b2   :  { %v1191_v62 = vmul.f32 %v1186_v27, %v1186_v27 }
 0x6b4   :  { %v1202_v45 = vsel %vm115_vm1, %v1191_v62, 0.0 }
 0x6b5   :  { %1203 = vadd.xlane.f32.xlu1 %v1202_v45 }
 0x6c1   :  { %v1177_v22 = vpop.xlane.xlu1 %1176 }
 0x6c2   :  { %v1182_v6 = vmul.f32 0.03125, %v1177_v22 }
 0x6c4   :  { %v4056_v28 = vsub.f32 %v1162_v2, %v1182_v6 }
 0x6c6   :  { %v1192_v29 = vmul.f32 %v4056_v28, %v4056_v28 }
 0x6c8   :  { %v1205_v30 = vsel %vm115_vm1, %v1192_v29, 0.0 }
 0x6c9   :  { %1206 = vadd.xlane.f32.xlu0 %v1205_v30 }
 0x702   :  { %v1195_v1 = vpop.xlane.xlu0 %1194 }
 0x703   :  { %v1208_v21 = vmul.f32 0.03125, %v1195_v1 }
 0x705   :  { %v1213_v54 = vadd.f32 1e-05, %v1208_v21 }
 0x707   :  { %3276 = vrsqrt.f32 %v1213_v54 }
 0x714   :  { %v3277_v61 = vpop.eup %3276 }
 0x715   :  { %v1223_v33 = vmul.f32 %v3277_v61, %v1183_v44 }
 0x716   :  { %v1198_v35 = vpop.xlane.xlu1 %1197 }
 0x717   :  { %v1232_v10 = vmul.f32 %v1231_v8, %v1223_v33  ;;  %v1209_v5 = vmul.f32 0.03125, %v1198_v35 }
 0x719   :  { %v1214_v42 = vadd.f32 1e-05, %v1209_v5  ;;  %v4069_v46 = vadd.f32 %v1240_v34, %v1232_v10 }
 0x71b   :  { %3278 = vrsqrt.f32 %v1214_v42  ;;  %3011 = vmatmul.mubr.msk.f32.vlgmr.msra.gmra.mxu0 %vm115_vm1, %v4069_v46 }
 0x71c   :  { %3013 = vmatprep.mubr.msk.f32.mxu0 %vm3445_vm0, %v3444_v0  ;;  %3026 = vmatpush3.msra.mxu0 %v3369_v12 }
 0x71d   :  { %3027 = vmatprep.subr.mxu0 %v3444_v0 }
 0x71e   :  { %3028 = vmatpush3.msra.mxu0 %v3370_v51 }
 0x71f   :  { %3029 = vmatprep.subr.mxu0 %v3444_v0 }
 0x720   :  { %3030 = vmatpush3.msra.mxu0 %v3371_v49 }
 0x721   :  { %3031 = vmatprep.subr.mxu0 %v3444_v0 }
 0x722   :  { %3032 = vmatpush3.msra.mxu0 %v3372_v31 }
 0x728   :  { %v3279_v52 = vpop.eup %3278 }
 0x729   :  { %v1224_v56 = vmul.f32 %v3279_v52, %v4033_v17 }
 0x72a   :  { %v1201_v58 = vpop.xlane.xlu0 %1200 }
 0x72b   :  { %v1210_v14 = vmul.f32 0.03125, %v1201_v58  ;;  %v1233_v38 = vmul.f32 %v1231_v8, %v1224_v56 }
 0x72d   :  { %v1215_v60 = vadd.f32 1e-05, %v1210_v14  ;;  %v4091_v63 = vadd.f32 %v1240_v34, %v1233_v38 }
 0x72f   :  { %3280 = vrsqrt.f32 %v1215_v60  ;;  %3014 = vmatmul.mubr.msk.f32.gmra.mxu0 %vm115_vm1, %v4091_v63 }
 0x730   :  { %3016 = vmatprep.mubr.msk.f32.mxu0 %vm3445_vm0, %v3444_v0 }
 0x73c   :  { %v3281_v2 = vpop.eup %3280 }
 0x73d   :  { %v1225_v53 = vmul.f32 %v3281_v2, %v1185_v24  ;;  %v4116_v24 = vld [vmem:[#allocation5 + $0x8] sm:$0xff] }
 0x73e   :  { %v1204_v3 = vpop.xlane.xlu1 %1203  ;;  %v1275_v25 = vrot.slane %v4116_v24, %v3544_v7 }
 0x73f   :  { %v1211_v55 = vmul.f32 0.03125, %v1204_v3  ;;  %v1234_v44 = vmul.f32 %v1231_v8, %v1225_v53 }
 0x741   :  { %v1216_v47 = vadd.f32 1e-05, %v1211_v55  ;;  %v4097_v50 = vadd.f32 %v1240_v34, %v1234_v44 }
 0x743   :  { %3282 = vrsqrt.f32 %v1216_v47  ;;  %3017 = vmatmul.mubr.msk.f32.gmra.mxu0 %vm115_vm1, %v4097_v50 }
 0x744   :  { %3019 = vmatprep.mubr.msk.f32.mxu0 %vm3445_vm0, %v3444_v0 }
 0x750   :  { %v3283_v57 = vpop.eup %3282 }
 0x751   :  { %v1226_v16 = vmul.f32 %v3283_v57, %v1186_v27 }
 0x752   :  { %v1207_v17 = vpop.xlane.xlu0 %1206 }
 0x753   :  { %v1212_v18 = vmul.f32 0.03125, %v1207_v17  ;;  %v1235_v36 = vmul.f32 %v1231_v8, %v1226_v16 }
 0x755   :  { %v1217_v9 = vadd.f32 1e-05, %v1212_v18  ;;  %v4103_v39 = vadd.f32 %v1240_v34, %v1235_v36 }
 0x757   :  { %3284 = vrsqrt.f32 %v1217_v9  ;;  %3020 = vmatmul.mubr.msk.f32.gmra.mxu0 %vm115_vm1, %v4103_v39 }
 0x758   :  { %3022 = vmatprep.mubr.msk.f32.mxu0 %vm3445_vm0, %v3444_v0 }
 0x764   :  { %v3285_v19 = vpop.eup %3284 }
 0x765   :  { %v1227_v20 = vmul.f32 %v3285_v19, %v4056_v28 }
 0x767   :  { %v1236_v41 = vmul.f32 %v1231_v8, %v1227_v20  ;;  %v2615_v20 = vld [vmem:[%s4568_s4 + $0x38] sm:$0xff] }
 0x768   :  { %3109 = vmatpush3.msra.mxu1 %v2615_v20 }
 0x769   :  { %v4110_v59 = vadd.f32 %v1240_v34, %v1236_v41  ;;  %3110 = vmatprep.subr.mxu1 %v3444_v0 }
 0x76b   :  { %3023 = vmatmul.mubr.msk.f32.gmra.mxu0 %vm115_vm1, %v4110_v59 }
 0x76c   :  { %3033 = vmatprep.mubr.msk.f32.mxu0 %vm3445_vm0, %v3444_v0 }
 0x7db   :  { %v1357_v40 = vpop.f32.mrf.mxu0 }
 0x7dc   :  { %v1358_v43 = vadd.f32 %v1357_v40, %v1275_v25  ;;  %v2614_v40 = vld [vmem:[%s4568_s4 + $0x30] sm:$0xff] }
 0x7dd   :  { %v3012_v37 = vpop.f32.mrf.mxu0  ;;  %3111 = vmatpush3.msra.mxu1 %v2614_v40 }
 0x7de   :  { %1382 = vrot.lane.b32.xlu1 %v1358_v43, %s3446_s30  ;;  %3112 = vmatprep.subr.mxu1 %v3444_v0  ;;  %v2612_v37 = vld [vmem:[%s4568_s4 + $0x20] sm:$0xff] }
 0x7ef   :  { %v1362_v27 = vpop.f32.mrf.mxu0 }
 0x7f0   :  { %v1363_v62 = vadd.f32 %v1362_v27, %v1275_v25 }
 0x7f1   :  { %v3015_v45 = vpop.f32.mrf.mxu0 }
 0x7f2   :  { %1387 = vrot.lane.b32.xlu0 %v1363_v62, %s3446_s30 }
 0x803   :  { %v1367_v22 = vpop.f32.mrf.mxu0 }
 0x804   :  { %v4122_v6 = vadd.f32 %v1367_v22, %v1275_v25 }
 0x805   :  { %v3018_v28 = vpop.f32.mrf.mxu0 }
 0x806   :  { %1392 = vrot.lane.b32.xlu1 %v4122_v6, %s3446_s30 }
 0x817   :  { %v1372_v29 = vpop.f32.mrf.mxu0 }
 0x818   :  { %v4126_v30 = vadd.f32 %v1372_v29, %v1275_v25 }
 0x819   :  { %v3021_v1 = vpop.f32.mrf.mxu0 }
 0x81a   :  { %1397 = vrot.lane.b32.xlu1 %v4126_v30, %s3446_s30 }
 0x81e   :  { %1716 = vrot.lane.b32.xlu1 %v1358_v43, %s3447_s13 }
 0x822   :  { %1727 = vrot.lane.b32.xlu1 %v4122_v6, %s3447_s13 }
 0x82b   :  { %v1377_v21 = vpop.f32.mrf.mxu0 }
 0x82c   :  { %v4133_v54 = vadd.f32 %v1377_v21, %v1275_v25 }
 0x82d   :  { %v3024_v8 = vpop.f32.mrf.mxu0 }
 0x82e   :  { %1739 = vrot.lane.b32.xlu1 %v4133_v54, %s3447_s13  ;;  %1402 = vrot.lane.b32.xlu0 %v4133_v54, %s3446_s30 }
 0x832   :  { %1721 = vrot.lane.b32.xlu0 %v1363_v62, %s3447_s13 }
 0x836   :  { %1733 = vrot.lane.b32.xlu0 %v4126_v30, %s3447_s13 }
 0x850   :  { %v4142_v61 = vpop.permute.xlu1 %1382 }
 0x851   :  { %v1385_v33 = vmul.f32 %v4142_v61, %v1358_v43  ;;  %v1406_v31 = vmul.f32 %v4142_v61, %v1363_v62  ;;  %v1411_v38 = vmul.f32 %v4142_v61, %v4122_v6  ;;  %v1416_v55 = vmul.f32 %v4142_v61, %v4126_v30 }
 0x852   :  { %v1421_v17 = vmul.f32 %v4142_v61, %v4133_v54 }
 0x853   :  { %3034 = vmatmul.mubr.msk.f32.vlgmr.msra.gmra.mxu0 %vm115_vm1, %v1385_v33 }
 0x854   :  { %3036 = vmatprep.mubr.msk.f32.mxu0 %vm3445_vm0, %v3444_v0 }
 0x864   :  { %v4148_v34 = vpop.permute.xlu0 %1387 }
 0x865   :  { %v1390_v35 = vmul.f32 %v4148_v34, %v1358_v43  ;;  %v1407_v52 = vmul.f32 %v4148_v34, %v1363_v62  ;;  %v1412_v60 = vmul.f32 %v4148_v34, %v4122_v6  ;;  %v1417_v44 = vmul.f32 %v4148_v34, %v4126_v30 }
 0x866   :  { %v1422_v18 = vmul.f32 %v4148_v34, %v4133_v54 }
 0x867   :  { %3037 = vmatmul.mubr.msk.f32.gmra.mxu0 %vm115_vm1, %v1390_v35 }
 0x868   :  { %3039 = vmatprep.mubr.msk.f32.mxu0 %vm3445_vm0, %v3444_v0 }
 0x878   :  { %v4154_v10 = vpop.permute.xlu1 %1392 }
 0x879   :  { %v1395_v5 = vmul.f32 %v4154_v10, %v1358_v43  ;;  %v1408_v56 = vmul.f32 %v4154_v10, %v1363_v62  ;;  %v1413_v2 = vmul.f32 %v4154_v10, %v4122_v6  ;;  %v1418_v47 = vmul.f32 %v4154_v10, %v4126_v30 }
 0x87a   :  { %v1423_v36 = vmul.f32 %v4154_v10, %v4133_v54 }
 0x87b   :  { %3040 = vmatmul.mubr.msk.f32.gmra.mxu0 %vm115_vm1, %v1395_v5 }
 0x87c   :  { %3042 = vmatprep.mubr.msk.f32.mxu0 %vm3445_vm0, %v3444_v0 }
 0x88c   :  { %v1398_v42 = vpop.permute.xlu1 %1397 }
 0x88d   :  { %v1400_v12 = vmul.f32 %v1398_v42, %v1358_v43  ;;  %v1409_v58 = vmul.f32 %v1398_v42, %v1363_v62  ;;  %v1414_v3 = vmul.f32 %v1398_v42, %v4122_v6  ;;  %v1419_v57 = vmul.f32 %v1398_v42, %v4126_v30 }
 0x88e   :  { %v1424_v9 = vmul.f32 %v1398_v42, %v4133_v54 }
 0x88f   :  { %3043 = vmatmul.mubr.msk.f32.gmra.mxu0 %vm115_vm1, %v1400_v12 }
 0x890   :  { %3045 = vmatprep.mubr.msk.f32.mxu0 %vm3445_vm0, %v3444_v0 }
 0x8a0   :  { %v1403_v51 = vpop.permute.xlu0 %1402 }
 0x8a1   :  { %v1405_v49 = vmul.f32 %v1403_v51, %v1358_v43  ;;  %v1410_v14 = vmul.f32 %v1403_v51, %v1363_v62  ;;  %v1415_v53 = vmul.f32 %v1403_v51, %v4122_v6  ;;  %v1420_v16 = vmul.f32 %v1403_v51, %v4126_v30  ;;  %v2613_v43 = vld [vmem:[%s4568_s4 + $0x28] sm:$0xff] }
 0x8a2   :  { %v1425_v19 = vmul.f32 %v1403_v51, %v4133_v54  ;;  %3113 = vmatpush3.msra.mxu1 %v2613_v43 }
 0x8a3   :  { %3046 = vmatmul.mubr.msk.f32.gmra.mxu0 %vm115_vm1, %v1405_v49  ;;  %3114 = vmatprep.subr.mxu1 %v3444_v0 }
 0x8a4   :  { %3048 = vmatprep.mubr.msk.f32.mxu0 %vm3445_vm0, %v3444_v0  ;;  %3115 = vmatpush3.msra.mxu1 %v2612_v37 }
 0x8a5   :  { %3131 = vmatprep.subr.mxu1 %v3444_v0 }
 0x8a7   :  { %3049 = vmatmul.mubr.msk.f32.gmra.mxu0 %vm115_vm1, %v1406_v31 }
 0x8a8   :  { %3051 = vmatprep.mubr.msk.f32.mxu0 %vm3445_vm0, %v3444_v0 }
 0x8ab   :  { %3052 = vmatmul.mubr.msk.f32.gmra.mxu0 %vm115_vm1, %v1407_v52 }
 0x8ac   :  { %3054 = vmatprep.mubr.msk.f32.mxu0 %vm3445_vm0, %v3444_v0 }
 0x8af   :  { %3055 = vmatmul.mubr.msk.f32.gmra.mxu0 %vm115_vm1, %v1408_v56 }
 0x8b0   :  { %3057 = vmatprep.mubr.msk.f32.mxu0 %vm3445_vm0, %v3444_v0 }
 0x8b3   :  { %3058 = vmatmul.mubr.msk.f32.gmra.mxu0 %vm115_vm1, %v1409_v58 }
 0x8b4   :  { %3060 = vmatprep.mubr.msk.f32.mxu0 %vm3445_vm0, %v3444_v0 }
 0x8b7   :  { %3061 = vmatmul.mubr.msk.f32.gmra.mxu0 %vm115_vm1, %v1410_v14 }
 0x8b8   :  { %3063 = vmatprep.mubr.msk.f32.mxu0 %vm3445_vm0, %v3444_v0 }
 0x8bb   :  { %3064 = vmatmul.mubr.msk.f32.gmra.mxu0 %vm115_vm1, %v1411_v38 }
 0x8bc   :  { %3066 = vmatprep.mubr.msk.f32.mxu0 %vm3445_vm0, %v3444_v0 }
 0x8bf   :  { %3067 = vmatmul.mubr.msk.f32.gmra.mxu0 %vm115_vm1, %v1412_v60 }
 0x8c0   :  { %3069 = vmatprep.mubr.msk.f32.mxu0 %vm3445_vm0, %v3444_v0 }
 0x8c3   :  { %3070 = vmatmul.mubr.msk.f32.gmra.mxu0 %vm115_vm1, %v1413_v2 }
 0x8c4   :  { %3072 = vmatprep.mubr.msk.f32.mxu0 %vm3445_vm0, %v3444_v0 }
 0x8c7   :  { %3073 = vmatmul.mubr.msk.f32.gmra.mxu0 %vm115_vm1, %v1414_v3 }
 0x8c8   :  { %3075 = vmatprep.mubr.msk.f32.mxu0 %vm3445_vm0, %v3444_v0 }
 0x8cb   :  { %3076 = vmatmul.mubr.msk.f32.gmra.mxu0 %vm115_vm1, %v1415_v53 }
 0x8cc   :  { %3078 = vmatprep.mubr.msk.f32.mxu0 %vm3445_vm0, %v3444_v0 }
 0x8cf   :  { %3079 = vmatmul.mubr.msk.f32.gmra.mxu0 %vm115_vm1, %v1416_v55 }
 0x8d0   :  { %3081 = vmatprep.mubr.msk.f32.mxu0 %vm3445_vm0, %v3444_v0 }
 0x8d3   :  { %3082 = vmatmul.mubr.msk.f32.gmra.mxu0 %vm115_vm1, %v1417_v44 }
 0x8d4   :  { %3084 = vmatprep.mubr.msk.f32.mxu0 %vm3445_vm0, %v3444_v0 }
 0x8d7   :  { %3085 = vmatmul.mubr.msk.f32.gmra.mxu0 %vm115_vm1, %v1418_v47 }
 0x8d8   :  { %3087 = vmatprep.mubr.msk.f32.mxu0 %vm3445_vm0, %v3444_v0 }
 0x8db   :  { %3088 = vmatmul.mubr.msk.f32.gmra.mxu0 %vm115_vm1, %v1419_v57 }
 0x8dc   :  { %3090 = vmatprep.mubr.msk.f32.mxu0 %vm3445_vm0, %v3444_v0 }
 0x8df   :  { %3091 = vmatmul.mubr.msk.f32.gmra.mxu0 %vm115_vm1, %v1420_v16 }
 0x8e0   :  { %3093 = vmatprep.mubr.msk.f32.mxu0 %vm3445_vm0, %v3444_v0 }
 0x8e3   :  { %3094 = vmatmul.mubr.msk.f32.gmra.mxu0 %vm115_vm1, %v1421_v17 }
 0x8e4   :  { %3096 = vmatprep.mubr.msk.f32.mxu0 %vm3445_vm0, %v3444_v0 }
 0x8e7   :  { %3097 = vmatmul.mubr.msk.f32.gmra.mxu0 %vm115_vm1, %v1422_v18 }
 0x8e8   :  { %3099 = vmatprep.mubr.msk.f32.mxu0 %vm3445_vm0, %v3444_v0 }
 0x8eb   :  { %3100 = vmatmul.mubr.msk.f32.gmra.mxu0 %vm115_vm1, %v1423_v36 }
 0x8ec   :  { %3102 = vmatprep.mubr.msk.f32.mxu0 %vm3445_vm0, %v3444_v0 }
 0x8ef   :  { %3103 = vmatmul.mubr.msk.f32.gmra.mxu0 %vm115_vm1, %v1424_v9 }
 0x8f0   :  { %3105 = vmatprep.mubr.msk.f32.mxu0 %vm3445_vm0, %v3444_v0 }
 0x8f3   :  { %3106 = vmatmul.mubr.msk.f32.gmra.mxu0 %vm115_vm1, %v1425_v19 }
 0x913   :  { %v1567_v41 = vpop.f32.mrf.mxu0 }
 0x915   :  { %v3035_v25 = vpop.f32.mrf.mxu0 }
 0x927   :  { %v1572_v27 = vpop.f32.mrf.mxu0 }
 0x928   :  { %v1691_v29 = vmax.f32 %v1567_v41, %v1572_v27 }
 0x929   :  { %v3038_v62 = vpop.f32.mrf.mxu0 }
 0x93b   :  { %v1577_v45 = vpop.f32.mrf.mxu0 }
 0x93c   :  { %v1692_v30 = vmax.f32 %v1691_v29, %v1577_v45 }
 0x93d   :  { %v3041_v22 = vpop.f32.mrf.mxu0 }
 0x94f   :  { %v1582_v6 = vpop.f32.mrf.mxu0 }
 0x950   :  { %v1693_v1 = vmax.f32 %v1692_v30, %v1582_v6 }
 0x951   :  { %v3044_v28 = vpop.f32.mrf.mxu0 }
 0x963   :  { %v1587_v21 = vpop.f32.mrf.mxu0 }
 0x964   :  { %v1694_v54 = vmax.f32 %v1693_v1, %v1587_v21 }
 0x965   :  { %v3047_v8 = vpop.f32.mrf.mxu0 }
 0x966   :  { %v1695_v61 = vsub.f32 %v1567_v41, %v1694_v54  ;;  %v1698_v33 = vsub.f32 %v1572_v27, %v1694_v54  ;;  %v1701_v34 = vsub.f32 %v1577_v45, %v1694_v54  ;;  %v1704_v35 = vsub.f32 %v1582_v6, %v1694_v54 }
 0x967   :  { %v1592_v10 = vpop.f32.mrf.mxu0  ;;  %v1707_v51 = vsub.f32 %v1587_v21, %v1694_v54 }
 0x968   :  { %v1696_v5 = vmul.f32 1.442695, %v1695_v61  ;;  %v1699_v42 = vmul.f32 1.442695, %v1698_v33  ;;  %v1702_v12 = vmul.f32 1.442695, %v1701_v34 }
 0x969   :  { %v3050_v49 = vpop.f32.mrf.mxu0  ;;  %v1705_v31 = vmul.f32 1.442695, %v1704_v35  ;;  %v1708_v56 = vmul.f32 1.442695, %v1707_v51 }
 0x96a   :  { %3286 = vpow2.f32 %v1696_v5 }
 0x96b   :  { %3288 = vpow2.f32 %v1699_v42  ;;  %v1597_v52 = vpop.f32.mrf.mxu0 }
 0x96c   :  { %3290 = vpow2.f32 %v1702_v12  ;;  %v1744_v60 = vmax.f32 %v1592_v10, %v1597_v52 }
 0x96d   :  { %v3053_v58 = vpop.f32.mrf.mxu0  ;;  %3292 = vpow2.f32 %v1705_v31 }
 0x96e   :  { %3294 = vpow2.f32 %v1708_v56 }
 0x96f   :  { %v1602_v14 = vpop.f32.mrf.mxu0 }
 0x970   :  { %v1745_v3 = vmax.f32 %v1744_v60, %v1602_v14 }
 0x971   :  { %v3056_v38 = vpop.f32.mrf.mxu0 }
 0x973   :  { %v1607_v2 = vpop.f32.mrf.mxu0 }
 0x974   :  { %v1746_v55 = vmax.f32 %v1745_v3, %v1607_v2  ;;  %v4277_v3 = vpop.permute.xlu0 %1721 }
 0x975   :  { %v3059_v53 = vpop.f32.mrf.mxu0 }
 0x977   :  { %v3287_v44 = vpop.eup %3286  ;;  %v1612_v47 = vpop.f32.mrf.mxu0 }
 0x978   :  { %v3289_v57 = vpop.eup %3288  ;;  %v1747_v16 = vmax.f32 %v1746_v55, %v1612_v47 }
 0x979   :  { %v1710_v17 = vadd.f32 %v3289_v57, %v3287_v44  ;;  %v3062_v18 = vpop.f32.mrf.mxu0  ;;  %v3291_v36 = vpop.eup %3290 }
 0x97a   :  { %v1748_v9 = vsub.f32 %v1592_v10, %v1747_v16  ;;  %v1751_v19 = vsub.f32 %v1597_v52, %v1747_v16  ;;  %v1754_v20 = vsub.f32 %v1602_v14, %v1747_v16  ;;  %v1757_v25 = vsub.f32 %v1607_v2, %v1747_v16  ;;  %v3293_v43 = vpop.eup %3292  ;;  %v4273_v52 = vpop.permute.xlu1 %1716 }
 0x97b   :  { %v1711_v41 = vadd.f32 %v3291_v36, %v1710_v17  ;;  %v1617_v40 = vpop.f32.mrf.mxu0  ;;  %v1760_v22 = vsub.f32 %v1612_v47, %v1747_v16  ;;  %v3295_v28 = vpop.eup %3294 }
 0x97c   :  { %v1749_v37 = vmul.f32 1.442695, %v1748_v9  ;;  %v1752_v27 = vmul.f32 1.442695, %v1751_v19  ;;  %v1755_v62 = vmul.f32 1.442695, %v1754_v20 }
 0x97d   :  { %v1712_v45 = vadd.f32 %v3293_v43, %v1711_v41  ;;  %v3065_v6 = vpop.f32.mrf.mxu0  ;;  %v1758_v30 = vmul.f32 1.442695, %v1757_v25  ;;  %v1761_v21 = vmul.f32 1.442695, %v1760_v22 }
 0x97e   :  { %3296 = vpow2.f32 %v1749_v37  ;;  %v4289_v22 = vpop.permute.xlu1 %1727 }
 0x97f   :  { %v1713_v29 = vadd.f32 %v3295_v28, %v1712_v45  ;;  %3298 = vpow2.f32 %v1752_v27  ;;  %v1622_v1 = vpop.f32.mrf.mxu0 }
 0x980   :  { %3300 = vpow2.f32 %v1755_v62  ;;  %v1782_v33 = vmax.f32 %v1617_v40, %v1622_v1 }
 0x981   :  { %3302 = vrcp.f32 %v1713_v29  ;;  %v3068_v54 = vpop.f32.mrf.mxu0 }
 0x982   :  { %3304 = vpow2.f32 %v1758_v30  ;;  %v4293_v54 = vpop.permute.xlu0 %1733 }
 0x983   :  { %v1627_v8 = vpop.f32.mrf.mxu0  ;;  %3306 = vpow2.f32 %v1761_v21 }
 0x984   :  { %v1783_v35 = vmax.f32 %v1782_v33, %v1627_v8 }
 0x985   :  { %v3071_v61 = vpop.f32.mrf.mxu0 }
 0x987   :  { %v1632_v34 = vpop.f32.mrf.mxu0 }
 0x988   :  { %v1784_v5 = vmax.f32 %v1783_v35, %v1632_v34 }
 0x989   :  { %v3074_v10 = vpop.f32.mrf.mxu0 }
 0x98b   :  { %v4267_v42 = vpop.eup %3296  ;;  %v1637_v12 = vpop.f32.mrf.mxu0 }
 0x98c   :  { %v4269_v51 = vpop.eup %3298  ;;  %v1785_v49 = vmax.f32 %v1784_v5, %v1637_v12 }
 0x98d   :  { %v4271_v31 = vpop.eup %3300  ;;  %v1763_v56 = vadd.f32 %v4269_v51, %v4267_v42  ;;  %v3077_v58 = vpop.f32.mrf.mxu0 }
 0x98e   :  { %v3303_v14 = vpop.eup %3302  ;;  %v1786_v38 = vsub.f32 %v1617_v40, %v1785_v49  ;;  %v1789_v60 = vsub.f32 %v1622_v1, %v1785_v49  ;;  %v1792_v2 = vsub.f32 %v1627_v8, %v1785_v49  ;;  %v1795_v55 = vsub.f32 %v1632_v34, %v1785_v49  ;;  %v4296_v34 = vpop.permute.xlu1 %1739 }
 0x98f   :  { %v1764_v53 = vadd.f32 %v4271_v31, %v1763_v56  ;;  %v4280_v47 = vpop.f32.mrf.mxu0  ;;  %v1715_v16 = vmul.f32 %v3303_v14, %v3287_v44  ;;  %v4282_v17 = vpop.eup %3304  ;;  %v1720_v20 = vmul.f32 %v3303_v14, %v3289_v57  ;;  %v1798_v25 = vsub.f32 %v1637_v12, %v1785_v49 }
 0x990   :  { %v1787_v18 = vmul.f32 1.442695, %v1786_v38  ;;  %v1790_v9 = vmul.f32 1.442695, %v1789_v60  ;;  %v1793_v19 = vmul.f32 1.442695, %v1792_v2  ;;  %v4285_v37 = vpop.eup %3306  ;;  %v1726_v45 = vmul.f32 %v3303_v14, %v3291_v36 }
 0x991   :  { %v1765_v41 = vadd.f32 %v4282_v17, %v1764_v53  ;;  %v3080_v40 = vpop.f32.mrf.mxu0  ;;  %v1719_v27 = vmul.f32 %v4273_v52, %v1715_v16  ;;  %v1724_v62 = vmul.f32 %v4277_v3, %v1720_v20  ;;  %v1796_v6 = vmul.f32 1.442695, %v1795_v55 }
 0x992   :  { %3308 = vpow2.f32 %v1787_v18  ;;  %v1732_v57 = vmul.f32 %v3303_v14, %v3293_v43  ;;  %v1738_v30 = vmul.f32 %v3303_v14, %v3295_v28  ;;  %v1730_v21 = vmul.f32 %v4289_v22, %v1726_v45 }
 0x993   :  { %v1766_v44 = vadd.f32 %v4285_v37, %v1765_v41  ;;  %3310 = vpow2.f32 %v1790_v9  ;;  %v1647_v29 = vpop.f32.mrf.mxu0  ;;  %v1725_v1 = vadd.f32 %v1724_v62, %v1719_v27  ;;  %v1799_v8 = vmul.f32 1.442695, %v1798_v25 }
 0x994   :  { %3312 = vpow2.f32 %v1793_v19  ;;  %v1736_v36 = vmul.f32 %v4293_v54, %v1732_v57  ;;  %v1742_v10 = vmul.f32 %v4296_v34, %v1738_v30  ;;  %v1820_v5 = vmax.f32 %v4280_v47, %v1647_v29 }
 0x995   :  { %3314 = vrcp.f32 %v1766_v44  ;;  %v3083_v61 = vpop.f32.mrf.mxu0  ;;  %v1731_v33 = vadd.f32 %v1730_v21, %v1725_v1 }
 0x996   :  { %3316 = vpow2.f32 %v1796_v6 }
 0x997   :  { %v1652_v35 = vpop.f32.mrf.mxu0  ;;  %v1737_v43 = vadd.f32 %v1736_v36, %v1731_v33  ;;  %3318 = vpow2.f32 %v1799_v8 }
 0x998   :  { %v1821_v56 = vmax.f32 %v1820_v5, %v1652_v35 }
 0x999   :  { %v3086_v28 = vpop.f32.mrf.mxu0  ;;  %v1743_v12 = vadd.f32 %v1742_v10, %v1737_v43 }
 0x99b   :  { %v1657_v49 = vpop.f32.mrf.mxu0  ;;  %3117 = vmatmul.mubr.msk.f32.vlgmr.msra.gmra.mxu1 %vm115_vm1, %v1743_v12 }
 0x99c   :  { %3119 = vmatprep.mubr.msk.f32.mxu1 %vm3445_vm0, %v3444_v0  ;;  %v1822_v14 = vmax.f32 %v1821_v56, %v1657_v49 }
 0x99d   :  { %v3089_v58 = vpop.f32.mrf.mxu0 }
 0x99f   :  { %v4303_v38 = vpop.eup %3308  ;;  %v1662_v60 = vpop.f32.mrf.mxu0 }
 0x9a0   :  { %v4305_v2 = vpop.eup %3310  ;;  %v1823_v53 = vmax.f32 %v1822_v14, %v1662_v60 }
 0x9a1   :  { %v4307_v55 = vpop.eup %3312  ;;  %v1801_v16 = vadd.f32 %v4305_v2, %v4303_v38  ;;  %v3092_v18 = vpop.f32.mrf.mxu0 }
 0x9a2   :  { %v3315_v9 = vpop.eup %3314  ;;  %v1824_v19 = vsub.f32 %v4280_v47, %v1823_v53  ;;  %v1827_v20 = vsub.f32 %v1647_v29, %v1823_v53  ;;  %v1830_v41 = vsub.f32 %v1652_v35, %v1823_v53  ;;  %v1833_v40 = vsub.f32 %v1657_v49, %v1823_v53 }
 0x9a3   :  { %v1802_v25 = vadd.f32 %v4307_v55, %v1801_v16  ;;  %v1667_v27 = vpop.f32.mrf.mxu0  ;;  %v1768_v62 = vmul.f32 %v3315_v9, %v4267_v42  ;;  %v1770_v45 = vmul.f32 %v3315_v9, %v4269_v51  ;;  %v4315_v44 = vpop.eup %3316  ;;  %v1773_v1 = vmul.f32 %v3315_v9, %v4271_v31 }
 0x9a4   :  { %v1825_v6 = vmul.f32 1.442695, %v1824_v19  ;;  %v1828_v57 = vmul.f32 1.442695, %v1827_v20  ;;  %v1831_v30 = vmul.f32 1.442695, %v1830_v41  ;;  %v1836_v47 = vsub.f32 %v1662_v60, %v1823_v53  ;;  %v4320_v61 = vpop.eup %3318 }
 0x9a5   :  { %v1803_v21 = vadd.f32 %v4315_v44, %v1802_v25  ;;  %v3095_v29 = vpop.f32.mrf.mxu0  ;;  %v1769_v8 = vmul.f32 %v1768_v62, %v4273_v52  ;;  %v1771_v42 = vmul.f32 %v1770_v45, %v4277_v3  ;;  %v1776_v51 = vmul.f32 %v3315_v9, %v4282_v17 }
 0x9a6   :  { %3320 = vpow2.f32 %v1825_v6  ;;  %v1834_v36 = vmul.f32 1.442695, %v1833_v40  ;;  %v1774_v10 = vmul.f32 %v1773_v1, %v4289_v22  ;;  %v1779_v43 = vmul.f32 %v3315_v9, %v4285_v37 }
 0x9a7   :  { %v1804_v33 = vadd.f32 %v4320_v61, %v1803_v21  ;;  %3322 = vpow2.f32 %v1828_v57  ;;  %v1672_v35 = vpop.f32.mrf.mxu0  ;;  %v1772_v31 = vadd.f32 %v1771_v42, %v1769_v8  ;;  %v1837_v28 = vmul.f32 1.442695, %v1836_v47 }
 0x9a8   :  { %3324 = vpow2.f32 %v1831_v30  ;;  %v1777_v49 = vmul.f32 %v1776_v51, %v4293_v54  ;;  %v1780_v58 = vmul.f32 %v1779_v43, %v4296_v34  ;;  %v1858_v60 = vmax.f32 %v1667_v27, %v1672_v35 }
 0x9a9   :  { %3326 = vrcp.f32 %v1804_v33  ;;  %v3098_v5 = vpop.f32.mrf.mxu0  ;;  %v1775_v12 = vadd.f32 %v1774_v10, %v1772_v31 }
 0x9aa   :  { %3328 = vpow2.f32 %v1834_v36 }
 0x9ab   :  { %v1677_v56 = vpop.f32.mrf.mxu0  ;;  %v1778_v17 = vadd.f32 %v1777_v49, %v1775_v12  ;;  %3330 = vpow2.f32 %v1837_v28 }
 0x9ac   :  { %v1859_v18 = vmax.f32 %v1858_v60, %v1677_v56 }
 0x9ad   :  { %v3101_v14 = vpop.f32.mrf.mxu0  ;;  %v1781_v53 = vadd.f32 %v1780_v58, %v1778_v17 }
 0x9af   :  { %v1682_v16 = vpop.f32.mrf.mxu0  ;;  %3120 = vmatmul.mubr.msk.f32.gmra.mxu1 %vm115_vm1, %v1781_v53 }
 0x9b0   :  { %3122 = vmatprep.mubr.msk.f32.mxu1 %vm3445_vm0, %v3444_v0  ;;  %v1860_v9 = vmax.f32 %v1859_v18, %v1682_v16 }
 0x9b1   :  { %v3104_v37 = vpop.f32.mrf.mxu0 }
 0x9b3   :  { %v3321_v19 = vpop.eup %3320  ;;  %v1687_v20 = vpop.f32.mrf.mxu0 }
 0x9b4   :  { %v3323_v41 = vpop.eup %3322  ;;  %v1861_v25 = vmax.f32 %v1860_v9, %v1687_v20 }
 0x9b5   :  { %v3325_v40 = vpop.eup %3324  ;;  %v1839_v62 = vadd.f32 %v3323_v41, %v3321_v19  ;;  %v3107_v45 = vpop.f32.mrf.mxu0 }
 0x9b6   :  { %v3327_v6 = vpop.eup %3326  ;;  %v1862_v57 = vsub.f32 %v1667_v27, %v1861_v25  ;;  %v1865_v30 = vsub.f32 %v1672_v35, %v1861_v25  ;;  %v1868_v1 = vsub.f32 %v1677_v56, %v1861_v25  ;;  %v1871_v47 = vsub.f32 %v1682_v16, %v1861_v25 }
 0x9b7   :  { %v1840_v21 = vadd.f32 %v3325_v40, %v1839_v62  ;;  %v1806_v29 = vmul.f32 %v3327_v6, %v4303_v38  ;;  %v1808_v8 = vmul.f32 %v3327_v6, %v4305_v2  ;;  %v3329_v42 = vpop.eup %3328  ;;  %v1811_v31 = vmul.f32 %v3327_v6, %v4307_v55 }
 0x9b8   :  { %v1863_v51 = vmul.f32 1.442695, %v1862_v57  ;;  %v1866_v33 = vmul.f32 1.442695, %v1865_v30  ;;  %v1869_v36 = vmul.f32 1.442695, %v1868_v1  ;;  %v1874_v43 = vsub.f32 %v1687_v20, %v1861_v25  ;;  %v3331_v5 = vpop.eup %3330 }
 0x9b9   :  { %v1841_v10 = vadd.f32 %v3329_v42, %v1840_v21  ;;  %v1807_v28 = vmul.f32 %v1806_v29, %v4273_v52  ;;  %v1809_v27 = vmul.f32 %v1808_v8, %v4277_v3  ;;  %v1814_v35 = vmul.f32 %v3327_v6, %v4315_v44 }
 0x9ba   :  { %3332 = vpow2.f32 %v1863_v51  ;;  %v1872_v38 = vmul.f32 1.442695, %v1871_v47  ;;  %v1812_v49 = vmul.f32 %v1811_v31, %v4289_v22  ;;  %v1817_v56 = vmul.f32 %v3327_v6, %v4320_v61 }
 0x9bb   :  { %v1842_v12 = vadd.f32 %v3331_v5, %v1841_v10  ;;  %3334 = vpow2.f32 %v1866_v33  ;;  %v1810_v2 = vadd.f32 %v1809_v27, %v1807_v28  ;;  %v1875_v55 = vmul.f32 1.442695, %v1874_v43 }
 0x9bc   :  { %3336 = vpow2.f32 %v1869_v36  ;;  %v1815_v58 = vmul.f32 %v1814_v35, %v4293_v54  ;;  %v1818_v60 = vmul.f32 %v1817_v56, %v4296_v34 }
 0x9bd   :  { %3338 = vrcp.f32 %v1842_v12  ;;  %v1813_v17 = vadd.f32 %v1812_v49, %v1810_v2 }
 0x9be   :  { %3340 = vpow2.f32 %v1872_v38 }
 0x9bf   :  { %v1816_v14 = vadd.f32 %v1815_v58, %v1813_v17  ;;  %3342 = vpow2.f32 %v1875_v55 }
 0x9c1   :  { %v1819_v44 = vadd.f32 %v1818_v60, %v1816_v14 }
 0x9c3   :  { %3123 = vmatmul.mubr.msk.f32.gmra.mxu1 %vm115_vm1, %v1819_v44 }
 0x9c4   :  { %3125 = vmatprep.mubr.msk.f32.mxu1 %vm3445_vm0, %v3444_v0 }
 0x9c7   :  { %v3333_v53 = vpop.eup %3332 }
 0x9c8   :  { %v3335_v16 = vpop.eup %3334 }
 0x9c9   :  { %v3337_v18 = vpop.eup %3336  ;;  %v1877_v61 = vadd.f32 %v3335_v16, %v3333_v53 }
 0x9ca   :  { %v3339_v37 = vpop.eup %3338 }
 0x9cb   :  { %v1878_v9 = vadd.f32 %v3337_v18, %v1877_v61  ;;  %v1844_v20 = vmul.f32 %v3339_v37, %v3321_v19  ;;  %v1846_v25 = vmul.f32 %v3339_v37, %v3323_v41  ;;  %v1849_v62 = vmul.f32 %v3339_v37, %v3325_v40  ;;  %v3341_v45 = vpop.eup %3340 }
 0x9cc   :  { %v1852_v1 = vmul.f32 %v3339_v37, %v3329_v42  ;;  %v3343_v21 = vpop.eup %3342  ;;  %v1855_v51 = vmul.f32 %v3339_v37, %v3331_v5 }
 0x9cd   :  { %v1879_v6 = vadd.f32 %v3341_v45, %v1878_v9  ;;  %v1845_v57 = vmul.f32 %v1844_v20, %v4273_v52  ;;  %v1847_v30 = vmul.f32 %v1846_v25, %v4277_v3  ;;  %v1850_v8 = vmul.f32 %v1849_v62, %v4289_v22 }
 0x9ce   :  { %v1853_v36 = vmul.f32 %v1852_v1, %v4293_v54  ;;  %v1856_v41 = vmul.f32 %v1855_v51, %v4296_v34 }
 0x9cf   :  { %v1880_v47 = vadd.f32 %v3343_v21, %v1879_v6  ;;  %v1848_v29 = vadd.f32 %v1847_v30, %v1845_v57 }
 0x9d1   :  { %3344 = vrcp.f32 %v1880_v47  ;;  %v1851_v33 = vadd.f32 %v1850_v8, %v1848_v29 }
 0x9d3   :  { %v1854_v19 = vadd.f32 %v1853_v36, %v1851_v33 }
 0x9d5   :  { %v1857_v40 = vadd.f32 %v1856_v41, %v1854_v19 }
 0x9d7   :  { %3126 = vmatmul.mubr.msk.f32.gmra.mxu1 %vm115_vm1, %v1857_v40  ;;  %v2618_v40 = vld [vmem:[%s4569_s5 + $0x30] sm:$0xff] }
 0x9d8   :  { %3128 = vmatprep.mubr.msk.f32.mxu1 %vm3445_vm0, %v3444_v0 }
 0x9de   :  { %v3345_v42 = vpop.eup %3344 }
 0x9df   :  { %v1882_v31 = vmul.f32 %v3345_v42, %v3333_v53  ;;  %v1884_v10 = vmul.f32 %v3345_v42, %v3335_v16  ;;  %v1887_v43 = vmul.f32 %v3345_v42, %v3337_v18  ;;  %v1890_v27 = vmul.f32 %v3345_v42, %v3341_v45 }
 0x9e0   :  { %v1893_v38 = vmul.f32 %v3345_v42, %v3343_v21 }
 0x9e1   :  { %v1883_v28 = vmul.f32 %v1882_v31, %v4273_v52  ;;  %v1885_v5 = vmul.f32 %v1884_v10, %v4277_v3  ;;  %v1888_v12 = vmul.f32 %v1887_v43, %v4289_v22  ;;  %v1891_v49 = vmul.f32 %v1890_v27, %v4293_v54  ;;  %v2617_v10 = vld [vmem:[%s4569_s5 + $0x28] sm:$0xff]  ;;  %v2616_v43 = vld [vmem:[%s4569_s5 + $0x20] sm:$0xff] }
 0x9e2   :  { %v1894_v55 = vmul.f32 %v1893_v38, %v4296_v34  ;;  %v1899_v52 = vrot.slane %v4116_v24, %v3558_v11 }
 0x9e3   :  { %v1886_v35 = vadd.f32 %v1885_v5, %v1883_v28 }
 0x9e5   :  { %v1889_v2 = vadd.f32 %v1888_v12, %v1886_v35 }
 0x9e7   :  { %v1892_v56 = vadd.f32 %v1891_v49, %v1889_v2 }
 0x9e9   :  { %v1895_v17 = vadd.f32 %v1894_v55, %v1892_v56 }
 0x9eb   :  { %3129 = vmatmul.mubr.msk.f32.gmra.mxu1 %vm115_vm1, %v1895_v17 }
 0x9ec   :  { %3139 = vmatprep.mubr.msk.f32.mxu1 %vm3445_vm0, %v3444_v0 }
 0xa5b   :  { %v1981_v3 = vpop.f32.mrf.mxu1 }
 0xa5c   :  { %v1982_v58 = vadd.f32 %v1981_v3, %v1899_v52 }
 0xa5d   :  { %v3118_v14 = vpop.f32.mrf.mxu1 }
 0xa5e   :  { %v2005_v22 = vadd.f32 %v1982_v58, %v4069_v46 }
 0xa60   :  { %v2010_v60 = vsel %vm115_vm1, %v2005_v22, 0.0 }
 0xa61   :  { %2011 = vadd.xlane.f32.xlu0 %v2010_v60  ;;  %v4405_v60 = vrot.slane %v4116_v24, %v918_v48  ;;  %v2627_v48 = vld [vmem:[%s4570_s6 + $0x78] sm:$0xff] }
 0xa6f   :  { %v1986_v54 = vpop.f32.mrf.mxu1 }
 0xa70   :  { %v1987_v44 = vadd.f32 %v1986_v54, %v1899_v52 }
 0xa71   :  { %v3121_v34 = vpop.f32.mrf.mxu1 }
 0xa72   :  { %v2006_v53 = vadd.f32 %v1987_v44, %v4091_v63  ;;  %v4410_v34 = vrot.slane %v4116_v24, %v927_v26  ;;  %v2626_v26 = vld [vmem:[%s4570_s6 + $0x70] sm:$0xff]  ;;  %v2625_v24 = vld [vmem:[%s4570_s6 + $0x68] sm:$0xff] }
 0xa74   :  { %v2013_v16 = vsel %vm115_vm1, %v2006_v53, 0.0 }
 0xa75   :  { %2014 = vadd.xlane.f32.xlu1 %v2013_v16 }
 0xa83   :  { %v1991_v18 = vpop.f32.mrf.mxu1 }
 0xa84   :  { %v1992_v61 = vadd.f32 %v1991_v18, %v1899_v52 }
 0xa85   :  { %v3124_v37 = vpop.f32.mrf.mxu1 }
 0xa86   :  { %v2007_v9 = vadd.f32 %v1992_v61, %v4097_v50 }
 0xa88   :  { %v2016_v20 = vsel %vm115_vm1, %v2007_v9, 0.0 }
 0xa89   :  { %2017 = vadd.xlane.f32.xlu0 %v2016_v20  ;;  %v2623_v20 = vld [vmem:[%s4570_s6 + $0x58] sm:$0xff] }
 0xa97   :  { %v1996_v46 = vpop.f32.mrf.mxu1 }
 0xa98   :  { %v1997_v25 = vadd.f32 %v1996_v46, %v1899_v52 }
 0xa99   :  { %v3127_v62 = vpop.f32.mrf.mxu1 }
 0xa9a   :  { %v2008_v45 = vadd.f32 %v1997_v25, %v4103_v39 }
 0xa9c   :  { %v2019_v6 = vsel %vm115_vm1, %v2008_v45, 0.0 }
 0xa9d   :  { %2020 = vadd.xlane.f32.xlu0 %v2019_v6 }
 0xaab   :  { %v2001_v63 = vpop.f32.mrf.mxu1 }
 0xaac   :  { %v2002_v57 = vadd.f32 %v2001_v63, %v1899_v52 }
 0xaad   :  { %v3130_v30 = vpop.f32.mrf.mxu1 }
 0xaae   :  { %v2009_v1 = vadd.f32 %v2002_v57, %v4110_v59  ;;  %v2619_v59 = vld [vmem:[%s4569_s5 + $0x38] sm:$0xff]  ;;  %s3448_s5 = smov 4  }
 0xaaf   :  { %3132 = vmatpush3.msra.mxu1 %v2619_v59 }
 0xab0   :  { %v2022_v21 = vsel %vm115_vm1, %v2009_v1, 0.0  ;;  %3133 = vmatprep.subr.mxu1 %v3444_v0 }
 0xab1   :  { %2023 = vadd.xlane.f32.xlu1 %v2022_v21  ;;  %3134 = vmatpush3.msra.mxu1 %v2618_v40  ;;  %v2622_v40 = vld [vmem:[%s4570_s6 + $0x50] sm:$0xff] }
 0xab2   :  { %3135 = vmatprep.subr.mxu1 %v3444_v0 }
 0xab3   :  { %3136 = vmatpush3.msra.mxu1 %v2617_v10 }
 0xab4   :  { %3137 = vmatprep.subr.mxu1 %v3444_v0 }
 0xab5   :  { %3138 = vmatpush3.msra.mxu1 %v2616_v43 }
 0xab6   :  { %3154 = vmatprep.subr.mxu1 %v3444_v0 }
 0xaea   :  { %v2012_v50 = vpop.xlane.xlu0 %2011 }
 0xaeb   :  { %v2025_v47 = vmul.f32 0.03125, %v2012_v50 }
 0xaed   :  { %v2030_v29 = vsub.f32 %v2005_v22, %v2025_v47 }
 0xaef   :  { %v2035_v8 = vmul.f32 %v2030_v29, %v2030_v29 }
 0xaf1   :  { %v2040_v51 = vsel %vm115_vm1, %v2035_v8, 0.0 }
 0xaf2   :  { %2041 = vadd.xlane.f32.xlu0 %v2040_v51 }
 0xafe   :  { %v2015_v33 = vpop.xlane.xlu1 %2014 }
 0xaff   :  { %v2026_v39 = vmul.f32 0.03125, %v2015_v33 }
 0xb01   :  { %v4374_v36 = vsub.f32 %v2006_v53, %v2026_v39 }
 0xb03   :  { %v2036_v19 = vmul.f32 %v4374_v36, %v4374_v36 }
 0xb05   :  { %v2043_v41 = vsel %vm115_vm1, %v2036_v19, 0.0 }
 0xb06   :  { %2044 = vadd.xlane.f32.xlu1 %v2043_v41 }
 0xb12   :  { %v2018_v42 = vpop.xlane.xlu0 %2017 }
 0xb13   :  { %v2027_v31 = vmul.f32 0.03125, %v2018_v42  ;;  %v2621_v42 = vld [vmem:[%s4570_s6 + $0x48] sm:$0xff] }
 0xb15   :  { %v2032_v28 = vsub.f32 %v2007_v9, %v2027_v31  ;;  %v2624_v9 = vld [vmem:[%s4570_s6 + $0x60] sm:$0xff] }
 0xb16   :  { %v2620_v31 = vld [vmem:[%s4570_s6 + $0x40] sm:$0xff] }
 0xb17   :  { %v2037_v5 = vmul.f32 %v2032_v28, %v2032_v28 }
 0xb19   :  { %v2046_v27 = vsel %vm115_vm1, %v2037_v5, 0.0 }
 0xb1a   :  { %2047 = vadd.xlane.f32.xlu0 %v2046_v27  ;;  %v4486_v27 = vld [vmem:[#allocation5 + $0x8] sm:$0xff] }
 0xb26   :  { %v2021_v35 = vpop.xlane.xlu0 %2020 }
 0xb27   :  { %v2028_v12 = vmul.f32 0.03125, %v2021_v35  ;;  %v2096_v35 = vrot.slane %v4486_v27, %v3569_v13 }
 0xb29   :  { %v2033_v38 = vsub.f32 %v2008_v45, %v2028_v12 }
 0xb2b   :  { %v2038_v2 = vmul.f32 %v2033_v38, %v2033_v38 }
 0xb2d   :  { %v2049_v49 = vsel %vm115_vm1, %v2038_v2, 0.0 }
 0xb2e   :  { %2050 = vadd.xlane.f32.xlu1 %v2049_v49 }
 0xb3a   :  { %v2024_v56 = vpop.xlane.xlu1 %2023 }
 0xb3b   :  { %v2029_v55 = vmul.f32 0.03125, %v2024_v56 }
 0xb3d   :  { %v4397_v17 = vsub.f32 %v2009_v1, %v2029_v55 }
 0xb3f   :  { %v2039_v52 = vmul.f32 %v4397_v17, %v4397_v17 }
 0xb41   :  { %v2052_v3 = vsel %vm115_vm1, %v2039_v52, 0.0 }
 0xb42   :  { %2053 = vadd.xlane.f32.xlu0 %v2052_v3 }
 0xb7b   :  { %v2042_v58 = vpop.xlane.xlu0 %2041 }
 0xb7c   :  { %v2055_v14 = vmul.f32 0.03125, %v2042_v58 }
 0xb7e   :  { %v2060_v22 = vadd.f32 1e-05, %v2055_v14 }
 0xb80   :  { %3346 = vrsqrt.f32 %v2060_v22 }
 0xb8d   :  { %v3347_v54 = vpop.eup %3346 }
 0xb8e   :  { %v2070_v44 = vmul.f32 %v3347_v54, %v2030_v29 }
 0xb8f   :  { %v2045_v53 = vpop.xlane.xlu1 %2044 }
 0xb90   :  { %v2079_v16 = vmul.f32 %v4405_v60, %v2070_v44  ;;  %v2056_v18 = vmul.f32 0.03125, %v2045_v53 }
 0xb92   :  { %v2061_v61 = vadd.f32 1e-05, %v2056_v18  ;;  %v4414_v37 = vadd.f32 %v4410_v34, %v2079_v16 }
 0xb94   :  { %3348 = vrsqrt.f32 %v2061_v61  ;;  %3140 = vmatmul.mubr.msk.f32.vlgmr.msra.gmra.mxu1 %vm115_vm1, %v4414_v37 }
 0xb95   :  { %3142 = vmatprep.mubr.msk.f32.mxu1 %vm3445_vm0, %v3444_v0  ;;  %3155 = vmatpush3.msra.mxu1 %v2627_v48  ;;  %v2210_v48 = vrot.slane %v4486_v27, %v3579_v15 }
 0xb96   :  { %3156 = vmatprep.subr.mxu1 %v3444_v0 }
 0xb97   :  { %3157 = vmatpush3.msra.mxu1 %v2626_v26 }
 0xb98   :  { %3158 = vmatprep.subr.mxu1 %v3444_v0 }
 0xb99   :  { %3159 = vmatpush3.msra.mxu1 %v2625_v24 }
 0xb9a   :  { %3160 = vmatprep.subr.mxu1 %v3444_v0 }
 0xb9b   :  { %3161 = vmatpush3.msra.mxu1 %v2624_v9 }
 0xb9c   :  { %3162 = vmatprep.subr.mxu1 %v3444_v0 }
 0xb9d   :  { %3163 = vmatpush3.msra.mxu1 %v2623_v20 }
 0xb9e   :  { %3164 = vmatprep.subr.mxu1 %v3444_v0 }
 0xb9f   :  { %3165 = vmatpush3.msra.mxu1 %v2622_v40 }
 0xba0   :  { %3166 = vmatprep.subr.mxu1 %v3444_v0 }
 0xba1   :  { %v3349_v46 = vpop.eup %3348  ;;  %3167 = vmatpush3.msra.mxu1 %v2621_v42 }
 0xba2   :  { %v2071_v25 = vmul.f32 %v3349_v46, %v4374_v36  ;;  %3168 = vmatprep.subr.mxu1 %v3444_v0 }
 0xba3   :  { %v2048_v62 = vpop.xlane.xlu0 %2047  ;;  %3169 = vmatpush3.msra.mxu1 %v2620_v31 }
 0xba4   :  { %v2057_v45 = vmul.f32 0.03125, %v2048_v62  ;;  %v2080_v6 = vmul.f32 %v4405_v60, %v2071_v25  ;;  %3185 = vmatprep.subr.mxu1 %v3444_v0 }
 0xba6   :  { %v2062_v63 = vadd.f32 1e-05, %v2057_v45  ;;  %v4443_v57 = vadd.f32 %v4410_v34, %v2080_v6 }
 0xba8   :  { %3350 = vrsqrt.f32 %v2062_v63  ;;  %3143 = vmatmul.mubr.msk.f32.gmra.mxu1 %vm115_vm1, %v4443_v57 }
 0xba9   :  { %3145 = vmatprep.mubr.msk.f32.mxu1 %vm3445_vm0, %v3444_v0 }
 0xbb5   :  { %v3351_v30 = vpop.eup %3350 }
 0xbb6   :  { %v2072_v21 = vmul.f32 %v3351_v30, %v2032_v28 }
 0xbb7   :  { %v2051_v1 = vpop.xlane.xlu1 %2050 }
 0xbb8   :  { %v2058_v50 = vmul.f32 0.03125, %v2051_v1  ;;  %v2081_v47 = vmul.f32 %v4405_v60, %v2072_v21 }
 0xbba   :  { %v2063_v29 = vadd.f32 1e-05, %v2058_v50  ;;  %v4451_v8 = vadd.f32 %v4410_v34, %v2081_v47 }
 0xbbc   :  { %3352 = vrsqrt.f32 %v2063_v29  ;;  %3146 = vmatmul.mubr.msk.f32.gmra.mxu1 %vm115_vm1, %v4451_v8 }
 0xbbd   :  { %3148 = vmatprep.mubr.msk.f32.mxu1 %vm3445_vm0, %v3444_v0 }
 0xbc9   :  { %v3353_v51 = vpop.eup %3352 }
 0xbca   :  { %v2073_v33 = vmul.f32 %v3353_v51, %v2033_v38 }
 0xbcb   :  { %v2054_v39 = vpop.xlane.xlu0 %2053 }
 0xbcc   :  { %v2059_v36 = vmul.f32 0.03125, %v2054_v39  ;;  %v2082_v19 = vmul.f32 %v4405_v60, %v2073_v33 }
 0xbce   :  { %v2064_v41 = vadd.f32 1e-05, %v2059_v36  ;;  %v4459_v59 = vadd.f32 %v4410_v34, %v2082_v19 }
 0xbd0   :  { %3354 = vrsqrt.f32 %v2064_v41  ;;  %3149 = vmatmul.mubr.msk.f32.gmra.mxu1 %vm115_vm1, %v4459_v59 }
 0xbd1   :  { %3151 = vmatprep.mubr.msk.f32.mxu1 %vm3445_vm0, %v3444_v0 }
 0xbdd   :  { %v3355_v10 = vpop.eup %3354 }
 0xbde   :  { %v2074_v43 = vmul.f32 %v3355_v10, %v4397_v17 }
 0xbe0   :  { %v2083_v28 = vmul.f32 %v4405_v60, %v2074_v43 }
 0xbe2   :  { %v4480_v5 = vadd.f32 %v4410_v34, %v2083_v28 }
 0xbe4   :  { %3152 = vmatmul.mubr.msk.f32.gmra.mxu1 %vm115_vm1, %v4480_v5 }
 0xbe5   :  { %3170 = vmatprep.mubr.msk.f32.mxu1 %vm3445_vm0, %v3444_v0 }
 0xc54   :  { %v2178_v12 = vpop.f32.mrf.mxu1 }
 0xc55   :  { %v2179_v38 = vadd.f32 %v2178_v12, %v2096_v35 }
 0xc56   :  { %v3141_v2 = vpop.f32.mrf.mxu1 }
 0xc57   :  { %v2202_v49 = vmax.f32 %v2179_v38, 0.0  ;;  %v2406_v2 = vld [vmem:[%s4572_s8 + $0x10] sm:$0xff] }
 0xc59   :  { %3171 = vmatmul.mubr.msk.f32.vlgmr.msra.gmra.mxu1 %vm1052_vm2, %v2202_v49 }
 0xc5a   :  { %3173 = vmatprep.mubr.msk.f32.mxu1 %vm3445_vm0, %v3444_v0 }
 0xc68   :  { %v2183_v56 = vpop.f32.mrf.mxu1 }
 0xc69   :  { %v2184_v55 = vadd.f32 %v2183_v56, %v2096_v35 }
 0xc6a   :  { %v3144_v17 = vpop.f32.mrf.mxu1 }
 0xc6b   :  { %v2203_v52 = vmax.f32 %v2184_v55, 0.0  ;;  %v2405_v55 = vld [vmem:[%s4572_s8 + $0x8] sm:$0xff]  ;;  %v2404_v17 = vld [vmem:[%s4572_s8] sm:$0xff] }
 0xc6d   :  { %3174 = vmatmul.mubr.msk.f32.gmra.mxu1 %vm1052_vm2, %v2203_v52 }
 0xc6e   :  { %3176 = vmatprep.mubr.msk.f32.mxu1 %vm3445_vm0, %v3444_v0 }
 0xc7c   :  { %v2188_v3 = vpop.f32.mrf.mxu1 }
 0xc7d   :  { %v2189_v58 = vadd.f32 %v2188_v3, %v2096_v35 }
 0xc7e   :  { %v3147_v14 = vpop.f32.mrf.mxu1 }
 0xc7f   :  { %v2204_v22 = vmax.f32 %v2189_v58, 0.0 }
 0xc81   :  { %3177 = vmatmul.mubr.msk.f32.gmra.mxu1 %vm1052_vm2, %v2204_v22 }
 0xc82   :  { %3179 = vmatprep.mubr.msk.f32.mxu1 %vm3445_vm0, %v3444_v0 }
 0xc90   :  { %v2193_v60 = vpop.f32.mrf.mxu1 }
 0xc91   :  { %v2194_v54 = vadd.f32 %v2193_v60, %v2096_v35 }
 0xc92   :  { %v3150_v44 = vpop.f32.mrf.mxu1 }
 0xc93   :  { %v2205_v34 = vmax.f32 %v2194_v54, 0.0 }
 0xc95   :  { %3180 = vmatmul.mubr.msk.f32.gmra.mxu1 %vm1052_vm2, %v2205_v34 }
 0xc96   :  { %3182 = vmatprep.mubr.msk.f32.mxu1 %vm3445_vm0, %v3444_v0 }
 0xca4   :  { %v2198_v53 = vpop.f32.mrf.mxu1 }
 0xca5   :  { %v2199_v16 = vadd.f32 %v2198_v53, %v2096_v35 }
 0xca6   :  { %v3153_v18 = vpop.f32.mrf.mxu1 }
 0xca7   :  { %v2206_v61 = vmax.f32 %v2199_v16, 0.0 }
 0xca9   :  { %3183 = vmatmul.mubr.msk.f32.gmra.mxu1 %vm1052_vm2, %v2206_v61 }
 0xcaa   :  { %3193 = vmatprep.mubr.msk.f32.mxu1 %vm3445_vm0, %v3444_v0 }
 0xd19   :  { %v2292_v26 = vpop.f32.mrf.mxu1 }
 0xd1a   :  { %v2293_v24 = vadd.f32 %v2292_v26, %v2210_v48 }
 0xd1b   :  { %v3172_v9 = vpop.f32.mrf.mxu1 }
 0xd1c   :  { %v2316_v20 = vadd.f32 %v2293_v24, %v4414_v37  ;;  %v2389_v24 = vrot.slane %v4486_v27, %v1230_v32 }
 0xd1e   :  { %v2321_v46 = vsel %vm115_vm1, %v2316_v20, 0.0 }
 0xd1f   :  { %2322 = vadd.xlane.f32.xlu1 %v2321_v46  ;;  %v2398_v46 = vrot.slane %v4486_v27, %v1239_v23 }
 0xd2d   :  { %v2297_v25 = vpop.f32.mrf.mxu1 }
 0xd2e   :  { %v2298_v62 = vadd.f32 %v2297_v25, %v2210_v48 }
 0xd2f   :  { %v3175_v45 = vpop.f32.mrf.mxu1 }
 0xd30   :  { %v2317_v6 = vadd.f32 %v2298_v62, %v4443_v57 }
 0xd32   :  { %v2324_v63 = vsel %vm115_vm1, %v2317_v6, 0.0 }
 0xd33   :  { %2325 = vadd.xlane.f32.xlu0 %v2324_v63 }
 0xd41   :  { %v2302_v30 = vpop.f32.mrf.mxu1 }
 0xd42   :  { %v2303_v1 = vadd.f32 %v2302_v30, %v2210_v48 }
 0xd43   :  { %v3178_v21 = vpop.f32.mrf.mxu1 }
 0xd44   :  { %v2318_v50 = vadd.f32 %v2303_v1, %v4451_v8  ;;  %v2488_v1 = vld [vmem:[%s4574_s10] sm:$0xf] }
 0xd45   :  { %v2492_v4 = vrot.slane %v2488_v1, %v3544_v7 }
 0xd46   :  { %v2327_v47 = vsel %vm115_vm1, %v2318_v50, 0.0 }
 0xd47   :  { %2328 = vadd.xlane.f32.xlu1 %v2327_v47 }
 0xd55   :  { %v2307_v37 = vpop.f32.mrf.mxu1 }
 0xd56   :  { %v2308_v29 = vadd.f32 %v2307_v37, %v2210_v48 }
 0xd57   :  { %v3181_v51 = vpop.f32.mrf.mxu1 }
 0xd58   :  { %v2319_v33 = vadd.f32 %v2308_v29, %v4459_v59 }
 0xd5a   :  { %v2330_v39 = vsel %vm115_vm1, %v2319_v33, 0.0 }
 0xd5b   :  { %2331 = vadd.xlane.f32.xlu0 %v2330_v39 }
 0xd69   :  { %v2312_v57 = vpop.f32.mrf.mxu1 }
 0xd6a   :  { %v2313_v36 = vadd.f32 %v2312_v57, %v2210_v48 }
 0xd6b   :  { %v3184_v19 = vpop.f32.mrf.mxu1 }
 0xd6c   :  { %v2320_v41 = vadd.f32 %v2313_v36, %v4480_v5  ;;  %v2407_v5 = vld [vmem:[%s4572_s8 + $0x18] sm:$0xff]  ;;  %v2500_v19 = vrot.slane %v2488_v1, %v3558_v11 }
 0xd6d   :  { %3186 = vmatpush3.msra.mxu1 %v2407_v5 }
 0xd6e   :  { %v2333_v40 = vsel %vm115_vm1, %v2320_v41, 0.0  ;;  %3187 = vmatprep.subr.mxu1 %v3444_v0 }
 0xd6f   :  { %2334 = vadd.xlane.f32.xlu1 %v2333_v40  ;;  %3188 = vmatpush3.msra.mxu1 %v2406_v2 }
 0xd70   :  { %3189 = vmatprep.subr.mxu1 %v3444_v0 }
 0xd71   :  { %3190 = vmatpush3.msra.mxu1 %v2405_v55 }
 0xd72   :  { %3191 = vmatprep.subr.mxu1 %v3444_v0 }
 0xd73   :  { %3192 = vmatpush3.msra.mxu1 %v2404_v17 }
 0xda8   :  { %v2323_v8 = vpop.xlane.xlu1 %2322 }
 0xda9   :  { %v2336_v42 = vmul.f32 0.03125, %v2323_v8 }
 0xdab   :  { %v2341_v31 = vsub.f32 %v2316_v20, %v2336_v42 }
 0xdad   :  { %v2346_v10 = vmul.f32 %v2341_v31, %v2341_v31 }
 0xdaf   :  { %v2351_v43 = vsel %vm115_vm1, %v2346_v10, 0.0 }
 0xdb0   :  { %2352 = vadd.xlane.f32.xlu0 %v2351_v43 }
 0xdbc   :  { %v2326_v28 = vpop.xlane.xlu0 %2325 }
 0xdbd   :  { %v2337_v59 = vmul.f32 0.03125, %v2326_v28 }
 0xdbf   :  { %v2342_v35 = vsub.f32 %v2317_v6, %v2337_v59  ;;  %v2508_v59 = vrot.slane %v2488_v1, %v3569_v13 }
 0xdc1   :  { %v2347_v12 = vmul.f32 %v2342_v35, %v2342_v35 }
 0xdc3   :  { %v2354_v38 = vsel %vm115_vm1, %v2347_v12, 0.0 }
 0xdc4   :  { %2355 = vadd.xlane.f32.xlu1 %v2354_v38 }
 0xdd0   :  { %v2329_v49 = vpop.xlane.xlu1 %2328 }
 0xdd1   :  { %v2338_v56 = vmul.f32 0.03125, %v2329_v49 }
 0xdd3   :  { %v2343_v52 = vsub.f32 %v2318_v50, %v2338_v56  ;;  %v2516_v56 = vrot.slane %v2488_v1, %v3579_v15 }
 0xdd5   :  { %v2348_v3 = vmul.f32 %v2343_v52, %v2343_v52 }
 0xdd7   :  { %v2357_v58 = vsel %vm115_vm1, %v2348_v3, 0.0 }
 0xdd8   :  { %2358 = vadd.xlane.f32.xlu0 %v2357_v58 }
 0xde4   :  { %v2332_v14 = vpop.xlane.xlu0 %2331 }
 0xde5   :  { %v2339_v22 = vmul.f32 0.03125, %v2332_v14 }
 0xde7   :  { %v2344_v60 = vsub.f32 %v2319_v33, %v2339_v22 }
 0xde9   :  { %v2349_v54 = vmul.f32 %v2344_v60, %v2344_v60 }
 0xdeb   :  { %v2360_v44 = vsel %vm115_vm1, %v2349_v54, 0.0  ;;  %v2675_v54 = vld [vmem:[%s4575_s11] ss:$0 sm:$0xff]  ;;  %s3414_s11 = scalar_lea.vmem %s2554_s16, 128 }
 0xdec   :  { %2361 = vadd.xlane.f32.xlu1 %v2360_v44  ;;  %p3415_p10 = scmp.ne.s32.totalorder %s2554_s16, %s3414_s11  ;;  %p3420_p12 = scmp.lt.s32.totalorder %s3414_s11, %s3414_s11 }
 0xdee   :  { %p3421_p13 = por %p3420_p12, %p3419_p11 }
 0xdf0   :  { %p3422_p0 = pnand %p3421_p13, %p3415_p10 }
 0xdf8   :  { %v2335_v34 = vpop.xlane.xlu1 %2334 }
 0xdf9   :  { %v2340_v53 = vmul.f32 0.03125, %v2335_v34 }
 0xdfb   :  { %v2345_v16 = vsub.f32 %v2320_v41, %v2340_v53 }
 0xdfd   :  { %v2350_v18 = vmul.f32 %v2345_v16, %v2345_v16 }
 0xdff   :  { %v2363_v61 = vsel %vm115_vm1, %v2350_v18, 0.0 }
 0xe00   :  { %2364 = vadd.xlane.f32.xlu0 %v2363_v61 }
 0xe39   :  { %v2353_v0 = vpop.xlane.xlu0 %2352 }
 0xe3a   :  { %v2366_v48 = vmul.f32 0.03125, %v2353_v0 }
 0xe3c   :  { %v2371_v26 = vadd.f32 1e-05, %v2366_v48 }
 0xe3e   :  { %3356 = vrsqrt.f32 %v2371_v26 }
 0xe4b   :  { %v3357_v9 = vpop.eup %3356 }
 0xe4c   :  { %v2381_v20 = vmul.f32 %v3357_v9, %v2341_v31 }
 0xe4d   :  { %v2356_v25 = vpop.xlane.xlu1 %2355 }
 0xe4e   :  { %v2390_v62 = vmul.f32 %v2389_v24, %v2381_v20  ;;  %v2367_v45 = vmul.f32 0.03125, %v2356_v25 }
 0xe50   :  { %v2372_v6 = vadd.f32 1e-05, %v2367_v45  ;;  %v2399_v63 = vadd.f32 %v2398_v46, %v2390_v62 }
 0xe52   :  { %3358 = vrsqrt.f32 %v2372_v6  ;;  %3194 = vmatmul.mubr.msk.f32.vlgmr.msra.gmra.mxu1 %vm115_vm1, %v2399_v63 }
 0xe5f   :  { %v3359_v30 = vpop.eup %3358 }
 0xe60   :  { %v2382_v32 = vmul.f32 %v3359_v30, %v2342_v35 }
 0xe61   :  { %v2359_v21 = vpop.xlane.xlu0 %2358 }
 0xe62   :  { %v2368_v50 = vmul.f32 0.03125, %v2359_v21  ;;  %v2391_v47 = vmul.f32 %v2389_v24, %v2382_v32 }
 0xe64   :  { %v2373_v23 = vadd.f32 1e-05, %v2368_v50  ;;  %v2400_v27 = vadd.f32 %v2398_v46, %v2391_v47 }
 0xe66   :  { %3360 = vrsqrt.f32 %v2373_v23  ;;  %v2493_v37 = vmul.f32 %v2492_v4, %v2400_v27 }
 0xe68   :  { %v2494_v29 = vsel %vm115_vm1, %v2493_v37, 0.0 }
 0xe69   :  { %2495 = vadd.xlane.f32.xlu1 %v2494_v29 }
 0xe73   :  { %v3361_v51 = vpop.eup %3360 }
 0xe74   :  { %v2383_v39 = vmul.f32 %v3361_v51, %v2343_v52 }
 0xe75   :  { %v2362_v33 = vpop.xlane.xlu1 %2361 }
 0xe76   :  { %v2369_v57 = vmul.f32 0.03125, %v2362_v33  ;;  %v2392_v36 = vmul.f32 %v2389_v24, %v2383_v39 }
 0xe78   :  { %v2374_v41 = vadd.f32 1e-05, %v2369_v57  ;;  %v2401_v40 = vadd.f32 %v2398_v46, %v2392_v36 }
 0xe7a   :  { %3362 = vrsqrt.f32 %v2374_v41  ;;  %v2501_v8 = vmul.f32 %v2500_v19, %v2401_v40 }
 0xe7c   :  { %v2502_v7 = vsel %vm115_vm1, %v2501_v8, 0.0 }
 0xe7d   :  { %2503 = vadd.xlane.f32.xlu0 %v2502_v7 }
 0xe87   :  { %v3363_v42 = vpop.eup %3362 }
 0xe88   :  { %v2384_v31 = vmul.f32 %v3363_v42, %v2344_v60 }
 0xe89   :  { %v2365_v10 = vpop.xlane.xlu0 %2364 }
 0xe8a   :  { %v2370_v43 = vmul.f32 0.03125, %v2365_v10  ;;  %v2393_v28 = vmul.f32 %v2389_v24, %v2384_v31 }
 0xe8c   :  { %v2375_v35 = vadd.f32 1e-05, %v2370_v43  ;;  %v2402_v12 = vadd.f32 %v2398_v46, %v2393_v28 }
 0xe8e   :  { %3364 = vrsqrt.f32 %v2375_v35  ;;  %v2509_v38 = vmul.f32 %v2508_v59, %v2402_v12 }
 0xe90   :  { %v2510_v11 = vsel %vm115_vm1, %v2509_v38, 0.0 }
 0xe91   :  { %2511 = vadd.xlane.f32.xlu1 %v2510_v11 }
 0xe9b   :  { %v3365_v5 = vpop.eup %3364 }
 0xe9c   :  { %v2385_v2 = vmul.f32 %v3365_v5, %v2345_v16  ;;  %v2673_v16 = vld [vmem:[%s4573_s9] ss:$0 sm:$0xff] }
 0xe9e   :  { %v2394_v49 = vmul.f32 %v2389_v24, %v2385_v2 }
 0xea0   :  { %v2403_v55 = vadd.f32 %v2398_v46, %v2394_v49 }
 0xea2   :  { %v2517_v17 = vmul.f32 %v2516_v56, %v2403_v55 }
 0xea4   :  { %v2518_v52 = vsel %vm115_vm1, %v2517_v17, 0.0 }
 0xea5   :  { %2519 = vadd.xlane.f32.xlu0 %v2518_v52 }
 0xef2   :  { %v2496_v13 = vpop.xlane.xlu1 %2495 }
 0xf06   :  { %v2504_v14 = vpop.xlane.xlu0 %2503 }
 0xf07   :  { %v2522_v60 = vsel %vm2521_vm3, %v2496_v13, %v2504_v14 }
 0xf12   :  { %v2484_v3 = vpop.f32.mrf.mxu1 }
 0xf13   :  { %v2485_v18 = vadd.f32 %v2673_v16, %v2484_v3 }
 0xf14   :  { %v3195_v58 = vpop.f32.mrf.mxu1 }
 0xf1a   :  { %v2512_v22 = vpop.xlane.xlu1 %2511 }
 0xf1b   :  { %v2524_v44 = vsel %vm2523_vm4, %v2522_v60, %v2512_v22 }
 0xf2e   :  { %v2520_v15 = vpop.xlane.xlu0 %2519 }
 0xf2f   :  { %v2526_v34 = vsel %vm2525_vm5, %v2524_v44, %v2520_v15 }
 0xf30   :  { %v2534_v53 = vadd.f32 %v2675_v54, %v2526_v34 }
 0xf32   :  { %2536 = vrot.lane.b32.xlu1 %v2534_v53, %s3448_s5 }
 0xfa4   :  { %v2537_v61 = vpop.permute.xlu1 %2536 }
 0xfa5   :  { %v2540_v0 = vsel %vm2539_vm6, %v2485_v18, %v2537_v61 }
 0xfa6   :  { %v2541_v48 = vmul.f32 0.5, %v2540_v0 }
 0xfa8   :  { %3366 = vtanh.f32 %v2541_v48 }
 0xfb5   :  { %v3367_v26 = vpop.eup %3366 }
 0xfb6   :  { %v2543_v24 = vmul.f32 0.5, %v3367_v26 }
 0xfb8   :  { %v2544_v9 = vadd.f32 0.5, %v2543_v24 }
 0xfba   :  { %2546 = vst.msk [vmem:[#allocation7] sm:$0xff] %vm2545_vm7, %v2544_v9 }
 0xfbb   :  { %3425 = shalt.err (!%p3422_p0)
}
 0xfbc   :  { %2556 = dma.vmem_to_hbm [thread:$0]  %s2554_s16, 128, %s4576_s12, [#allocation4]  }
 0xfbd   :  { %3438 = dma.done.wait [#allocation4], 128  }
 0xfbe   :  { %3439 = vsyncadd [#allocation4], 4294967168 }
 0xfbf   :  { %2560 = vsyncpa [#allocation3], 1 }
 0xfc0   :  { %2561 = vsyncpa [#allocation6], 1 }
 0xfc1   :  { %2562 = vsyncpa [#allocation4], 1 }

</bundles_post_ra>
